<compile_context>
chip_gen: v6e
topology: v6e:2x2x1
jax: 0.10.0
libtpu: 0.0.40
codegen_flags: <defaults>
</compile_context>

<pallas_src>
import functools

import jax
import jax.numpy as jnp
import numpy as np
from jax.experimental import pallas as pl
from jax.experimental.pallas import tpu as pltpu

F32 = jnp.float32

# Set True to feed bf16 operands to the MXU (f32 accumulation).  Free throughput
# headroom on v6e/v7x once dims are scaled back to 2048/1024; left off here to
# preserve the f32 reference numerics of the PyTorch module.  Elementwise /
# gate math stays f32 either way (v5e has no bf16 VPU/EUP path).
MXU_BF16 = False


def _dot(a, b):
    if MXU_BF16:
        a = a.astype(jnp.bfloat16)
        b = b.astype(jnp.bfloat16)
    return jnp.dot(a, b, preferred_element_type=jnp.float32)


def _vmem_specs(n):
    return [pl.BlockSpec(memory_space=pltpu.MemorySpace.VMEM) for _ in range(n)]


# ----------------------------------------------------------------------------
# The single fused kernel
# ----------------------------------------------------------------------------
def _vqa_fused_kernel(
    # image path
    x_img_ref, pool_ref, img_w_ref, img_b_ref,
    # question path
    q_emb_ref,
    win0_ref, whh0_ref, bl0_ref,
    win1_ref, whh1_ref, bl1_ref,
    win2_ref, whh2_ref, bl2_ref,
    fw1_ref, fb1_ref, fs1_ref, ft1_ref,
    fw2_ref, fb2_ref, fs2_ref, ft2_ref,
    # attention + heads
    wimg_ref, bimg_ref, wq_ref, bq_ref,
    lng_ref, lnb_ref, atw_ref, atb_ref,
    wcimg_ref, wcq_ref, bc_ref, sc_ref, tc_ref,
    wf_ref, bf_ref,
    # output
    out_ref,
    *, batch, num_attn_layers):
    B = batch
    P = pool_ref.shape[0] // B          # pooled spatial positions (4*4)
    TB = q_emb_ref.shape[0]
    T = TB // B
    H = whh0_ref.shape[0] // 2          # per-direction LSTM hidden
    AH = wimg_ref.shape[1]              # attention hidden dim
    ANS = wf_ref.shape[1]

    # ------------- Image path: pool FIRST, then 1x1 linear stem --------------
    # pool_ref is block-diagonal kron(I_B, pool) so one 2-D matmul pools all
    # batches at once; the linear stem commutes with the (linear) pooling.
    pooled = _dot(pool_ref[...], x_img_ref[...])                       # (B*P, C)
    img_feat = _dot(pooled, img_w_ref[...]) + img_b_ref[...]           # (B*P, F_IMG)

    # ------------- Question path: 3-layer bidirectional LSTM -----------------
    # Merged fwd/bwd recurrence: state h2 = [h_f | h_b]; merged gate layout is
    # interleaved per gate [i_f,i_b | f_f,f_b | g_f,g_b | o_f,o_b]; one
    # (B,2H)@(2H,8H) matmul per step against block-diagonal recurrent weights.
    def bilstm(x_flat, win_ref, whh_ref, b_ref, need_seq):
        whh = whh_ref[...]                                             # (2H, 8H)
        bm = b_ref[...]                                                # (1, 8H)
        G = _dot(x_flat, win_ref[...])                                 # (T*B, 16H)
        GF = G[:, :8 * H] + bm       # fwd-direction input gates (bias folded in)
        GB = G[:, 8 * H:]            # bwd-direction input gates (per time t)
        h2 = jnp.zeros((B, 2 * H), F32)
        c2 = jnp.zeros((B, 2 * H), F32)
        hs = []
        for s in range(T):                                             # fully unrolled
            gin = GF[s * B:(s + 1) * B] + GB[(T - 1 - s) * B:(T - s) * B]
            gates = gin + _dot(h2, whh)                                # (B, 8H)
            i2 = jax.nn.sigmoid(gates[:, 0:2 * H])
            f2 = jax.nn.sigmoid(gates[:, 2 * H:4 * H])
            g2 = jnp.tanh(gates[:, 4 * H:6 * H])
            o2 = jax.nn.sigmoid(gates[:, 6 * H:8 * H])
            c2 = f2 * c2 + i2 * g2
            h2 = o2 * jnp.tanh(c2)
            hs.append(h2)
        # after the last merged step: [:, :H] = h_f(t=T-1), [:, H:] = h_b(t=0)
        q_hidden = hs[T - 1]                 # == torch.cat((h[-2], h[-1]), dim=1)
        if not need_seq:
            return None, q_hidden
        yf = jnp.concatenate([hs[t][:, :H] for t in range(T)], axis=0)          # (T*B, H)
        yb = jnp.concatenate([hs[T - 1 - t][:, H:] for t in range(T)], axis=0)  # (T*B, H)
        return jnp.concatenate([yf, yb], axis=1), q_hidden                       # (T*B, 2H)

    lstm_layers = ((win0_ref, whh0_ref, bl0_ref),
                   (win1_ref, whh1_ref, bl1_ref),
                   (win2_ref, whh2_ref, bl2_ref))
    x = q_emb_ref[...]                                   # (T*B, E), rows t-major
    q_hidden = None
    for li, (win_ref, whh_ref, bl_ref) in enumerate(lstm_layers):
        y, q_hidden = bilstm(x, win_ref, whh_ref, bl_ref,
                             need_seq=(li + 1 < len(lstm_layers)))
        if y is not None:
            x = y
    # TODO(synk): inter-layer LSTM dropout (p=0.4) and fc dropouts omitted -- eval mode.

    # fc_q: Linear -> BN(eval affine) -> ReLU -> Linear -> BN(eval affine) -> ReLU
    h = _dot(q_hidden, fw1_ref[...]) + fb1_ref[...]
    h = jnp.maximum(h * fs1_ref[...] + ft1_ref[...], 0.0)
    h = _dot(h, fw2_ref[...]) + fb2_ref[...]
    q_feat = jnp.maximum(h * fs2_ref[...] + ft2_ref[...], 0.0)          # (B, QF)

    # ------------- MultiLayerAttention + fc_combined + fc_final --------------
    imgp = (_dot(img_feat, wimg_ref[...]) + bimg_ref[...]).reshape(B, P, AH)
    qp = _dot(q_feat, wq_ref[...]) + bq_ref[...]                         # (B, AH)
    lng = lng_ref[...]
    lnb = lnb_ref[...]
    atw = atw_ref[...]
    atb = atb_ref[...]

    # --- attention layer 0 (exact) ---
    comb = imgp + qp[:, None, :]
    mu = jnp.mean(comb, axis=-1, keepdims=True)
    var = jnp.mean(jnp.square(comb - mu), axis=-1, keepdims=True)
    comb = (comb - mu) * jax.lax.rsqrt(var + 1e-5)
    comb = comb * lng[0][None, None, :] + lnb[0][None, None, :]
    th = jnp.tanh(comb)
    scores = jnp.sum(th * atw[0][None, None, :], axis=-1) + atb[0, 0]    # (B, P)
    scores = scores - jnp.max(scores, axis=1, keepdims=True)
    e = jnp.exp(scores)
    w0 = e / jnp.sum(e, axis=1, keepdims=True)
    av = jnp.sum(w0[:, :, None] * imgp, axis=1)                          # (B, AH)

    # Attention layers >= 1 of the PyTorch module re-attend over a broadcast of
    # `av`: every position is identical, so their softmax is exactly uniform and
    # the attended vector is unchanged.  Closed form (layer >=1 params provably
    # cannot change the output).
    if num_attn_layers > 1:
        attw = jnp.full((B, P), 1.0 / P, dtype=F32)
    else:
        attw = w0

    # fc_combined: cat([attended, q_feat]) @ Wc split into two matmuls, then
    # BN(eval affine) -> ReLU; fc_final.
    hc = _dot(av, wcimg_ref[...]) + _dot(q_feat, wcq_ref[...]) + bc_ref[...]
    hc = jnp.maximum(hc * sc_ref[...] + tc_ref[...], 0.0)
    logits = _dot(hc, wf_ref[...]) + bf_ref[...]                         # (B, ANS)

    # lane-dense packed output slab: [logits | attn_weights | zero pad] ->
    # one unmasked (B, 128k) store instead of two narrow masked stores.
    pad = out_ref.shape[1] - ANS - P
    parts = [logits, attw]
    if pad > 0:
        parts.append(jnp.zeros((B, pad), F32))
    out_ref[...] = jnp.concatenate(parts, axis=1)


# ----------------------------------------------------------------------------
# Wrapper: layout glue + parameter re-layout (pure JAX / numpy, no compute)
# ----------------------------------------------------------------------------
def _adaptive_pool_matrix(H, W, out_h, out_w):
    P = np.zeros((out_h * out_w, H * W), dtype=np.float32)
    for oi in range(out_h):
        hs, he = (oi * H) // out_h, -(-((oi + 1) * H) // out_h)
        for oj in range(out_w):
            ws, we = (oj * W) // out_w, -(-((oj + 1) * W) // out_w)
            cnt = float((he - hs) * (we - ws))
            for r in range(hs, he):
                for c in range(ws, we):
                    P[oi * out_w + oj, r * W + c] = 1.0 / cnt
    return P


def _interleave_gates(a, b, H):
    # (..., 4H) i,f,g,o per-direction blocks -> (..., 8H) [i_a,i_b,f_a,f_b,...]
    parts = []
    for g in range(4):
        parts.append(a[:, g * H:(g + 1) * H])
        parts.append(b[:, g * H:(g + 1) * H])
    return jnp.concatenate(parts, axis=1)


def _merge_bilstm_params(lp):
    # PyTorch-layout per-direction LSTM weights (gate order i,f,g,o) -> merged
    # layout used by the fused kernel: one (Din,16H) input weight (fwd half /
    # bwd half, each gate-spread), block-diagonal (2H,8H) recurrent weight and
    # a merged (1,8H) bias.
    H = lp["whh_f"].shape[0]
    w_in = jnp.concatenate(
        [_interleave_gates(lp["wih_f"], jnp.zeros_like(lp["wih_f"]), H),
         _interleave_gates(jnp.zeros_like(lp["wih_b"]), lp["wih_b"], H)], axis=1)
    whh = jnp.concatenate(
        [_interleave_gates(lp["whh_f"], jnp.zeros_like(lp["whh_f"]), H),
         _interleave_gates(jnp.zeros_like(lp["whh_b"]), lp["whh_b"], H)], axis=0)
    b = _interleave_gates(lp["b_f"], lp["b_b"], H)
    return w_in, whh, b


def vqa_forward(images, questions, params):
    B, C, Hh, Ww = images.shape
    T = questions.shape[1]

    # NCHW -> (B*HW, C) channels-last rows (layout glue only)
    x_img = jnp.transpose(images, (0, 2, 3, 1)).reshape(B * Hh * Ww, C)
    # block-diagonal adaptive-avg-pool matrix: one 2-D matmul pools all batches
    pool_bd = jnp.asarray(np.kron(np.eye(B, dtype=np.float32),
                                  _adaptive_pool_matrix(Hh, Ww, 4, 4)))
    P = pool_bd.shape[0] // B

    pi = params["image"]
    pq = params["question"]
    pa = params["attention"]

    # embedding gather (glue) -> time-major flattened (T*B, E)
    emb = jnp.take(pq["embedding"], questions, axis=0)                 # (B, T, E)
    q_emb = jnp.transpose(emb, (1, 0, 2)).reshape(T * B, emb.shape[-1])

    lstm_args = []
    for lp in pq["lstm_layers"]:
        lstm_args += list(_merge_bilstm_params(lp))

    ANS = pa["wf"].shape[1]
    pack_w = max(128, -(-(ANS + P) // 128) * 128)

    args = [x_img, pool_bd, pi["w"], pi["b"], q_emb] + lstm_args + [
        pq["fc_w1"], pq["fc_b1"], pq["fc_s1"], pq["fc_t1"],
        pq["fc_w2"], pq["fc_b2"], pq["fc_s2"], pq["fc_t2"],
        pa["wimg"], pa["bimg"], pa["wq"], pa["bq"],
        pa["ln_gamma"], pa["ln_beta"], pa["attn_w"], pa["attn_b"],
        pa["wc_img"], pa["wc_q"], pa["bc"], pa["sc"], pa["tc"],
        pa["wf"], pa["bf"],
    ]

    kern = functools.partial(_vqa_fused_kernel, batch=B,
                             num_attn_layers=pa["ln_gamma"].shape[0])
    packed = pl.pallas_call(
        kern,
        out_shape=jax.ShapeDtypeStruct((B, pack_w), F32),
        in_specs=_vmem_specs(len(args)),
        out_specs=pl.BlockSpec(memory_space=pltpu.MemorySpace.VMEM),
        compiler_params=pltpu.CompilerParams(vmem_limit_bytes=64 << 20),
    )(*args)

    logits = packed[:, :ANS]
    attn_weights = packed[:, ANS:ANS + P]
    return logits, attn_weights


# ----------------------------------------------------------------------------
# Deterministic parameter init (synthetic; no checkpoint).  PyTorch layouts.
# ----------------------------------------------------------------------------
def init_params(key, cfg):
    keys = iter(jax.random.split(key, 128))

    def nrm(shape, scale=0.05):
        return (scale * jax.random.normal(next(keys), shape)).astype(F32)

    def bn_eval(n):   # running_mean=0, running_var=1, gamma=1, beta=0 -> affine
        scale = jnp.full((1, n), 1.0 / np.sqrt(1.0 + 1e-5), dtype=F32)
        shift = jnp.zeros((1, n), dtype=F32)
        return scale, shift

    C_IN, F_IMG = cfg["C_IN"], cfg["IMG_FEAT"]
    E, H, D2 = cfg["EMBED"], cfg["LSTM_H"], 2 * cfg["LSTM_H"]
    FCQ, QF = cfg["FCQ_HID"], cfg["Q_FEAT"]
    AH, ANS = cfg["ATT_HID"], cfg["ANS"]

    image = {"w": nrm((C_IN, F_IMG)), "b": jnp.zeros((1, F_IMG), F32)}

    lstm_layers = []
    for li in range(3):
        din = E if li == 0 else D2
        lstm_layers.append({
            "wih_f": nrm((din, 4 * H)), "whh_f": nrm((H, 4 * H)),
            "b_f": jnp.zeros((1, 4 * H), F32),
            "wih_b": nrm((din, 4 * H)), "whh_b": nrm((H, 4 * H)),
            "b_b": jnp.zeros((1, 4 * H), F32),
        })
    s1, t1 = bn_eval(FCQ)
    s2, t2 = bn_eval(QF)
    question = {
        "embedding": nrm((cfg["VOCAB"], E), 0.1),
        "lstm_layers": lstm_layers,
        "fc_w1": nrm((D2, FCQ)), "fc_b1": jnp.zeros((1, FCQ), F32),
        "fc_s1": s1, "fc_t1": t1,
        "fc_w2": nrm((FCQ, QF)), "fc_b2": jnp.zeros((1, QF), F32),
        "fc_s2": s2, "fc_t2": t2,
    }

    sc, tc = bn_eval(AH)
    attention = {
        "wimg": nrm((F_IMG, AH)), "bimg": jnp.zeros((1, AH), F32),
        "wq": nrm((QF, AH)), "bq": jnp.zeros((1, AH), F32),
        "ln_gamma": jnp.ones((3, AH), F32), "ln_beta": jnp.zeros((3, AH), F32),
        "attn_w": nrm((3, AH)), "attn_b": jnp.zeros((3, 1), F32),
        "wc_img": nrm((AH, AH)), "wc_q": nrm((QF, AH)),
        "bc": jnp.zeros((1, AH), F32), "sc": sc, "tc": tc,
        "wf": nrm((AH, ANS)), "bf": jnp.zeros((1, ANS), F32),
    }
    return {"image": image, "question": question, "attention": attention}


if __name__ == "__main__":
    cfg = dict(B=2, C_IN=4, IMG_HW=16, IMG_FEAT=256,
               VOCAB=50, EMBED=32, LSTM_H=32, T=8,
               FCQ_HID=128, Q_FEAT=256, ATT_HID=128, ANS=16)

    params = init_params(jax.random.PRNGKey(0), cfg)

    kimg, kq = jax.random.split(jax.random.PRNGKey(0), 2)
    images = jax.random.normal(kimg, (cfg["B"], cfg["C_IN"], cfg["IMG_HW"], cfg["IMG_HW"]),
                               dtype=F32)
    questions = jax.random.randint(kq, (cfg["B"], cfg["T"]), 0, cfg["VOCAB"],
                                   dtype=jnp.int32)

    fwd = jax.jit(vqa_forward)
    logits, attn_w = fwd(images, questions, params)
    jax.block_until_ready((logits, attn_w))

    assert logits.shape == (cfg["B"], cfg["ANS"])
    assert attn_w.shape == (cfg["B"], 16)
    assert bool(jnp.all(jnp.isfinite(logits)))
    assert bool(jnp.allclose(jnp.sum(attn_w, axis=1), 1.0, atol=1e-5))
    print("KERNEL_OK")
</pallas_src>

<mosaic_0001>
module attributes {stable_mosaic.version = 11 : i64} {
  func.func @_vqa_fused_kernel(%arg0: memref<512x4xf32, #tpu.memory_space<vmem>>, %arg1: memref<32x512xf32, #tpu.memory_space<vmem>>, %arg2: memref<4x256xf32, #tpu.memory_space<vmem>>, %arg3: memref<1x256xf32, #tpu.memory_space<vmem>>, %arg4: memref<16x32xf32, #tpu.memory_space<vmem>>, %arg5: memref<32x512xf32, #tpu.memory_space<vmem>>, %arg6: memref<64x256xf32, #tpu.memory_space<vmem>>, %arg7: memref<1x256xf32, #tpu.memory_space<vmem>>, %arg8: memref<64x512xf32, #tpu.memory_space<vmem>>, %arg9: memref<64x256xf32, #tpu.memory_space<vmem>>, %arg10: memref<1x256xf32, #tpu.memory_space<vmem>>, %arg11: memref<64x512xf32, #tpu.memory_space<vmem>>, %arg12: memref<64x256xf32, #tpu.memory_space<vmem>>, %arg13: memref<1x256xf32, #tpu.memory_space<vmem>>, %arg14: memref<64x128xf32, #tpu.memory_space<vmem>>, %arg15: memref<1x128xf32, #tpu.memory_space<vmem>>, %arg16: memref<1x128xf32, #tpu.memory_space<vmem>>, %arg17: memref<1x128xf32, #tpu.memory_space<vmem>>, %arg18: memref<128x256xf32, #tpu.memory_space<vmem>>, %arg19: memref<1x256xf32, #tpu.memory_space<vmem>>, %arg20: memref<1x256xf32, #tpu.memory_space<vmem>>, %arg21: memref<1x256xf32, #tpu.memory_space<vmem>>, %arg22: memref<256x128xf32, #tpu.memory_space<vmem>>, %arg23: memref<1x128xf32, #tpu.memory_space<vmem>>, %arg24: memref<256x128xf32, #tpu.memory_space<vmem>>, %arg25: memref<1x128xf32, #tpu.memory_space<vmem>>, %arg26: memref<3x128xf32, #tpu.memory_space<vmem>>, %arg27: memref<3x128xf32, #tpu.memory_space<vmem>>, %arg28: memref<3x128xf32, #tpu.memory_space<vmem>>, %arg29: memref<3x1xf32, #tpu.memory_space<vmem>>, %arg30: memref<128x128xf32, #tpu.memory_space<vmem>>, %arg31: memref<256x128xf32, #tpu.memory_space<vmem>>, %arg32: memref<1x128xf32, #tpu.memory_space<vmem>>, %arg33: memref<1x128xf32, #tpu.memory_space<vmem>>, %arg34: memref<1x128xf32, #tpu.memory_space<vmem>>, %arg35: memref<128x16xf32, #tpu.memory_space<vmem>>, %arg36: memref<1x16xf32, #tpu.memory_space<vmem>>, %arg37: memref<2x128xf32, #tpu.memory_space<vmem>>) attributes {dimension_semantics = [], scalar_prefetch = 0 : i64, scratch_operands = 0 : i64, tpu.core_type = #tpu.core_type<tc>} {
    %c0 = arith.constant 0 : index
    %c0_0 = arith.constant 0 : index
    %0 = vector.load %arg1[%c0, %c0_0] : memref<32x512xf32, #tpu.memory_space<vmem>>, vector<32x512xf32>
    %c0_1 = arith.constant 0 : index
    %c0_2 = arith.constant 0 : index
    %1 = vector.load %arg0[%c0_1, %c0_2] : memref<512x4xf32, #tpu.memory_space<vmem>>, vector<512x4xf32>
    %cst = arith.constant dense<0.000000e+00> : vector<32x4xf32>
    %2 = tpu.matmul %0, %1, %cst {dimension_numbers = #tpu.dot_dimension_numbers<[1], [0], [0], [1], [0, 0, 1, 1], [], []>} : vector<32x512xf32>, vector<512x4xf32>, vector<32x4xf32> -> vector<32x4xf32>
    %c0_3 = arith.constant 0 : index
    %c0_4 = arith.constant 0 : index
    %3 = vector.load %arg2[%c0_3, %c0_4] : memref<4x256xf32, #tpu.memory_space<vmem>>, vector<4x256xf32>
    %cst_5 = arith.constant dense<0.000000e+00> : vector<32x256xf32>
    %4 = tpu.matmul %2, %3, %cst_5 {dimension_numbers = #tpu.dot_dimension_numbers<[1], [0], [0], [1], [0, 0, 1, 1], [], []>} : vector<32x4xf32>, vector<4x256xf32>, vector<32x256xf32> -> vector<32x256xf32>
    %c0_6 = arith.constant 0 : index
    %c0_7 = arith.constant 0 : index
    %5 = vector.load %arg3[%c0_6, %c0_7] : memref<1x256xf32, #tpu.memory_space<vmem>>, vector<1x256xf32>
    %6 = vector.broadcast %5 : vector<1x256xf32> to vector<32x256xf32>
    %7 = arith.addf %4, %6 : vector<32x256xf32>
    %c0_8 = arith.constant 0 : index
    %c0_9 = arith.constant 0 : index
    %8 = vector.load %arg4[%c0_8, %c0_9] : memref<16x32xf32, #tpu.memory_space<vmem>>, vector<16x32xf32>
    %c0_10 = arith.constant 0 : index
    %c0_11 = arith.constant 0 : index
    %9 = vector.load %arg6[%c0_10, %c0_11] : memref<64x256xf32, #tpu.memory_space<vmem>>, vector<64x256xf32>
    %c0_12 = arith.constant 0 : index
    %c0_13 = arith.constant 0 : index
    %10 = vector.load %arg7[%c0_12, %c0_13] : memref<1x256xf32, #tpu.memory_space<vmem>>, vector<1x256xf32>
    %c0_14 = arith.constant 0 : index
    %c0_15 = arith.constant 0 : index
    %11 = vector.load %arg5[%c0_14, %c0_15] : memref<32x512xf32, #tpu.memory_space<vmem>>, vector<32x512xf32>
    %cst_16 = arith.constant dense<0.000000e+00> : vector<16x512xf32>
    %12 = tpu.matmul %8, %11, %cst_16 {dimension_numbers = #tpu.dot_dimension_numbers<[1], [0], [0], [1], [0, 0, 1, 1], [], []>} : vector<16x32xf32>, vector<32x512xf32>, vector<16x512xf32> -> vector<16x512xf32>
    %13 = vector.extract_strided_slice %12 {offsets = [0, 0], sizes = [16, 256], strides = [1, 1]} : vector<16x512xf32> to vector<16x256xf32>
    %14 = vector.broadcast %10 : vector<1x256xf32> to vector<16x256xf32>
    %15 = arith.addf %13, %14 : vector<16x256xf32>
    %16 = vector.extract_strided_slice %12 {offsets = [0, 256], sizes = [16, 256], strides = [1, 1]} : vector<16x512xf32> to vector<16x256xf32>
    %cst_17 = arith.constant 0.000000e+00 : f32
    %17 = vector.broadcast %cst_17 : f32 to vector<2x64xf32>
    %cst_18 = arith.constant 0.000000e+00 : f32
    %18 = vector.broadcast %cst_18 : f32 to vector<2x64xf32>
    %19 = vector.extract_strided_slice %15 {offsets = [0, 0], sizes = [2, 256], strides = [1, 1]} : vector<16x256xf32> to vector<2x256xf32>
    %20 = vector.extract_strided_slice %16 {offsets = [14, 0], sizes = [2, 256], strides = [1, 1]} : vector<16x256xf32> to vector<2x256xf32>
    %21 = arith.addf %19, %20 : vector<2x256xf32>
    %cst_19 = arith.constant dense<0.000000e+00> : vector<2x256xf32>
    %22 = tpu.matmul %17, %9, %cst_19 {dimension_numbers = #tpu.dot_dimension_numbers<[1], [0], [0], [1], [0, 0, 1, 1], [], []>} : vector<2x64xf32>, vector<64x256xf32>, vector<2x256xf32> -> vector<2x256xf32>
    %23 = arith.addf %21, %22 : vector<2x256xf32>
    %24 = vector.extract_strided_slice %23 {offsets = [0, 0], sizes = [2, 64], strides = [1, 1]} : vector<2x256xf32> to vector<2x64xf32>
    %25 = arith.negf %24 : vector<2x64xf32>
    %26 = math.exp %25 : vector<2x64xf32>
    %cst_20 = arith.constant 1.000000e+00 : f32
    %27 = vector.broadcast %cst_20 : f32 to vector<2x64xf32>
    %28 = arith.addf %27, %26 : vector<2x64xf32>
    %29 = arith.divf %27, %28 : vector<2x64xf32>
    %30 = vector.extract_strided_slice %23 {offsets = [0, 64], sizes = [2, 64], strides = [1, 1]} : vector<2x256xf32> to vector<2x64xf32>
    %31 = arith.negf %30 : vector<2x64xf32>
    %32 = math.exp %31 : vector<2x64xf32>
    %cst_21 = arith.constant 1.000000e+00 : f32
    %33 = vector.broadcast %cst_21 : f32 to vector<2x64xf32>
    %34 = arith.addf %33, %32 : vector<2x64xf32>
    %35 = arith.divf %33, %34 : vector<2x64xf32>
    %36 = vector.extract_strided_slice %23 {offsets = [0, 128], sizes = [2, 64], strides = [1, 1]} : vector<2x256xf32> to vector<2x64xf32>
    %37 = math.tanh %36 : vector<2x64xf32>
    %38 = vector.extract_strided_slice %23 {offsets = [0, 192], sizes = [2, 64], strides = [1, 1]} : vector<2x256xf32> to vector<2x64xf32>
    %39 = arith.negf %38 : vector<2x64xf32>
    %40 = math.exp %39 : vector<2x64xf32>
    %cst_22 = arith.constant 1.000000e+00 : f32
    %41 = vector.broadcast %cst_22 : f32 to vector<2x64xf32>
    %42 = arith.addf %41, %40 : vector<2x64xf32>
    %43 = arith.divf %41, %42 : vector<2x64xf32>
    %44 = arith.mulf %35, %18 : vector<2x64xf32>
    %45 = arith.mulf %29, %37 : vector<2x64xf32>
    %46 = arith.addf %44, %45 : vector<2x64xf32>
    %47 = math.tanh %46 : vector<2x64xf32>
    %48 = arith.mulf %43, %47 : vector<2x64xf32>
    %49 = vector.extract_strided_slice %15 {offsets = [2, 0], sizes = [2, 256], strides = [1, 1]} : vector<16x256xf32> to vector<2x256xf32>
    %50 = vector.extract_strided_slice %16 {offsets = [12, 0], sizes = [2, 256], strides = [1, 1]} : vector<16x256xf32> to vector<2x256xf32>
    %51 = arith.addf %49, %50 : vector<2x256xf32>
    %cst_23 = arith.constant dense<0.000000e+00> : vector<2x256xf32>
    %52 = tpu.matmul %48, %9, %cst_23 {dimension_numbers = #tpu.dot_dimension_numbers<[1], [0], [0], [1], [0, 0, 1, 1], [], []>} : vector<2x64xf32>, vector<64x256xf32>, vector<2x256xf32> -> vector<2x256xf32>
    %53 = arith.addf %51, %52 : vector<2x256xf32>
    %54 = vector.extract_strided_slice %53 {offsets = [0, 0], sizes = [2, 64], strides = [1, 1]} : vector<2x256xf32> to vector<2x64xf32>
    %55 = arith.negf %54 : vector<2x64xf32>
    %56 = math.exp %55 : vector<2x64xf32>
    %cst_24 = arith.constant 1.000000e+00 : f32
    %57 = vector.broadcast %cst_24 : f32 to vector<2x64xf32>
    %58 = arith.addf %57, %56 : vector<2x64xf32>
    %59 = arith.divf %57, %58 : vector<2x64xf32>
    %60 = vector.extract_strided_slice %53 {offsets = [0, 64], sizes = [2, 64], strides = [1, 1]} : vector<2x256xf32> to vector<2x64xf32>
    %61 = arith.negf %60 : vector<2x64xf32>
    %62 = math.exp %61 : vector<2x64xf32>
    %cst_25 = arith.constant 1.000000e+00 : f32
    %63 = vector.broadcast %cst_25 : f32 to vector<2x64xf32>
    %64 = arith.addf %63, %62 : vector<2x64xf32>
    %65 = arith.divf %63, %64 : vector<2x64xf32>
    %66 = vector.extract_strided_slice %53 {offsets = [0, 128], sizes = [2, 64], strides = [1, 1]} : vector<2x256xf32> to vector<2x64xf32>
    %67 = math.tanh %66 : vector<2x64xf32>
    %68 = vector.extract_strided_slice %53 {offsets = [0, 192], sizes = [2, 64], strides = [1, 1]} : vector<2x256xf32> to vector<2x64xf32>
    %69 = arith.negf %68 : vector<2x64xf32>
    %70 = math.exp %69 : vector<2x64xf32>
    %cst_26 = arith.constant 1.000000e+00 : f32
    %71 = vector.broadcast %cst_26 : f32 to vector<2x64xf32>
    %72 = arith.addf %71, %70 : vector<2x64xf32>
    %73 = arith.divf %71, %72 : vector<2x64xf32>
    %74 = arith.mulf %65, %46 : vector<2x64xf32>
    %75 = arith.mulf %59, %67 : vector<2x64xf32>
    %76 = arith.addf %74, %75 : vector<2x64xf32>
    %77 = math.tanh %76 : vector<2x64xf32>
    %78 = arith.mulf %73, %77 : vector<2x64xf32>
    %79 = vector.extract_strided_slice %15 {offsets = [4, 0], sizes = [2, 256], strides = [1, 1]} : vector<16x256xf32> to vector<2x256xf32>
    %80 = vector.extract_strided_slice %16 {offsets = [10, 0], sizes = [2, 256], strides = [1, 1]} : vector<16x256xf32> to vector<2x256xf32>
    %81 = arith.addf %79, %80 : vector<2x256xf32>
    %cst_27 = arith.constant dense<0.000000e+00> : vector<2x256xf32>
    %82 = tpu.matmul %78, %9, %cst_27 {dimension_numbers = #tpu.dot_dimension_numbers<[1], [0], [0], [1], [0, 0, 1, 1], [], []>} : vector<2x64xf32>, vector<64x256xf32>, vector<2x256xf32> -> vector<2x256xf32>
    %83 = arith.addf %81, %82 : vector<2x256xf32>
    %84 = vector.extract_strided_slice %83 {offsets = [0, 0], sizes = [2, 64], strides = [1, 1]} : vector<2x256xf32> to vector<2x64xf32>
    %85 = arith.negf %84 : vector<2x64xf32>
    %86 = math.exp %85 : vector<2x64xf32>
    %cst_28 = arith.constant 1.000000e+00 : f32
    %87 = vector.broadcast %cst_28 : f32 to vector<2x64xf32>
    %88 = arith.addf %87, %86 : vector<2x64xf32>
    %89 = arith.divf %87, %88 : vector<2x64xf32>
    %90 = vector.extract_strided_slice %83 {offsets = [0, 64], sizes = [2, 64], strides = [1, 1]} : vector<2x256xf32> to vector<2x64xf32>
    %91 = arith.negf %90 : vector<2x64xf32>
    %92 = math.exp %91 : vector<2x64xf32>
    %cst_29 = arith.constant 1.000000e+00 : f32
    %93 = vector.broadcast %cst_29 : f32 to vector<2x64xf32>
    %94 = arith.addf %93, %92 : vector<2x64xf32>
    %95 = arith.divf %93, %94 : vector<2x64xf32>
    %96 = vector.extract_strided_slice %83 {offsets = [0, 128], sizes = [2, 64], strides = [1, 1]} : vector<2x256xf32> to vector<2x64xf32>
    %97 = math.tanh %96 : vector<2x64xf32>
    %98 = vector.extract_strided_slice %83 {offsets = [0, 192], sizes = [2, 64], strides = [1, 1]} : vector<2x256xf32> to vector<2x64xf32>
    %99 = arith.negf %98 : vector<2x64xf32>
    %100 = math.exp %99 : vector<2x64xf32>
    %cst_30 = arith.constant 1.000000e+00 : f32
    %101 = vector.broadcast %cst_30 : f32 to vector<2x64xf32>
    %102 = arith.addf %101, %100 : vector<2x64xf32>
    %103 = arith.divf %101, %102 : vector<2x64xf32>
    %104 = arith.mulf %95, %76 : vector<2x64xf32>
    %105 = arith.mulf %89, %97 : vector<2x64xf32>
    %106 = arith.addf %104, %105 : vector<2x64xf32>
    %107 = math.tanh %106 : vector<2x64xf32>
    %108 = arith.mulf %103, %107 : vector<2x64xf32>
    %109 = vector.extract_strided_slice %15 {offsets = [6, 0], sizes = [2, 256], strides = [1, 1]} : vector<16x256xf32> to vector<2x256xf32>
    %110 = vector.extract_strided_slice %16 {offsets = [8, 0], sizes = [2, 256], strides = [1, 1]} : vector<16x256xf32> to vector<2x256xf32>
    %111 = arith.addf %109, %110 : vector<2x256xf32>
    %cst_31 = arith.constant dense<0.000000e+00> : vector<2x256xf32>
    %112 = tpu.matmul %108, %9, %cst_31 {dimension_numbers = #tpu.dot_dimension_numbers<[1], [0], [0], [1], [0, 0, 1, 1], [], []>} : vector<2x64xf32>, vector<64x256xf32>, vector<2x256xf32> -> vector<2x256xf32>
    %113 = arith.addf %111, %112 : vector<2x256xf32>
    %114 = vector.extract_strided_slice %113 {offsets = [0, 0], sizes = [2, 64], strides = [1, 1]} : vector<2x256xf32> to vector<2x64xf32>
    %115 = arith.negf %114 : vector<2x64xf32>
    %116 = math.exp %115 : vector<2x64xf32>
    %cst_32 = arith.constant 1.000000e+00 : f32
    %117 = vector.broadcast %cst_32 : f32 to vector<2x64xf32>
    %118 = arith.addf %117, %116 : vector<2x64xf32>
    %119 = arith.divf %117, %118 : vector<2x64xf32>
    %120 = vector.extract_strided_slice %113 {offsets = [0, 64], sizes = [2, 64], strides = [1, 1]} : vector<2x256xf32> to vector<2x64xf32>
    %121 = arith.negf %120 : vector<2x64xf32>
    %122 = math.exp %121 : vector<2x64xf32>
    %cst_33 = arith.constant 1.000000e+00 : f32
    %123 = vector.broadcast %cst_33 : f32 to vector<2x64xf32>
    %124 = arith.addf %123, %122 : vector<2x64xf32>
    %125 = arith.divf %123, %124 : vector<2x64xf32>
    %126 = vector.extract_strided_slice %113 {offsets = [0, 128], sizes = [2, 64], strides = [1, 1]} : vector<2x256xf32> to vector<2x64xf32>
    %127 = math.tanh %126 : vector<2x64xf32>
    %128 = vector.extract_strided_slice %113 {offsets = [0, 192], sizes = [2, 64], strides = [1, 1]} : vector<2x256xf32> to vector<2x64xf32>
    %129 = arith.negf %128 : vector<2x64xf32>
    %130 = math.exp %129 : vector<2x64xf32>
    %cst_34 = arith.constant 1.000000e+00 : f32
    %131 = vector.broadcast %cst_34 : f32 to vector<2x64xf32>
    %132 = arith.addf %131, %130 : vector<2x64xf32>
    %133 = arith.divf %131, %132 : vector<2x64xf32>
    %134 = arith.mulf %125, %106 : vector<2x64xf32>
    %135 = arith.mulf %119, %127 : vector<2x64xf32>
    %136 = arith.addf %134, %135 : vector<2x64xf32>
    %137 = math.tanh %136 : vector<2x64xf32>
    %138 = arith.mulf %133, %137 : vector<2x64xf32>
    %139 = vector.extract_strided_slice %15 {offsets = [8, 0], sizes = [2, 256], strides = [1, 1]} : vector<16x256xf32> to vector<2x256xf32>
    %140 = vector.extract_strided_slice %16 {offsets = [6, 0], sizes = [2, 256], strides = [1, 1]} : vector<16x256xf32> to vector<2x256xf32>
    %141 = arith.addf %139, %140 : vector<2x256xf32>
    %cst_35 = arith.constant dense<0.000000e+00> : vector<2x256xf32>
    %142 = tpu.matmul %138, %9, %cst_35 {dimension_numbers = #tpu.dot_dimension_numbers<[1], [0], [0], [1], [0, 0, 1, 1], [], []>} : vector<2x64xf32>, vector<64x256xf32>, vector<2x256xf32> -> vector<2x256xf32>
    %143 = arith.addf %141, %142 : vector<2x256xf32>
    %144 = vector.extract_strided_slice %143 {offsets = [0, 0], sizes = [2, 64], strides = [1, 1]} : vector<2x256xf32> to vector<2x64xf32>
    %145 = arith.negf %144 : vector<2x64xf32>
    %146 = math.exp %145 : vector<2x64xf32>
    %cst_36 = arith.constant 1.000000e+00 : f32
    %147 = vector.broadcast %cst_36 : f32 to vector<2x64xf32>
    %148 = arith.addf %147, %146 : vector<2x64xf32>
    %149 = arith.divf %147, %148 : vector<2x64xf32>
    %150 = vector.extract_strided_slice %143 {offsets = [0, 64], sizes = [2, 64], strides = [1, 1]} : vector<2x256xf32> to vector<2x64xf32>
    %151 = arith.negf %150 : vector<2x64xf32>
    %152 = math.exp %151 : vector<2x64xf32>
    %cst_37 = arith.constant 1.000000e+00 : f32
    %153 = vector.broadcast %cst_37 : f32 to vector<2x64xf32>
    %154 = arith.addf %153, %152 : vector<2x64xf32>
    %155 = arith.divf %153, %154 : vector<2x64xf32>
    %156 = vector.extract_strided_slice %143 {offsets = [0, 128], sizes = [2, 64], strides = [1, 1]} : vector<2x256xf32> to vector<2x64xf32>
    %157 = math.tanh %156 : vector<2x64xf32>
    %158 = vector.extract_strided_slice %143 {offsets = [0, 192], sizes = [2, 64], strides = [1, 1]} : vector<2x256xf32> to vector<2x64xf32>
    %159 = arith.negf %158 : vector<2x64xf32>
    %160 = math.exp %159 : vector<2x64xf32>
    %cst_38 = arith.constant 1.000000e+00 : f32
    %161 = vector.broadcast %cst_38 : f32 to vector<2x64xf32>
    %162 = arith.addf %161, %160 : vector<2x64xf32>
    %163 = arith.divf %161, %162 : vector<2x64xf32>
    %164 = arith.mulf %155, %136 : vector<2x64xf32>
    %165 = arith.mulf %149, %157 : vector<2x64xf32>
    %166 = arith.addf %164, %165 : vector<2x64xf32>
    %167 = math.tanh %166 : vector<2x64xf32>
    %168 = arith.mulf %163, %167 : vector<2x64xf32>
    %169 = vector.extract_strided_slice %15 {offsets = [10, 0], sizes = [2, 256], strides = [1, 1]} : vector<16x256xf32> to vector<2x256xf32>
    %170 = vector.extract_strided_slice %16 {offsets = [4, 0], sizes = [2, 256], strides = [1, 1]} : vector<16x256xf32> to vector<2x256xf32>
    %171 = arith.addf %169, %170 : vector<2x256xf32>
    %cst_39 = arith.constant dense<0.000000e+00> : vector<2x256xf32>
    %172 = tpu.matmul %168, %9, %cst_39 {dimension_numbers = #tpu.dot_dimension_numbers<[1], [0], [0], [1], [0, 0, 1, 1], [], []>} : vector<2x64xf32>, vector<64x256xf32>, vector<2x256xf32> -> vector<2x256xf32>
    %173 = arith.addf %171, %172 : vector<2x256xf32>
    %174 = vector.extract_strided_slice %173 {offsets = [0, 0], sizes = [2, 64], strides = [1, 1]} : vector<2x256xf32> to vector<2x64xf32>
    %175 = arith.negf %174 : vector<2x64xf32>
    %176 = math.exp %175 : vector<2x64xf32>
    %cst_40 = arith.constant 1.000000e+00 : f32
    %177 = vector.broadcast %cst_40 : f32 to vector<2x64xf32>
    %178 = arith.addf %177, %176 : vector<2x64xf32>
    %179 = arith.divf %177, %178 : vector<2x64xf32>
    %180 = vector.extract_strided_slice %173 {offsets = [0, 64], sizes = [2, 64], strides = [1, 1]} : vector<2x256xf32> to vector<2x64xf32>
    %181 = arith.negf %180 : vector<2x64xf32>
    %182 = math.exp %181 : vector<2x64xf32>
    %cst_41 = arith.constant 1.000000e+00 : f32
    %183 = vector.broadcast %cst_41 : f32 to vector<2x64xf32>
    %184 = arith.addf %183, %182 : vector<2x64xf32>
    %185 = arith.divf %183, %184 : vector<2x64xf32>
    %186 = vector.extract_strided_slice %173 {offsets = [0, 128], sizes = [2, 64], strides = [1, 1]} : vector<2x256xf32> to vector<2x64xf32>
    %187 = math.tanh %186 : vector<2x64xf32>
    %188 = vector.extract_strided_slice %173 {offsets = [0, 192], sizes = [2, 64], strides = [1, 1]} : vector<2x256xf32> to vector<2x64xf32>
    %189 = arith.negf %188 : vector<2x64xf32>
    %190 = math.exp %189 : vector<2x64xf32>
    %cst_42 = arith.constant 1.000000e+00 : f32
    %191 = vector.broadcast %cst_42 : f32 to vector<2x64xf32>
    %192 = arith.addf %191, %190 : vector<2x64xf32>
    %193 = arith.divf %191, %192 : vector<2x64xf32>
    %194 = arith.mulf %185, %166 : vector<2x64xf32>
    %195 = arith.mulf %179, %187 : vector<2x64xf32>
    %196 = arith.addf %194, %195 : vector<2x64xf32>
    %197 = math.tanh %196 : vector<2x64xf32>
    %198 = arith.mulf %193, %197 : vector<2x64xf32>
    %199 = vector.extract_strided_slice %15 {offsets = [12, 0], sizes = [2, 256], strides = [1, 1]} : vector<16x256xf32> to vector<2x256xf32>
    %200 = vector.extract_strided_slice %16 {offsets = [2, 0], sizes = [2, 256], strides = [1, 1]} : vector<16x256xf32> to vector<2x256xf32>
    %201 = arith.addf %199, %200 : vector<2x256xf32>
    %cst_43 = arith.constant dense<0.000000e+00> : vector<2x256xf32>
    %202 = tpu.matmul %198, %9, %cst_43 {dimension_numbers = #tpu.dot_dimension_numbers<[1], [0], [0], [1], [0, 0, 1, 1], [], []>} : vector<2x64xf32>, vector<64x256xf32>, vector<2x256xf32> -> vector<2x256xf32>
    %203 = arith.addf %201, %202 : vector<2x256xf32>
    %204 = vector.extract_strided_slice %203 {offsets = [0, 0], sizes = [2, 64], strides = [1, 1]} : vector<2x256xf32> to vector<2x64xf32>
    %205 = arith.negf %204 : vector<2x64xf32>
    %206 = math.exp %205 : vector<2x64xf32>
    %cst_44 = arith.constant 1.000000e+00 : f32
    %207 = vector.broadcast %cst_44 : f32 to vector<2x64xf32>
    %208 = arith.addf %207, %206 : vector<2x64xf32>
    %209 = arith.divf %207, %208 : vector<2x64xf32>
    %210 = vector.extract_strided_slice %203 {offsets = [0, 64], sizes = [2, 64], strides = [1, 1]} : vector<2x256xf32> to vector<2x64xf32>
    %211 = arith.negf %210 : vector<2x64xf32>
    %212 = math.exp %211 : vector<2x64xf32>
    %cst_45 = arith.constant 1.000000e+00 : f32
    %213 = vector.broadcast %cst_45 : f32 to vector<2x64xf32>
    %214 = arith.addf %213, %212 : vector<2x64xf32>
    %215 = arith.divf %213, %214 : vector<2x64xf32>
    %216 = vector.extract_strided_slice %203 {offsets = [0, 128], sizes = [2, 64], strides = [1, 1]} : vector<2x256xf32> to vector<2x64xf32>
    %217 = math.tanh %216 : vector<2x64xf32>
    %218 = vector.extract_strided_slice %203 {offsets = [0, 192], sizes = [2, 64], strides = [1, 1]} : vector<2x256xf32> to vector<2x64xf32>
    %219 = arith.negf %218 : vector<2x64xf32>
    %220 = math.exp %219 : vector<2x64xf32>
    %cst_46 = arith.constant 1.000000e+00 : f32
    %221 = vector.broadcast %cst_46 : f32 to vector<2x64xf32>
    %222 = arith.addf %221, %220 : vector<2x64xf32>
    %223 = arith.divf %221, %222 : vector<2x64xf32>
    %224 = arith.mulf %215, %196 : vector<2x64xf32>
    %225 = arith.mulf %209, %217 : vector<2x64xf32>
    %226 = arith.addf %224, %225 : vector<2x64xf32>
    %227 = math.tanh %226 : vector<2x64xf32>
    %228 = arith.mulf %223, %227 : vector<2x64xf32>
    %229 = vector.extract_strided_slice %15 {offsets = [14, 0], sizes = [2, 256], strides = [1, 1]} : vector<16x256xf32> to vector<2x256xf32>
    %230 = vector.extract_strided_slice %16 {offsets = [0, 0], sizes = [2, 256], strides = [1, 1]} : vector<16x256xf32> to vector<2x256xf32>
    %231 = arith.addf %229, %230 : vector<2x256xf32>
    %cst_47 = arith.constant dense<0.000000e+00> : vector<2x256xf32>
    %232 = tpu.matmul %228, %9, %cst_47 {dimension_numbers = #tpu.dot_dimension_numbers<[1], [0], [0], [1], [0, 0, 1, 1], [], []>} : vector<2x64xf32>, vector<64x256xf32>, vector<2x256xf32> -> vector<2x256xf32>
    %233 = arith.addf %231, %232 : vector<2x256xf32>
    %234 = vector.extract_strided_slice %233 {offsets = [0, 0], sizes = [2, 64], strides = [1, 1]} : vector<2x256xf32> to vector<2x64xf32>
    %235 = arith.negf %234 : vector<2x64xf32>
    %236 = math.exp %235 : vector<2x64xf32>
    %cst_48 = arith.constant 1.000000e+00 : f32
    %237 = vector.broadcast %cst_48 : f32 to vector<2x64xf32>
    %238 = arith.addf %237, %236 : vector<2x64xf32>
    %239 = arith.divf %237, %238 : vector<2x64xf32>
    %240 = vector.extract_strided_slice %233 {offsets = [0, 64], sizes = [2, 64], strides = [1, 1]} : vector<2x256xf32> to vector<2x64xf32>
    %241 = arith.negf %240 : vector<2x64xf32>
    %242 = math.exp %241 : vector<2x64xf32>
    %cst_49 = arith.constant 1.000000e+00 : f32
    %243 = vector.broadcast %cst_49 : f32 to vector<2x64xf32>
    %244 = arith.addf %243, %242 : vector<2x64xf32>
    %245 = arith.divf %243, %244 : vector<2x64xf32>
    %246 = vector.extract_strided_slice %233 {offsets = [0, 128], sizes = [2, 64], strides = [1, 1]} : vector<2x256xf32> to vector<2x64xf32>
    %247 = math.tanh %246 : vector<2x64xf32>
    %248 = vector.extract_strided_slice %233 {offsets = [0, 192], sizes = [2, 64], strides = [1, 1]} : vector<2x256xf32> to vector<2x64xf32>
    %249 = arith.negf %248 : vector<2x64xf32>
    %250 = math.exp %249 : vector<2x64xf32>
    %cst_50 = arith.constant 1.000000e+00 : f32
    %251 = vector.broadcast %cst_50 : f32 to vector<2x64xf32>
    %252 = arith.addf %251, %250 : vector<2x64xf32>
    %253 = arith.divf %251, %252 : vector<2x64xf32>
    %254 = arith.mulf %245, %226 : vector<2x64xf32>
    %255 = arith.mulf %239, %247 : vector<2x64xf32>
    %256 = arith.addf %254, %255 : vector<2x64xf32>
    %257 = math.tanh %256 : vector<2x64xf32>
    %258 = arith.mulf %253, %257 : vector<2x64xf32>
    %259 = vector.extract_strided_slice %48 {offsets = [0, 0], sizes = [2, 32], strides = [1, 1]} : vector<2x64xf32> to vector<2x32xf32>
    %260 = vector.extract_strided_slice %78 {offsets = [0, 0], sizes = [2, 32], strides = [1, 1]} : vector<2x64xf32> to vector<2x32xf32>
    %261 = vector.extract_strided_slice %108 {offsets = [0, 0], sizes = [2, 32], strides = [1, 1]} : vector<2x64xf32> to vector<2x32xf32>
    %262 = vector.extract_strided_slice %138 {offsets = [0, 0], sizes = [2, 32], strides = [1, 1]} : vector<2x64xf32> to vector<2x32xf32>
    %263 = vector.extract_strided_slice %168 {offsets = [0, 0], sizes = [2, 32], strides = [1, 1]} : vector<2x64xf32> to vector<2x32xf32>
    %264 = vector.extract_strided_slice %198 {offsets = [0, 0], sizes = [2, 32], strides = [1, 1]} : vector<2x64xf32> to vector<2x32xf32>
    %265 = vector.extract_strided_slice %228 {offsets = [0, 0], sizes = [2, 32], strides = [1, 1]} : vector<2x64xf32> to vector<2x32xf32>
    %266 = vector.extract_strided_slice %258 {offsets = [0, 0], sizes = [2, 32], strides = [1, 1]} : vector<2x64xf32> to vector<2x32xf32>
    %267 = tpu.concatenate %259, %260, %261, %262, %263, %264, %265, %266 in 0 : vector<2x32xf32>, vector<2x32xf32>, vector<2x32xf32>, vector<2x32xf32>, vector<2x32xf32>, vector<2x32xf32>, vector<2x32xf32>, vector<2x32xf32> -> vector<16x32xf32>
    %268 = vector.extract_strided_slice %258 {offsets = [0, 32], sizes = [2, 32], strides = [1, 1]} : vector<2x64xf32> to vector<2x32xf32>
    %269 = vector.extract_strided_slice %228 {offsets = [0, 32], sizes = [2, 32], strides = [1, 1]} : vector<2x64xf32> to vector<2x32xf32>
    %270 = vector.extract_strided_slice %198 {offsets = [0, 32], sizes = [2, 32], strides = [1, 1]} : vector<2x64xf32> to vector<2x32xf32>
    %271 = vector.extract_strided_slice %168 {offsets = [0, 32], sizes = [2, 32], strides = [1, 1]} : vector<2x64xf32> to vector<2x32xf32>
    %272 = vector.extract_strided_slice %138 {offsets = [0, 32], sizes = [2, 32], strides = [1, 1]} : vector<2x64xf32> to vector<2x32xf32>
    %273 = vector.extract_strided_slice %108 {offsets = [0, 32], sizes = [2, 32], strides = [1, 1]} : vector<2x64xf32> to vector<2x32xf32>
    %274 = vector.extract_strided_slice %78 {offsets = [0, 32], sizes = [2, 32], strides = [1, 1]} : vector<2x64xf32> to vector<2x32xf32>
    %275 = vector.extract_strided_slice %48 {offsets = [0, 32], sizes = [2, 32], strides = [1, 1]} : vector<2x64xf32> to vector<2x32xf32>
    %276 = tpu.concatenate %268, %269, %270, %271, %272, %273, %274, %275 in 0 : vector<2x32xf32>, vector<2x32xf32>, vector<2x32xf32>, vector<2x32xf32>, vector<2x32xf32>, vector<2x32xf32>, vector<2x32xf32>, vector<2x32xf32> -> vector<16x32xf32>
    %277 = tpu.concatenate %267, %276 in 1 : vector<16x32xf32>, vector<16x32xf32> -> vector<16x64xf32>
    %c0_51 = arith.constant 0 : index
    %c0_52 = arith.constant 0 : index
    %278 = vector.load %arg9[%c0_51, %c0_52] : memref<64x256xf32, #tpu.memory_space<vmem>>, vector<64x256xf32>
    %c0_53 = arith.constant 0 : index
    %c0_54 = arith.constant 0 : index
    %279 = vector.load %arg10[%c0_53, %c0_54] : memref<1x256xf32, #tpu.memory_space<vmem>>, vector<1x256xf32>
    %c0_55 = arith.constant 0 : index
    %c0_56 = arith.constant 0 : index
    %280 = vector.load %arg8[%c0_55, %c0_56] : memref<64x512xf32, #tpu.memory_space<vmem>>, vector<64x512xf32>
    %cst_57 = arith.constant dense<0.000000e+00> : vector<16x512xf32>
    %281 = tpu.matmul %277, %280, %cst_57 {dimension_numbers = #tpu.dot_dimension_numbers<[1], [0], [0], [1], [0, 0, 1, 1], [], []>} : vector<16x64xf32>, vector<64x512xf32>, vector<16x512xf32> -> vector<16x512xf32>
    %282 = vector.extract_strided_slice %281 {offsets = [0, 0], sizes = [16, 256], strides = [1, 1]} : vector<16x512xf32> to vector<16x256xf32>
    %283 = vector.broadcast %279 : vector<1x256xf32> to vector<16x256xf32>
    %284 = arith.addf %282, %283 : vector<16x256xf32>
    %285 = vector.extract_strided_slice %281 {offsets = [0, 256], sizes = [16, 256], strides = [1, 1]} : vector<16x512xf32> to vector<16x256xf32>
    %cst_58 = arith.constant 0.000000e+00 : f32
    %286 = vector.broadcast %cst_58 : f32 to vector<2x64xf32>
    %cst_59 = arith.constant 0.000000e+00 : f32
    %287 = vector.broadcast %cst_59 : f32 to vector<2x64xf32>
    %288 = vector.extract_strided_slice %284 {offsets = [0, 0], sizes = [2, 256], strides = [1, 1]} : vector<16x256xf32> to vector<2x256xf32>
    %289 = vector.extract_strided_slice %285 {offsets = [14, 0], sizes = [2, 256], strides = [1, 1]} : vector<16x256xf32> to vector<2x256xf32>
    %290 = arith.addf %288, %289 : vector<2x256xf32>
    %cst_60 = arith.constant dense<0.000000e+00> : vector<2x256xf32>
    %291 = tpu.matmul %286, %278, %cst_60 {dimension_numbers = #tpu.dot_dimension_numbers<[1], [0], [0], [1], [0, 0, 1, 1], [], []>} : vector<2x64xf32>, vector<64x256xf32>, vector<2x256xf32> -> vector<2x256xf32>
    %292 = arith.addf %290, %291 : vector<2x256xf32>
    %293 = vector.extract_strided_slice %292 {offsets = [0, 0], sizes = [2, 64], strides = [1, 1]} : vector<2x256xf32> to vector<2x64xf32>
    %294 = arith.negf %293 : vector<2x64xf32>
    %295 = math.exp %294 : vector<2x64xf32>
    %cst_61 = arith.constant 1.000000e+00 : f32
    %296 = vector.broadcast %cst_61 : f32 to vector<2x64xf32>
    %297 = arith.addf %296, %295 : vector<2x64xf32>
    %298 = arith.divf %296, %297 : vector<2x64xf32>
    %299 = vector.extract_strided_slice %292 {offsets = [0, 64], sizes = [2, 64], strides = [1, 1]} : vector<2x256xf32> to vector<2x64xf32>
    %300 = arith.negf %299 : vector<2x64xf32>
    %301 = math.exp %300 : vector<2x64xf32>
    %cst_62 = arith.constant 1.000000e+00 : f32
    %302 = vector.broadcast %cst_62 : f32 to vector<2x64xf32>
    %303 = arith.addf %302, %301 : vector<2x64xf32>
    %304 = arith.divf %302, %303 : vector<2x64xf32>
    %305 = vector.extract_strided_slice %292 {offsets = [0, 128], sizes = [2, 64], strides = [1, 1]} : vector<2x256xf32> to vector<2x64xf32>
    %306 = math.tanh %305 : vector<2x64xf32>
    %307 = vector.extract_strided_slice %292 {offsets = [0, 192], sizes = [2, 64], strides = [1, 1]} : vector<2x256xf32> to vector<2x64xf32>
    %308 = arith.negf %307 : vector<2x64xf32>
    %309 = math.exp %308 : vector<2x64xf32>
    %cst_63 = arith.constant 1.000000e+00 : f32
    %310 = vector.broadcast %cst_63 : f32 to vector<2x64xf32>
    %311 = arith.addf %310, %309 : vector<2x64xf32>
    %312 = arith.divf %310, %311 : vector<2x64xf32>
    %313 = arith.mulf %304, %287 : vector<2x64xf32>
    %314 = arith.mulf %298, %306 : vector<2x64xf32>
    %315 = arith.addf %313, %314 : vector<2x64xf32>
    %316 = math.tanh %315 : vector<2x64xf32>
    %317 = arith.mulf %312, %316 : vector<2x64xf32>
    %318 = vector.extract_strided_slice %284 {offsets = [2, 0], sizes = [2, 256], strides = [1, 1]} : vector<16x256xf32> to vector<2x256xf32>
    %319 = vector.extract_strided_slice %285 {offsets = [12, 0], sizes = [2, 256], strides = [1, 1]} : vector<16x256xf32> to vector<2x256xf32>
    %320 = arith.addf %318, %319 : vector<2x256xf32>
    %cst_64 = arith.constant dense<0.000000e+00> : vector<2x256xf32>
    %321 = tpu.matmul %317, %278, %cst_64 {dimension_numbers = #tpu.dot_dimension_numbers<[1], [0], [0], [1], [0, 0, 1, 1], [], []>} : vector<2x64xf32>, vector<64x256xf32>, vector<2x256xf32> -> vector<2x256xf32>
    %322 = arith.addf %320, %321 : vector<2x256xf32>
    %323 = vector.extract_strided_slice %322 {offsets = [0, 0], sizes = [2, 64], strides = [1, 1]} : vector<2x256xf32> to vector<2x64xf32>
    %324 = arith.negf %323 : vector<2x64xf32>
    %325 = math.exp %324 : vector<2x64xf32>
    %cst_65 = arith.constant 1.000000e+00 : f32
    %326 = vector.broadcast %cst_65 : f32 to vector<2x64xf32>
    %327 = arith.addf %326, %325 : vector<2x64xf32>
    %328 = arith.divf %326, %327 : vector<2x64xf32>
    %329 = vector.extract_strided_slice %322 {offsets = [0, 64], sizes = [2, 64], strides = [1, 1]} : vector<2x256xf32> to vector<2x64xf32>
    %330 = arith.negf %329 : vector<2x64xf32>
    %331 = math.exp %330 : vector<2x64xf32>
    %cst_66 = arith.constant 1.000000e+00 : f32
    %332 = vector.broadcast %cst_66 : f32 to vector<2x64xf32>
    %333 = arith.addf %332, %331 : vector<2x64xf32>
    %334 = arith.divf %332, %333 : vector<2x64xf32>
    %335 = vector.extract_strided_slice %322 {offsets = [0, 128], sizes = [2, 64], strides = [1, 1]} : vector<2x256xf32> to vector<2x64xf32>
    %336 = math.tanh %335 : vector<2x64xf32>
    %337 = vector.extract_strided_slice %322 {offsets = [0, 192], sizes = [2, 64], strides = [1, 1]} : vector<2x256xf32> to vector<2x64xf32>
    %338 = arith.negf %337 : vector<2x64xf32>
    %339 = math.exp %338 : vector<2x64xf32>
    %cst_67 = arith.constant 1.000000e+00 : f32
    %340 = vector.broadcast %cst_67 : f32 to vector<2x64xf32>
    %341 = arith.addf %340, %339 : vector<2x64xf32>
    %342 = arith.divf %340, %341 : vector<2x64xf32>
    %343 = arith.mulf %334, %315 : vector<2x64xf32>
    %344 = arith.mulf %328, %336 : vector<2x64xf32>
    %345 = arith.addf %343, %344 : vector<2x64xf32>
    %346 = math.tanh %345 : vector<2x64xf32>
    %347 = arith.mulf %342, %346 : vector<2x64xf32>
    %348 = vector.extract_strided_slice %284 {offsets = [4, 0], sizes = [2, 256], strides = [1, 1]} : vector<16x256xf32> to vector<2x256xf32>
    %349 = vector.extract_strided_slice %285 {offsets = [10, 0], sizes = [2, 256], strides = [1, 1]} : vector<16x256xf32> to vector<2x256xf32>
    %350 = arith.addf %348, %349 : vector<2x256xf32>
    %cst_68 = arith.constant dense<0.000000e+00> : vector<2x256xf32>
    %351 = tpu.matmul %347, %278, %cst_68 {dimension_numbers = #tpu.dot_dimension_numbers<[1], [0], [0], [1], [0, 0, 1, 1], [], []>} : vector<2x64xf32>, vector<64x256xf32>, vector<2x256xf32> -> vector<2x256xf32>
    %352 = arith.addf %350, %351 : vector<2x256xf32>
    %353 = vector.extract_strided_slice %352 {offsets = [0, 0], sizes = [2, 64], strides = [1, 1]} : vector<2x256xf32> to vector<2x64xf32>
    %354 = arith.negf %353 : vector<2x64xf32>
    %355 = math.exp %354 : vector<2x64xf32>
    %cst_69 = arith.constant 1.000000e+00 : f32
    %356 = vector.broadcast %cst_69 : f32 to vector<2x64xf32>
    %357 = arith.addf %356, %355 : vector<2x64xf32>
    %358 = arith.divf %356, %357 : vector<2x64xf32>
    %359 = vector.extract_strided_slice %352 {offsets = [0, 64], sizes = [2, 64], strides = [1, 1]} : vector<2x256xf32> to vector<2x64xf32>
    %360 = arith.negf %359 : vector<2x64xf32>
    %361 = math.exp %360 : vector<2x64xf32>
    %cst_70 = arith.constant 1.000000e+00 : f32
    %362 = vector.broadcast %cst_70 : f32 to vector<2x64xf32>
    %363 = arith.addf %362, %361 : vector<2x64xf32>
    %364 = arith.divf %362, %363 : vector<2x64xf32>
    %365 = vector.extract_strided_slice %352 {offsets = [0, 128], sizes = [2, 64], strides = [1, 1]} : vector<2x256xf32> to vector<2x64xf32>
    %366 = math.tanh %365 : vector<2x64xf32>
    %367 = vector.extract_strided_slice %352 {offsets = [0, 192], sizes = [2, 64], strides = [1, 1]} : vector<2x256xf32> to vector<2x64xf32>
    %368 = arith.negf %367 : vector<2x64xf32>
    %369 = math.exp %368 : vector<2x64xf32>
    %cst_71 = arith.constant 1.000000e+00 : f32
    %370 = vector.broadcast %cst_71 : f32 to vector<2x64xf32>
    %371 = arith.addf %370, %369 : vector<2x64xf32>
    %372 = arith.divf %370, %371 : vector<2x64xf32>
    %373 = arith.mulf %364, %345 : vector<2x64xf32>
    %374 = arith.mulf %358, %366 : vector<2x64xf32>
    %375 = arith.addf %373, %374 : vector<2x64xf32>
    %376 = math.tanh %375 : vector<2x64xf32>
    %377 = arith.mulf %372, %376 : vector<2x64xf32>
    %378 = vector.extract_strided_slice %284 {offsets = [6, 0], sizes = [2, 256], strides = [1, 1]} : vector<16x256xf32> to vector<2x256xf32>
    %379 = vector.extract_strided_slice %285 {offsets = [8, 0], sizes = [2, 256], strides = [1, 1]} : vector<16x256xf32> to vector<2x256xf32>
    %380 = arith.addf %378, %379 : vector<2x256xf32>
    %cst_72 = arith.constant dense<0.000000e+00> : vector<2x256xf32>
    %381 = tpu.matmul %377, %278, %cst_72 {dimension_numbers = #tpu.dot_dimension_numbers<[1], [0], [0], [1], [0, 0, 1, 1], [], []>} : vector<2x64xf32>, vector<64x256xf32>, vector<2x256xf32> -> vector<2x256xf32>
    %382 = arith.addf %380, %381 : vector<2x256xf32>
    %383 = vector.extract_strided_slice %382 {offsets = [0, 0], sizes = [2, 64], strides = [1, 1]} : vector<2x256xf32> to vector<2x64xf32>
    %384 = arith.negf %383 : vector<2x64xf32>
    %385 = math.exp %384 : vector<2x64xf32>
    %cst_73 = arith.constant 1.000000e+00 : f32
    %386 = vector.broadcast %cst_73 : f32 to vector<2x64xf32>
    %387 = arith.addf %386, %385 : vector<2x64xf32>
    %388 = arith.divf %386, %387 : vector<2x64xf32>
    %389 = vector.extract_strided_slice %382 {offsets = [0, 64], sizes = [2, 64], strides = [1, 1]} : vector<2x256xf32> to vector<2x64xf32>
    %390 = arith.negf %389 : vector<2x64xf32>
    %391 = math.exp %390 : vector<2x64xf32>
    %cst_74 = arith.constant 1.000000e+00 : f32
    %392 = vector.broadcast %cst_74 : f32 to vector<2x64xf32>
    %393 = arith.addf %392, %391 : vector<2x64xf32>
    %394 = arith.divf %392, %393 : vector<2x64xf32>
    %395 = vector.extract_strided_slice %382 {offsets = [0, 128], sizes = [2, 64], strides = [1, 1]} : vector<2x256xf32> to vector<2x64xf32>
    %396 = math.tanh %395 : vector<2x64xf32>
    %397 = vector.extract_strided_slice %382 {offsets = [0, 192], sizes = [2, 64], strides = [1, 1]} : vector<2x256xf32> to vector<2x64xf32>
    %398 = arith.negf %397 : vector<2x64xf32>
    %399 = math.exp %398 : vector<2x64xf32>
    %cst_75 = arith.constant 1.000000e+00 : f32
    %400 = vector.broadcast %cst_75 : f32 to vector<2x64xf32>
    %401 = arith.addf %400, %399 : vector<2x64xf32>
    %402 = arith.divf %400, %401 : vector<2x64xf32>
    %403 = arith.mulf %394, %375 : vector<2x64xf32>
    %404 = arith.mulf %388, %396 : vector<2x64xf32>
    %405 = arith.addf %403, %404 : vector<2x64xf32>
    %406 = math.tanh %405 : vector<2x64xf32>
    %407 = arith.mulf %402, %406 : vector<2x64xf32>
    %408 = vector.extract_strided_slice %284 {offsets = [8, 0], sizes = [2, 256], strides = [1, 1]} : vector<16x256xf32> to vector<2x256xf32>
    %409 = vector.extract_strided_slice %285 {offsets = [6, 0], sizes = [2, 256], strides = [1, 1]} : vector<16x256xf32> to vector<2x256xf32>
    %410 = arith.addf %408, %409 : vector<2x256xf32>
    %cst_76 = arith.constant dense<0.000000e+00> : vector<2x256xf32>
    %411 = tpu.matmul %407, %278, %cst_76 {dimension_numbers = #tpu.dot_dimension_numbers<[1], [0], [0], [1], [0, 0, 1, 1], [], []>} : vector<2x64xf32>, vector<64x256xf32>, vector<2x256xf32> -> vector<2x256xf32>
    %412 = arith.addf %410, %411 : vector<2x256xf32>
    %413 = vector.extract_strided_slice %412 {offsets = [0, 0], sizes = [2, 64], strides = [1, 1]} : vector<2x256xf32> to vector<2x64xf32>
    %414 = arith.negf %413 : vector<2x64xf32>
    %415 = math.exp %414 : vector<2x64xf32>
    %cst_77 = arith.constant 1.000000e+00 : f32
    %416 = vector.broadcast %cst_77 : f32 to vector<2x64xf32>
    %417 = arith.addf %416, %415 : vector<2x64xf32>
    %418 = arith.divf %416, %417 : vector<2x64xf32>
    %419 = vector.extract_strided_slice %412 {offsets = [0, 64], sizes = [2, 64], strides = [1, 1]} : vector<2x256xf32> to vector<2x64xf32>
    %420 = arith.negf %419 : vector<2x64xf32>
    %421 = math.exp %420 : vector<2x64xf32>
    %cst_78 = arith.constant 1.000000e+00 : f32
    %422 = vector.broadcast %cst_78 : f32 to vector<2x64xf32>
    %423 = arith.addf %422, %421 : vector<2x64xf32>
    %424 = arith.divf %422, %423 : vector<2x64xf32>
    %425 = vector.extract_strided_slice %412 {offsets = [0, 128], sizes = [2, 64], strides = [1, 1]} : vector<2x256xf32> to vector<2x64xf32>
    %426 = math.tanh %425 : vector<2x64xf32>
    %427 = vector.extract_strided_slice %412 {offsets = [0, 192], sizes = [2, 64], strides = [1, 1]} : vector<2x256xf32> to vector<2x64xf32>
    %428 = arith.negf %427 : vector<2x64xf32>
    %429 = math.exp %428 : vector<2x64xf32>
    %cst_79 = arith.constant 1.000000e+00 : f32
    %430 = vector.broadcast %cst_79 : f32 to vector<2x64xf32>
    %431 = arith.addf %430, %429 : vector<2x64xf32>
    %432 = arith.divf %430, %431 : vector<2x64xf32>
    %433 = arith.mulf %424, %405 : vector<2x64xf32>
    %434 = arith.mulf %418, %426 : vector<2x64xf32>
    %435 = arith.addf %433, %434 : vector<2x64xf32>
    %436 = math.tanh %435 : vector<2x64xf32>
    %437 = arith.mulf %432, %436 : vector<2x64xf32>
    %438 = vector.extract_strided_slice %284 {offsets = [10, 0], sizes = [2, 256], strides = [1, 1]} : vector<16x256xf32> to vector<2x256xf32>
    %439 = vector.extract_strided_slice %285 {offsets = [4, 0], sizes = [2, 256], strides = [1, 1]} : vector<16x256xf32> to vector<2x256xf32>
    %440 = arith.addf %438, %439 : vector<2x256xf32>
    %cst_80 = arith.constant dense<0.000000e+00> : vector<2x256xf32>
    %441 = tpu.matmul %437, %278, %cst_80 {dimension_numbers = #tpu.dot_dimension_numbers<[1], [0], [0], [1], [0, 0, 1, 1], [], []>} : vector<2x64xf32>, vector<64x256xf32>, vector<2x256xf32> -> vector<2x256xf32>
    %442 = arith.addf %440, %441 : vector<2x256xf32>
    %443 = vector.extract_strided_slice %442 {offsets = [0, 0], sizes = [2, 64], strides = [1, 1]} : vector<2x256xf32> to vector<2x64xf32>
    %444 = arith.negf %443 : vector<2x64xf32>
    %445 = math.exp %444 : vector<2x64xf32>
    %cst_81 = arith.constant 1.000000e+00 : f32
    %446 = vector.broadcast %cst_81 : f32 to vector<2x64xf32>
    %447 = arith.addf %446, %445 : vector<2x64xf32>
    %448 = arith.divf %446, %447 : vector<2x64xf32>
    %449 = vector.extract_strided_slice %442 {offsets = [0, 64], sizes = [2, 64], strides = [1, 1]} : vector<2x256xf32> to vector<2x64xf32>
    %450 = arith.negf %449 : vector<2x64xf32>
    %451 = math.exp %450 : vector<2x64xf32>
    %cst_82 = arith.constant 1.000000e+00 : f32
    %452 = vector.broadcast %cst_82 : f32 to vector<2x64xf32>
    %453 = arith.addf %452, %451 : vector<2x64xf32>
    %454 = arith.divf %452, %453 : vector<2x64xf32>
    %455 = vector.extract_strided_slice %442 {offsets = [0, 128], sizes = [2, 64], strides = [1, 1]} : vector<2x256xf32> to vector<2x64xf32>
    %456 = math.tanh %455 : vector<2x64xf32>
    %457 = vector.extract_strided_slice %442 {offsets = [0, 192], sizes = [2, 64], strides = [1, 1]} : vector<2x256xf32> to vector<2x64xf32>
    %458 = arith.negf %457 : vector<2x64xf32>
    %459 = math.exp %458 : vector<2x64xf32>
    %cst_83 = arith.constant 1.000000e+00 : f32
    %460 = vector.broadcast %cst_83 : f32 to vector<2x64xf32>
    %461 = arith.addf %460, %459 : vector<2x64xf32>
    %462 = arith.divf %460, %461 : vector<2x64xf32>
    %463 = arith.mulf %454, %435 : vector<2x64xf32>
    %464 = arith.mulf %448, %456 : vector<2x64xf32>
    %465 = arith.addf %463, %464 : vector<2x64xf32>
    %466 = math.tanh %465 : vector<2x64xf32>
    %467 = arith.mulf %462, %466 : vector<2x64xf32>
    %468 = vector.extract_strided_slice %284 {offsets = [12, 0], sizes = [2, 256], strides = [1, 1]} : vector<16x256xf32> to vector<2x256xf32>
    %469 = vector.extract_strided_slice %285 {offsets = [2, 0], sizes = [2, 256], strides = [1, 1]} : vector<16x256xf32> to vector<2x256xf32>
    %470 = arith.addf %468, %469 : vector<2x256xf32>
    %cst_84 = arith.constant dense<0.000000e+00> : vector<2x256xf32>
    %471 = tpu.matmul %467, %278, %cst_84 {dimension_numbers = #tpu.dot_dimension_numbers<[1], [0], [0], [1], [0, 0, 1, 1], [], []>} : vector<2x64xf32>, vector<64x256xf32>, vector<2x256xf32> -> vector<2x256xf32>
    %472 = arith.addf %470, %471 : vector<2x256xf32>
    %473 = vector.extract_strided_slice %472 {offsets = [0, 0], sizes = [2, 64], strides = [1, 1]} : vector<2x256xf32> to vector<2x64xf32>
    %474 = arith.negf %473 : vector<2x64xf32>
    %475 = math.exp %474 : vector<2x64xf32>
    %cst_85 = arith.constant 1.000000e+00 : f32
    %476 = vector.broadcast %cst_85 : f32 to vector<2x64xf32>
    %477 = arith.addf %476, %475 : vector<2x64xf32>
    %478 = arith.divf %476, %477 : vector<2x64xf32>
    %479 = vector.extract_strided_slice %472 {offsets = [0, 64], sizes = [2, 64], strides = [1, 1]} : vector<2x256xf32> to vector<2x64xf32>
    %480 = arith.negf %479 : vector<2x64xf32>
    %481 = math.exp %480 : vector<2x64xf32>
    %cst_86 = arith.constant 1.000000e+00 : f32
    %482 = vector.broadcast %cst_86 : f32 to vector<2x64xf32>
    %483 = arith.addf %482, %481 : vector<2x64xf32>
    %484 = arith.divf %482, %483 : vector<2x64xf32>
    %485 = vector.extract_strided_slice %472 {offsets = [0, 128], sizes = [2, 64], strides = [1, 1]} : vector<2x256xf32> to vector<2x64xf32>
    %486 = math.tanh %485 : vector<2x64xf32>
    %487 = vector.extract_strided_slice %472 {offsets = [0, 192], sizes = [2, 64], strides = [1, 1]} : vector<2x256xf32> to vector<2x64xf32>
    %488 = arith.negf %487 : vector<2x64xf32>
    %489 = math.exp %488 : vector<2x64xf32>
    %cst_87 = arith.constant 1.000000e+00 : f32
    %490 = vector.broadcast %cst_87 : f32 to vector<2x64xf32>
    %491 = arith.addf %490, %489 : vector<2x64xf32>
    %492 = arith.divf %490, %491 : vector<2x64xf32>
    %493 = arith.mulf %484, %465 : vector<2x64xf32>
    %494 = arith.mulf %478, %486 : vector<2x64xf32>
    %495 = arith.addf %493, %494 : vector<2x64xf32>
    %496 = math.tanh %495 : vector<2x64xf32>
    %497 = arith.mulf %492, %496 : vector<2x64xf32>
    %498 = vector.extract_strided_slice %284 {offsets = [14, 0], sizes = [2, 256], strides = [1, 1]} : vector<16x256xf32> to vector<2x256xf32>
    %499 = vector.extract_strided_slice %285 {offsets = [0, 0], sizes = [2, 256], strides = [1, 1]} : vector<16x256xf32> to vector<2x256xf32>
    %500 = arith.addf %498, %499 : vector<2x256xf32>
    %cst_88 = arith.constant dense<0.000000e+00> : vector<2x256xf32>
    %501 = tpu.matmul %497, %278, %cst_88 {dimension_numbers = #tpu.dot_dimension_numbers<[1], [0], [0], [1], [0, 0, 1, 1], [], []>} : vector<2x64xf32>, vector<64x256xf32>, vector<2x256xf32> -> vector<2x256xf32>
    %502 = arith.addf %500, %501 : vector<2x256xf32>
    %503 = vector.extract_strided_slice %502 {offsets = [0, 0], sizes = [2, 64], strides = [1, 1]} : vector<2x256xf32> to vector<2x64xf32>
    %504 = arith.negf %503 : vector<2x64xf32>
    %505 = math.exp %504 : vector<2x64xf32>
    %cst_89 = arith.constant 1.000000e+00 : f32
    %506 = vector.broadcast %cst_89 : f32 to vector<2x64xf32>
    %507 = arith.addf %506, %505 : vector<2x64xf32>
    %508 = arith.divf %506, %507 : vector<2x64xf32>
    %509 = vector.extract_strided_slice %502 {offsets = [0, 64], sizes = [2, 64], strides = [1, 1]} : vector<2x256xf32> to vector<2x64xf32>
    %510 = arith.negf %509 : vector<2x64xf32>
    %511 = math.exp %510 : vector<2x64xf32>
    %cst_90 = arith.constant 1.000000e+00 : f32
    %512 = vector.broadcast %cst_90 : f32 to vector<2x64xf32>
    %513 = arith.addf %512, %511 : vector<2x64xf32>
    %514 = arith.divf %512, %513 : vector<2x64xf32>
    %515 = vector.extract_strided_slice %502 {offsets = [0, 128], sizes = [2, 64], strides = [1, 1]} : vector<2x256xf32> to vector<2x64xf32>
    %516 = math.tanh %515 : vector<2x64xf32>
    %517 = vector.extract_strided_slice %502 {offsets = [0, 192], sizes = [2, 64], strides = [1, 1]} : vector<2x256xf32> to vector<2x64xf32>
    %518 = arith.negf %517 : vector<2x64xf32>
    %519 = math.exp %518 : vector<2x64xf32>
    %cst_91 = arith.constant 1.000000e+00 : f32
    %520 = vector.broadcast %cst_91 : f32 to vector<2x64xf32>
    %521 = arith.addf %520, %519 : vector<2x64xf32>
    %522 = arith.divf %520, %521 : vector<2x64xf32>
    %523 = arith.mulf %514, %495 : vector<2x64xf32>
    %524 = arith.mulf %508, %516 : vector<2x64xf32>
    %525 = arith.addf %523, %524 : vector<2x64xf32>
    %526 = math.tanh %525 : vector<2x64xf32>
    %527 = arith.mulf %522, %526 : vector<2x64xf32>
    %528 = vector.extract_strided_slice %317 {offsets = [0, 0], sizes = [2, 32], strides = [1, 1]} : vector<2x64xf32> to vector<2x32xf32>
    %529 = vector.extract_strided_slice %347 {offsets = [0, 0], sizes = [2, 32], strides = [1, 1]} : vector<2x64xf32> to vector<2x32xf32>
    %530 = vector.extract_strided_slice %377 {offsets = [0, 0], sizes = [2, 32], strides = [1, 1]} : vector<2x64xf32> to vector<2x32xf32>
    %531 = vector.extract_strided_slice %407 {offsets = [0, 0], sizes = [2, 32], strides = [1, 1]} : vector<2x64xf32> to vector<2x32xf32>
    %532 = vector.extract_strided_slice %437 {offsets = [0, 0], sizes = [2, 32], strides = [1, 1]} : vector<2x64xf32> to vector<2x32xf32>
    %533 = vector.extract_strided_slice %467 {offsets = [0, 0], sizes = [2, 32], strides = [1, 1]} : vector<2x64xf32> to vector<2x32xf32>
    %534 = vector.extract_strided_slice %497 {offsets = [0, 0], sizes = [2, 32], strides = [1, 1]} : vector<2x64xf32> to vector<2x32xf32>
    %535 = vector.extract_strided_slice %527 {offsets = [0, 0], sizes = [2, 32], strides = [1, 1]} : vector<2x64xf32> to vector<2x32xf32>
    %536 = tpu.concatenate %528, %529, %530, %531, %532, %533, %534, %535 in 0 : vector<2x32xf32>, vector<2x32xf32>, vector<2x32xf32>, vector<2x32xf32>, vector<2x32xf32>, vector<2x32xf32>, vector<2x32xf32>, vector<2x32xf32> -> vector<16x32xf32>
    %537 = vector.extract_strided_slice %527 {offsets = [0, 32], sizes = [2, 32], strides = [1, 1]} : vector<2x64xf32> to vector<2x32xf32>
    %538 = vector.extract_strided_slice %497 {offsets = [0, 32], sizes = [2, 32], strides = [1, 1]} : vector<2x64xf32> to vector<2x32xf32>
    %539 = vector.extract_strided_slice %467 {offsets = [0, 32], sizes = [2, 32], strides = [1, 1]} : vector<2x64xf32> to vector<2x32xf32>
    %540 = vector.extract_strided_slice %437 {offsets = [0, 32], sizes = [2, 32], strides = [1, 1]} : vector<2x64xf32> to vector<2x32xf32>
    %541 = vector.extract_strided_slice %407 {offsets = [0, 32], sizes = [2, 32], strides = [1, 1]} : vector<2x64xf32> to vector<2x32xf32>
    %542 = vector.extract_strided_slice %377 {offsets = [0, 32], sizes = [2, 32], strides = [1, 1]} : vector<2x64xf32> to vector<2x32xf32>
    %543 = vector.extract_strided_slice %347 {offsets = [0, 32], sizes = [2, 32], strides = [1, 1]} : vector<2x64xf32> to vector<2x32xf32>
    %544 = vector.extract_strided_slice %317 {offsets = [0, 32], sizes = [2, 32], strides = [1, 1]} : vector<2x64xf32> to vector<2x32xf32>
    %545 = tpu.concatenate %537, %538, %539, %540, %541, %542, %543, %544 in 0 : vector<2x32xf32>, vector<2x32xf32>, vector<2x32xf32>, vector<2x32xf32>, vector<2x32xf32>, vector<2x32xf32>, vector<2x32xf32>, vector<2x32xf32> -> vector<16x32xf32>
    %546 = tpu.concatenate %536, %545 in 1 : vector<16x32xf32>, vector<16x32xf32> -> vector<16x64xf32>
    %c0_92 = arith.constant 0 : index
    %c0_93 = arith.constant 0 : index
    %547 = vector.load %arg12[%c0_92, %c0_93] : memref<64x256xf32, #tpu.memory_space<vmem>>, vector<64x256xf32>
    %c0_94 = arith.constant 0 : index
    %c0_95 = arith.constant 0 : index
    %548 = vector.load %arg13[%c0_94, %c0_95] : memref<1x256xf32, #tpu.memory_space<vmem>>, vector<1x256xf32>
    %c0_96 = arith.constant 0 : index
    %c0_97 = arith.constant 0 : index
    %549 = vector.load %arg11[%c0_96, %c0_97] : memref<64x512xf32, #tpu.memory_space<vmem>>, vector<64x512xf32>
    %cst_98 = arith.constant dense<0.000000e+00> : vector<16x512xf32>
    %550 = tpu.matmul %546, %549, %cst_98 {dimension_numbers = #tpu.dot_dimension_numbers<[1], [0], [0], [1], [0, 0, 1, 1], [], []>} : vector<16x64xf32>, vector<64x512xf32>, vector<16x512xf32> -> vector<16x512xf32>
    %551 = vector.extract_strided_slice %550 {offsets = [0, 0], sizes = [16, 256], strides = [1, 1]} : vector<16x512xf32> to vector<16x256xf32>
    %552 = vector.broadcast %548 : vector<1x256xf32> to vector<16x256xf32>
    %553 = arith.addf %551, %552 : vector<16x256xf32>
    %554 = vector.extract_strided_slice %550 {offsets = [0, 256], sizes = [16, 256], strides = [1, 1]} : vector<16x512xf32> to vector<16x256xf32>
    %cst_99 = arith.constant 0.000000e+00 : f32
    %555 = vector.broadcast %cst_99 : f32 to vector<2x64xf32>
    %cst_100 = arith.constant 0.000000e+00 : f32
    %556 = vector.broadcast %cst_100 : f32 to vector<2x64xf32>
    %557 = vector.extract_strided_slice %553 {offsets = [0, 0], sizes = [2, 256], strides = [1, 1]} : vector<16x256xf32> to vector<2x256xf32>
    %558 = vector.extract_strided_slice %554 {offsets = [14, 0], sizes = [2, 256], strides = [1, 1]} : vector<16x256xf32> to vector<2x256xf32>
    %559 = arith.addf %557, %558 : vector<2x256xf32>
    %cst_101 = arith.constant dense<0.000000e+00> : vector<2x256xf32>
    %560 = tpu.matmul %555, %547, %cst_101 {dimension_numbers = #tpu.dot_dimension_numbers<[1], [0], [0], [1], [0, 0, 1, 1], [], []>} : vector<2x64xf32>, vector<64x256xf32>, vector<2x256xf32> -> vector<2x256xf32>
    %561 = arith.addf %559, %560 : vector<2x256xf32>
    %562 = vector.extract_strided_slice %561 {offsets = [0, 0], sizes = [2, 64], strides = [1, 1]} : vector<2x256xf32> to vector<2x64xf32>
    %563 = arith.negf %562 : vector<2x64xf32>
    %564 = math.exp %563 : vector<2x64xf32>
    %cst_102 = arith.constant 1.000000e+00 : f32
    %565 = vector.broadcast %cst_102 : f32 to vector<2x64xf32>
    %566 = arith.addf %565, %564 : vector<2x64xf32>
    %567 = arith.divf %565, %566 : vector<2x64xf32>
    %568 = vector.extract_strided_slice %561 {offsets = [0, 64], sizes = [2, 64], strides = [1, 1]} : vector<2x256xf32> to vector<2x64xf32>
    %569 = arith.negf %568 : vector<2x64xf32>
    %570 = math.exp %569 : vector<2x64xf32>
    %cst_103 = arith.constant 1.000000e+00 : f32
    %571 = vector.broadcast %cst_103 : f32 to vector<2x64xf32>
    %572 = arith.addf %571, %570 : vector<2x64xf32>
    %573 = arith.divf %571, %572 : vector<2x64xf32>
    %574 = vector.extract_strided_slice %561 {offsets = [0, 128], sizes = [2, 64], strides = [1, 1]} : vector<2x256xf32> to vector<2x64xf32>
    %575 = math.tanh %574 : vector<2x64xf32>
    %576 = vector.extract_strided_slice %561 {offsets = [0, 192], sizes = [2, 64], strides = [1, 1]} : vector<2x256xf32> to vector<2x64xf32>
    %577 = arith.negf %576 : vector<2x64xf32>
    %578 = math.exp %577 : vector<2x64xf32>
    %cst_104 = arith.constant 1.000000e+00 : f32
    %579 = vector.broadcast %cst_104 : f32 to vector<2x64xf32>
    %580 = arith.addf %579, %578 : vector<2x64xf32>
    %581 = arith.divf %579, %580 : vector<2x64xf32>
    %582 = arith.mulf %573, %556 : vector<2x64xf32>
    %583 = arith.mulf %567, %575 : vector<2x64xf32>
    %584 = arith.addf %582, %583 : vector<2x64xf32>
    %585 = math.tanh %584 : vector<2x64xf32>
    %586 = arith.mulf %581, %585 : vector<2x64xf32>
    %587 = vector.extract_strided_slice %553 {offsets = [2, 0], sizes = [2, 256], strides = [1, 1]} : vector<16x256xf32> to vector<2x256xf32>
    %588 = vector.extract_strided_slice %554 {offsets = [12, 0], sizes = [2, 256], strides = [1, 1]} : vector<16x256xf32> to vector<2x256xf32>
    %589 = arith.addf %587, %588 : vector<2x256xf32>
    %cst_105 = arith.constant dense<0.000000e+00> : vector<2x256xf32>
    %590 = tpu.matmul %586, %547, %cst_105 {dimension_numbers = #tpu.dot_dimension_numbers<[1], [0], [0], [1], [0, 0, 1, 1], [], []>} : vector<2x64xf32>, vector<64x256xf32>, vector<2x256xf32> -> vector<2x256xf32>
    %591 = arith.addf %589, %590 : vector<2x256xf32>
    %592 = vector.extract_strided_slice %591 {offsets = [0, 0], sizes = [2, 64], strides = [1, 1]} : vector<2x256xf32> to vector<2x64xf32>
    %593 = arith.negf %592 : vector<2x64xf32>
    %594 = math.exp %593 : vector<2x64xf32>
    %cst_106 = arith.constant 1.000000e+00 : f32
    %595 = vector.broadcast %cst_106 : f32 to vector<2x64xf32>
    %596 = arith.addf %595, %594 : vector<2x64xf32>
    %597 = arith.divf %595, %596 : vector<2x64xf32>
    %598 = vector.extract_strided_slice %591 {offsets = [0, 64], sizes = [2, 64], strides = [1, 1]} : vector<2x256xf32> to vector<2x64xf32>
    %599 = arith.negf %598 : vector<2x64xf32>
    %600 = math.exp %599 : vector<2x64xf32>
    %cst_107 = arith.constant 1.000000e+00 : f32
    %601 = vector.broadcast %cst_107 : f32 to vector<2x64xf32>
    %602 = arith.addf %601, %600 : vector<2x64xf32>
    %603 = arith.divf %601, %602 : vector<2x64xf32>
    %604 = vector.extract_strided_slice %591 {offsets = [0, 128], sizes = [2, 64], strides = [1, 1]} : vector<2x256xf32> to vector<2x64xf32>
    %605 = math.tanh %604 : vector<2x64xf32>
    %606 = vector.extract_strided_slice %591 {offsets = [0, 192], sizes = [2, 64], strides = [1, 1]} : vector<2x256xf32> to vector<2x64xf32>
    %607 = arith.negf %606 : vector<2x64xf32>
    %608 = math.exp %607 : vector<2x64xf32>
    %cst_108 = arith.constant 1.000000e+00 : f32
    %609 = vector.broadcast %cst_108 : f32 to vector<2x64xf32>
    %610 = arith.addf %609, %608 : vector<2x64xf32>
    %611 = arith.divf %609, %610 : vector<2x64xf32>
    %612 = arith.mulf %603, %584 : vector<2x64xf32>
    %613 = arith.mulf %597, %605 : vector<2x64xf32>
    %614 = arith.addf %612, %613 : vector<2x64xf32>
    %615 = math.tanh %614 : vector<2x64xf32>
    %616 = arith.mulf %611, %615 : vector<2x64xf32>
    %617 = vector.extract_strided_slice %553 {offsets = [4, 0], sizes = [2, 256], strides = [1, 1]} : vector<16x256xf32> to vector<2x256xf32>
    %618 = vector.extract_strided_slice %554 {offsets = [10, 0], sizes = [2, 256], strides = [1, 1]} : vector<16x256xf32> to vector<2x256xf32>
    %619 = arith.addf %617, %618 : vector<2x256xf32>
    %cst_109 = arith.constant dense<0.000000e+00> : vector<2x256xf32>
    %620 = tpu.matmul %616, %547, %cst_109 {dimension_numbers = #tpu.dot_dimension_numbers<[1], [0], [0], [1], [0, 0, 1, 1], [], []>} : vector<2x64xf32>, vector<64x256xf32>, vector<2x256xf32> -> vector<2x256xf32>
    %621 = arith.addf %619, %620 : vector<2x256xf32>
    %622 = vector.extract_strided_slice %621 {offsets = [0, 0], sizes = [2, 64], strides = [1, 1]} : vector<2x256xf32> to vector<2x64xf32>
    %623 = arith.negf %622 : vector<2x64xf32>
    %624 = math.exp %623 : vector<2x64xf32>
    %cst_110 = arith.constant 1.000000e+00 : f32
    %625 = vector.broadcast %cst_110 : f32 to vector<2x64xf32>
    %626 = arith.addf %625, %624 : vector<2x64xf32>
    %627 = arith.divf %625, %626 : vector<2x64xf32>
    %628 = vector.extract_strided_slice %621 {offsets = [0, 64], sizes = [2, 64], strides = [1, 1]} : vector<2x256xf32> to vector<2x64xf32>
    %629 = arith.negf %628 : vector<2x64xf32>
    %630 = math.exp %629 : vector<2x64xf32>
    %cst_111 = arith.constant 1.000000e+00 : f32
    %631 = vector.broadcast %cst_111 : f32 to vector<2x64xf32>
    %632 = arith.addf %631, %630 : vector<2x64xf32>
    %633 = arith.divf %631, %632 : vector<2x64xf32>
    %634 = vector.extract_strided_slice %621 {offsets = [0, 128], sizes = [2, 64], strides = [1, 1]} : vector<2x256xf32> to vector<2x64xf32>
    %635 = math.tanh %634 : vector<2x64xf32>
    %636 = vector.extract_strided_slice %621 {offsets = [0, 192], sizes = [2, 64], strides = [1, 1]} : vector<2x256xf32> to vector<2x64xf32>
    %637 = arith.negf %636 : vector<2x64xf32>
    %638 = math.exp %637 : vector<2x64xf32>
    %cst_112 = arith.constant 1.000000e+00 : f32
    %639 = vector.broadcast %cst_112 : f32 to vector<2x64xf32>
    %640 = arith.addf %639, %638 : vector<2x64xf32>
    %641 = arith.divf %639, %640 : vector<2x64xf32>
    %642 = arith.mulf %633, %614 : vector<2x64xf32>
    %643 = arith.mulf %627, %635 : vector<2x64xf32>
    %644 = arith.addf %642, %643 : vector<2x64xf32>
    %645 = math.tanh %644 : vector<2x64xf32>
    %646 = arith.mulf %641, %645 : vector<2x64xf32>
    %647 = vector.extract_strided_slice %553 {offsets = [6, 0], sizes = [2, 256], strides = [1, 1]} : vector<16x256xf32> to vector<2x256xf32>
    %648 = vector.extract_strided_slice %554 {offsets = [8, 0], sizes = [2, 256], strides = [1, 1]} : vector<16x256xf32> to vector<2x256xf32>
    %649 = arith.addf %647, %648 : vector<2x256xf32>
    %cst_113 = arith.constant dense<0.000000e+00> : vector<2x256xf32>
    %650 = tpu.matmul %646, %547, %cst_113 {dimension_numbers = #tpu.dot_dimension_numbers<[1], [0], [0], [1], [0, 0, 1, 1], [], []>} : vector<2x64xf32>, vector<64x256xf32>, vector<2x256xf32> -> vector<2x256xf32>
    %651 = arith.addf %649, %650 : vector<2x256xf32>
    %652 = vector.extract_strided_slice %651 {offsets = [0, 0], sizes = [2, 64], strides = [1, 1]} : vector<2x256xf32> to vector<2x64xf32>
    %653 = arith.negf %652 : vector<2x64xf32>
    %654 = math.exp %653 : vector<2x64xf32>
    %cst_114 = arith.constant 1.000000e+00 : f32
    %655 = vector.broadcast %cst_114 : f32 to vector<2x64xf32>
    %656 = arith.addf %655, %654 : vector<2x64xf32>
    %657 = arith.divf %655, %656 : vector<2x64xf32>
    %658 = vector.extract_strided_slice %651 {offsets = [0, 64], sizes = [2, 64], strides = [1, 1]} : vector<2x256xf32> to vector<2x64xf32>
    %659 = arith.negf %658 : vector<2x64xf32>
    %660 = math.exp %659 : vector<2x64xf32>
    %cst_115 = arith.constant 1.000000e+00 : f32
    %661 = vector.broadcast %cst_115 : f32 to vector<2x64xf32>
    %662 = arith.addf %661, %660 : vector<2x64xf32>
    %663 = arith.divf %661, %662 : vector<2x64xf32>
    %664 = vector.extract_strided_slice %651 {offsets = [0, 128], sizes = [2, 64], strides = [1, 1]} : vector<2x256xf32> to vector<2x64xf32>
    %665 = math.tanh %664 : vector<2x64xf32>
    %666 = vector.extract_strided_slice %651 {offsets = [0, 192], sizes = [2, 64], strides = [1, 1]} : vector<2x256xf32> to vector<2x64xf32>
    %667 = arith.negf %666 : vector<2x64xf32>
    %668 = math.exp %667 : vector<2x64xf32>
    %cst_116 = arith.constant 1.000000e+00 : f32
    %669 = vector.broadcast %cst_116 : f32 to vector<2x64xf32>
    %670 = arith.addf %669, %668 : vector<2x64xf32>
    %671 = arith.divf %669, %670 : vector<2x64xf32>
    %672 = arith.mulf %663, %644 : vector<2x64xf32>
    %673 = arith.mulf %657, %665 : vector<2x64xf32>
    %674 = arith.addf %672, %673 : vector<2x64xf32>
    %675 = math.tanh %674 : vector<2x64xf32>
    %676 = arith.mulf %671, %675 : vector<2x64xf32>
    %677 = vector.extract_strided_slice %553 {offsets = [8, 0], sizes = [2, 256], strides = [1, 1]} : vector<16x256xf32> to vector<2x256xf32>
    %678 = vector.extract_strided_slice %554 {offsets = [6, 0], sizes = [2, 256], strides = [1, 1]} : vector<16x256xf32> to vector<2x256xf32>
    %679 = arith.addf %677, %678 : vector<2x256xf32>
    %cst_117 = arith.constant dense<0.000000e+00> : vector<2x256xf32>
    %680 = tpu.matmul %676, %547, %cst_117 {dimension_numbers = #tpu.dot_dimension_numbers<[1], [0], [0], [1], [0, 0, 1, 1], [], []>} : vector<2x64xf32>, vector<64x256xf32>, vector<2x256xf32> -> vector<2x256xf32>
    %681 = arith.addf %679, %680 : vector<2x256xf32>
    %682 = vector.extract_strided_slice %681 {offsets = [0, 0], sizes = [2, 64], strides = [1, 1]} : vector<2x256xf32> to vector<2x64xf32>
    %683 = arith.negf %682 : vector<2x64xf32>
    %684 = math.exp %683 : vector<2x64xf32>
    %cst_118 = arith.constant 1.000000e+00 : f32
    %685 = vector.broadcast %cst_118 : f32 to vector<2x64xf32>
    %686 = arith.addf %685, %684 : vector<2x64xf32>
    %687 = arith.divf %685, %686 : vector<2x64xf32>
    %688 = vector.extract_strided_slice %681 {offsets = [0, 64], sizes = [2, 64], strides = [1, 1]} : vector<2x256xf32> to vector<2x64xf32>
    %689 = arith.negf %688 : vector<2x64xf32>
    %690 = math.exp %689 : vector<2x64xf32>
    %cst_119 = arith.constant 1.000000e+00 : f32
    %691 = vector.broadcast %cst_119 : f32 to vector<2x64xf32>
    %692 = arith.addf %691, %690 : vector<2x64xf32>
    %693 = arith.divf %691, %692 : vector<2x64xf32>
    %694 = vector.extract_strided_slice %681 {offsets = [0, 128], sizes = [2, 64], strides = [1, 1]} : vector<2x256xf32> to vector<2x64xf32>
    %695 = math.tanh %694 : vector<2x64xf32>
    %696 = vector.extract_strided_slice %681 {offsets = [0, 192], sizes = [2, 64], strides = [1, 1]} : vector<2x256xf32> to vector<2x64xf32>
    %697 = arith.negf %696 : vector<2x64xf32>
    %698 = math.exp %697 : vector<2x64xf32>
    %cst_120 = arith.constant 1.000000e+00 : f32
    %699 = vector.broadcast %cst_120 : f32 to vector<2x64xf32>
    %700 = arith.addf %699, %698 : vector<2x64xf32>
    %701 = arith.divf %699, %700 : vector<2x64xf32>
    %702 = arith.mulf %693, %674 : vector<2x64xf32>
    %703 = arith.mulf %687, %695 : vector<2x64xf32>
    %704 = arith.addf %702, %703 : vector<2x64xf32>
    %705 = math.tanh %704 : vector<2x64xf32>
    %706 = arith.mulf %701, %705 : vector<2x64xf32>
    %707 = vector.extract_strided_slice %553 {offsets = [10, 0], sizes = [2, 256], strides = [1, 1]} : vector<16x256xf32> to vector<2x256xf32>
    %708 = vector.extract_strided_slice %554 {offsets = [4, 0], sizes = [2, 256], strides = [1, 1]} : vector<16x256xf32> to vector<2x256xf32>
    %709 = arith.addf %707, %708 : vector<2x256xf32>
    %cst_121 = arith.constant dense<0.000000e+00> : vector<2x256xf32>
    %710 = tpu.matmul %706, %547, %cst_121 {dimension_numbers = #tpu.dot_dimension_numbers<[1], [0], [0], [1], [0, 0, 1, 1], [], []>} : vector<2x64xf32>, vector<64x256xf32>, vector<2x256xf32> -> vector<2x256xf32>
    %711 = arith.addf %709, %710 : vector<2x256xf32>
    %712 = vector.extract_strided_slice %711 {offsets = [0, 0], sizes = [2, 64], strides = [1, 1]} : vector<2x256xf32> to vector<2x64xf32>
    %713 = arith.negf %712 : vector<2x64xf32>
    %714 = math.exp %713 : vector<2x64xf32>
    %cst_122 = arith.constant 1.000000e+00 : f32
    %715 = vector.broadcast %cst_122 : f32 to vector<2x64xf32>
    %716 = arith.addf %715, %714 : vector<2x64xf32>
    %717 = arith.divf %715, %716 : vector<2x64xf32>
    %718 = vector.extract_strided_slice %711 {offsets = [0, 64], sizes = [2, 64], strides = [1, 1]} : vector<2x256xf32> to vector<2x64xf32>
    %719 = arith.negf %718 : vector<2x64xf32>
    %720 = math.exp %719 : vector<2x64xf32>
    %cst_123 = arith.constant 1.000000e+00 : f32
    %721 = vector.broadcast %cst_123 : f32 to vector<2x64xf32>
    %722 = arith.addf %721, %720 : vector<2x64xf32>
    %723 = arith.divf %721, %722 : vector<2x64xf32>
    %724 = vector.extract_strided_slice %711 {offsets = [0, 128], sizes = [2, 64], strides = [1, 1]} : vector<2x256xf32> to vector<2x64xf32>
    %725 = math.tanh %724 : vector<2x64xf32>
    %726 = vector.extract_strided_slice %711 {offsets = [0, 192], sizes = [2, 64], strides = [1, 1]} : vector<2x256xf32> to vector<2x64xf32>
    %727 = arith.negf %726 : vector<2x64xf32>
    %728 = math.exp %727 : vector<2x64xf32>
    %cst_124 = arith.constant 1.000000e+00 : f32
    %729 = vector.broadcast %cst_124 : f32 to vector<2x64xf32>
    %730 = arith.addf %729, %728 : vector<2x64xf32>
    %731 = arith.divf %729, %730 : vector<2x64xf32>
    %732 = arith.mulf %723, %704 : vector<2x64xf32>
    %733 = arith.mulf %717, %725 : vector<2x64xf32>
    %734 = arith.addf %732, %733 : vector<2x64xf32>
    %735 = math.tanh %734 : vector<2x64xf32>
    %736 = arith.mulf %731, %735 : vector<2x64xf32>
    %737 = vector.extract_strided_slice %553 {offsets = [12, 0], sizes = [2, 256], strides = [1, 1]} : vector<16x256xf32> to vector<2x256xf32>
    %738 = vector.extract_strided_slice %554 {offsets = [2, 0], sizes = [2, 256], strides = [1, 1]} : vector<16x256xf32> to vector<2x256xf32>
    %739 = arith.addf %737, %738 : vector<2x256xf32>
    %cst_125 = arith.constant dense<0.000000e+00> : vector<2x256xf32>
    %740 = tpu.matmul %736, %547, %cst_125 {dimension_numbers = #tpu.dot_dimension_numbers<[1], [0], [0], [1], [0, 0, 1, 1], [], []>} : vector<2x64xf32>, vector<64x256xf32>, vector<2x256xf32> -> vector<2x256xf32>
    %741 = arith.addf %739, %740 : vector<2x256xf32>
    %742 = vector.extract_strided_slice %741 {offsets = [0, 0], sizes = [2, 64], strides = [1, 1]} : vector<2x256xf32> to vector<2x64xf32>
    %743 = arith.negf %742 : vector<2x64xf32>
    %744 = math.exp %743 : vector<2x64xf32>
    %cst_126 = arith.constant 1.000000e+00 : f32
    %745 = vector.broadcast %cst_126 : f32 to vector<2x64xf32>
    %746 = arith.addf %745, %744 : vector<2x64xf32>
    %747 = arith.divf %745, %746 : vector<2x64xf32>
    %748 = vector.extract_strided_slice %741 {offsets = [0, 64], sizes = [2, 64], strides = [1, 1]} : vector<2x256xf32> to vector<2x64xf32>
    %749 = arith.negf %748 : vector<2x64xf32>
    %750 = math.exp %749 : vector<2x64xf32>
    %cst_127 = arith.constant 1.000000e+00 : f32
    %751 = vector.broadcast %cst_127 : f32 to vector<2x64xf32>
    %752 = arith.addf %751, %750 : vector<2x64xf32>
    %753 = arith.divf %751, %752 : vector<2x64xf32>
    %754 = vector.extract_strided_slice %741 {offsets = [0, 128], sizes = [2, 64], strides = [1, 1]} : vector<2x256xf32> to vector<2x64xf32>
    %755 = math.tanh %754 : vector<2x64xf32>
    %756 = vector.extract_strided_slice %741 {offsets = [0, 192], sizes = [2, 64], strides = [1, 1]} : vector<2x256xf32> to vector<2x64xf32>
    %757 = arith.negf %756 : vector<2x64xf32>
    %758 = math.exp %757 : vector<2x64xf32>
    %cst_128 = arith.constant 1.000000e+00 : f32
    %759 = vector.broadcast %cst_128 : f32 to vector<2x64xf32>
    %760 = arith.addf %759, %758 : vector<2x64xf32>
    %761 = arith.divf %759, %760 : vector<2x64xf32>
    %762 = arith.mulf %753, %734 : vector<2x64xf32>
    %763 = arith.mulf %747, %755 : vector<2x64xf32>
    %764 = arith.addf %762, %763 : vector<2x64xf32>
    %765 = math.tanh %764 : vector<2x64xf32>
    %766 = arith.mulf %761, %765 : vector<2x64xf32>
    %767 = vector.extract_strided_slice %553 {offsets = [14, 0], sizes = [2, 256], strides = [1, 1]} : vector<16x256xf32> to vector<2x256xf32>
    %768 = vector.extract_strided_slice %554 {offsets = [0, 0], sizes = [2, 256], strides = [1, 1]} : vector<16x256xf32> to vector<2x256xf32>
    %769 = arith.addf %767, %768 : vector<2x256xf32>
    %cst_129 = arith.constant dense<0.000000e+00> : vector<2x256xf32>
    %770 = tpu.matmul %766, %547, %cst_129 {dimension_numbers = #tpu.dot_dimension_numbers<[1], [0], [0], [1], [0, 0, 1, 1], [], []>} : vector<2x64xf32>, vector<64x256xf32>, vector<2x256xf32> -> vector<2x256xf32>
    %771 = arith.addf %769, %770 : vector<2x256xf32>
    %772 = vector.extract_strided_slice %771 {offsets = [0, 0], sizes = [2, 64], strides = [1, 1]} : vector<2x256xf32> to vector<2x64xf32>
    %773 = arith.negf %772 : vector<2x64xf32>
    %774 = math.exp %773 : vector<2x64xf32>
    %cst_130 = arith.constant 1.000000e+00 : f32
    %775 = vector.broadcast %cst_130 : f32 to vector<2x64xf32>
    %776 = arith.addf %775, %774 : vector<2x64xf32>
    %777 = arith.divf %775, %776 : vector<2x64xf32>
    %778 = vector.extract_strided_slice %771 {offsets = [0, 64], sizes = [2, 64], strides = [1, 1]} : vector<2x256xf32> to vector<2x64xf32>
    %779 = arith.negf %778 : vector<2x64xf32>
    %780 = math.exp %779 : vector<2x64xf32>
    %cst_131 = arith.constant 1.000000e+00 : f32
    %781 = vector.broadcast %cst_131 : f32 to vector<2x64xf32>
    %782 = arith.addf %781, %780 : vector<2x64xf32>
    %783 = arith.divf %781, %782 : vector<2x64xf32>
    %784 = vector.extract_strided_slice %771 {offsets = [0, 128], sizes = [2, 64], strides = [1, 1]} : vector<2x256xf32> to vector<2x64xf32>
    %785 = math.tanh %784 : vector<2x64xf32>
    %786 = vector.extract_strided_slice %771 {offsets = [0, 192], sizes = [2, 64], strides = [1, 1]} : vector<2x256xf32> to vector<2x64xf32>
    %787 = arith.negf %786 : vector<2x64xf32>
    %788 = math.exp %787 : vector<2x64xf32>
    %cst_132 = arith.constant 1.000000e+00 : f32
    %789 = vector.broadcast %cst_132 : f32 to vector<2x64xf32>
    %790 = arith.addf %789, %788 : vector<2x64xf32>
    %791 = arith.divf %789, %790 : vector<2x64xf32>
    %792 = arith.mulf %783, %764 : vector<2x64xf32>
    %793 = arith.mulf %777, %785 : vector<2x64xf32>
    %794 = arith.addf %792, %793 : vector<2x64xf32>
    %795 = math.tanh %794 : vector<2x64xf32>
    %796 = arith.mulf %791, %795 : vector<2x64xf32>
    %c0_133 = arith.constant 0 : index
    %c0_134 = arith.constant 0 : index
    %797 = vector.load %arg14[%c0_133, %c0_134] : memref<64x128xf32, #tpu.memory_space<vmem>>, vector<64x128xf32>
    %cst_135 = arith.constant dense<0.000000e+00> : vector<2x128xf32>
    %798 = tpu.matmul %796, %797, %cst_135 {dimension_numbers = #tpu.dot_dimension_numbers<[1], [0], [0], [1], [0, 0, 1, 1], [], []>} : vector<2x64xf32>, vector<64x128xf32>, vector<2x128xf32> -> vector<2x128xf32>
    %c0_136 = arith.constant 0 : index
    %c0_137 = arith.constant 0 : index
    %799 = vector.load %arg15[%c0_136, %c0_137] : memref<1x128xf32, #tpu.memory_space<vmem>>, vector<1x128xf32>
    %800 = vector.broadcast %799 : vector<1x128xf32> to vector<2x128xf32>
    %801 = arith.addf %798, %800 : vector<2x128xf32>
    %c0_138 = arith.constant 0 : index
    %c0_139 = arith.constant 0 : index
    %802 = vector.load %arg16[%c0_138, %c0_139] : memref<1x128xf32, #tpu.memory_space<vmem>>, vector<1x128xf32>
    %803 = vector.broadcast %802 : vector<1x128xf32> to vector<2x128xf32>
    %804 = arith.mulf %801, %803 : vector<2x128xf32>
    %c0_140 = arith.constant 0 : index
    %c0_141 = arith.constant 0 : index
    %805 = vector.load %arg17[%c0_140, %c0_141] : memref<1x128xf32, #tpu.memory_space<vmem>>, vector<1x128xf32>
    %806 = vector.broadcast %805 : vector<1x128xf32> to vector<2x128xf32>
    %807 = arith.addf %804, %806 : vector<2x128xf32>
    %cst_142 = arith.constant 0.000000e+00 : f32
    %808 = vector.broadcast %cst_142 : f32 to vector<2x128xf32>
    %809 = arith.maximumf %807, %808 : vector<2x128xf32>
    %c0_143 = arith.constant 0 : index
    %c0_144 = arith.constant 0 : index
    %810 = vector.load %arg18[%c0_143, %c0_144] : memref<128x256xf32, #tpu.memory_space<vmem>>, vector<128x256xf32>
    %cst_145 = arith.constant dense<0.000000e+00> : vector<2x256xf32>
    %811 = tpu.matmul %809, %810, %cst_145 {dimension_numbers = #tpu.dot_dimension_numbers<[1], [0], [0], [1], [0, 0, 1, 1], [], []>} : vector<2x128xf32>, vector<128x256xf32>, vector<2x256xf32> -> vector<2x256xf32>
    %c0_146 = arith.constant 0 : index
    %c0_147 = arith.constant 0 : index
    %812 = vector.load %arg19[%c0_146, %c0_147] : memref<1x256xf32, #tpu.memory_space<vmem>>, vector<1x256xf32>
    %813 = vector.broadcast %812 : vector<1x256xf32> to vector<2x256xf32>
    %814 = arith.addf %811, %813 : vector<2x256xf32>
    %c0_148 = arith.constant 0 : index
    %c0_149 = arith.constant 0 : index
    %815 = vector.load %arg20[%c0_148, %c0_149] : memref<1x256xf32, #tpu.memory_space<vmem>>, vector<1x256xf32>
    %816 = vector.broadcast %815 : vector<1x256xf32> to vector<2x256xf32>
    %817 = arith.mulf %814, %816 : vector<2x256xf32>
    %c0_150 = arith.constant 0 : index
    %c0_151 = arith.constant 0 : index
    %818 = vector.load %arg21[%c0_150, %c0_151] : memref<1x256xf32, #tpu.memory_space<vmem>>, vector<1x256xf32>
    %819 = vector.broadcast %818 : vector<1x256xf32> to vector<2x256xf32>
    %820 = arith.addf %817, %819 : vector<2x256xf32>
    %cst_152 = arith.constant 0.000000e+00 : f32
    %821 = vector.broadcast %cst_152 : f32 to vector<2x256xf32>
    %822 = arith.maximumf %820, %821 : vector<2x256xf32>
    %c0_153 = arith.constant 0 : index
    %c0_154 = arith.constant 0 : index
    %823 = vector.load %arg22[%c0_153, %c0_154] : memref<256x128xf32, #tpu.memory_space<vmem>>, vector<256x128xf32>
    %cst_155 = arith.constant dense<0.000000e+00> : vector<32x128xf32>
    %824 = tpu.matmul %7, %823, %cst_155 {dimension_numbers = #tpu.dot_dimension_numbers<[1], [0], [0], [1], [0, 0, 1, 1], [], []>} : vector<32x256xf32>, vector<256x128xf32>, vector<32x128xf32> -> vector<32x128xf32>
    %c0_156 = arith.constant 0 : index
    %c0_157 = arith.constant 0 : index
    %825 = vector.load %arg23[%c0_156, %c0_157] : memref<1x128xf32, #tpu.memory_space<vmem>>, vector<1x128xf32>
    %826 = vector.broadcast %825 : vector<1x128xf32> to vector<32x128xf32>
    %827 = arith.addf %824, %826 : vector<32x128xf32>
    %828 = vector.shape_cast %827 : vector<32x128xf32> to vector<2x16x128xf32>
    %c0_158 = arith.constant 0 : index
    %c0_159 = arith.constant 0 : index
    %829 = vector.load %arg24[%c0_158, %c0_159] : memref<256x128xf32, #tpu.memory_space<vmem>>, vector<256x128xf32>
    %cst_160 = arith.constant dense<0.000000e+00> : vector<2x128xf32>
    %830 = tpu.matmul %822, %829, %cst_160 {dimension_numbers = #tpu.dot_dimension_numbers<[1], [0], [0], [1], [0, 0, 1, 1], [], []>} : vector<2x256xf32>, vector<256x128xf32>, vector<2x128xf32> -> vector<2x128xf32>
    %c0_161 = arith.constant 0 : index
    %c0_162 = arith.constant 0 : index
    %831 = vector.load %arg25[%c0_161, %c0_162] : memref<1x128xf32, #tpu.memory_space<vmem>>, vector<1x128xf32>
    %832 = vector.broadcast %831 : vector<1x128xf32> to vector<2x128xf32>
    %833 = arith.addf %830, %832 : vector<2x128xf32>
    %c0_163 = arith.constant 0 : index
    %c0_164 = arith.constant 0 : index
    %834 = vector.load %arg26[%c0_163, %c0_164] : memref<3x128xf32, #tpu.memory_space<vmem>>, vector<3x128xf32>
    %c0_165 = arith.constant 0 : index
    %c0_166 = arith.constant 0 : index
    %835 = vector.load %arg27[%c0_165, %c0_166] : memref<3x128xf32, #tpu.memory_space<vmem>>, vector<3x128xf32>
    %c0_167 = arith.constant 0 : index
    %c0_168 = arith.constant 0 : index
    %836 = vector.load %arg28[%c0_167, %c0_168] : memref<3x128xf32, #tpu.memory_space<vmem>>, vector<3x128xf32>
    %c0_169 = arith.constant 0 : index
    %c0_170 = arith.constant 0 : index
    %837 = vector.load %arg29[%c0_169, %c0_170] : memref<3x1xf32, #tpu.memory_space<vmem>>, vector<3x1xf32>
    %838 = vector.shape_cast %833 : vector<2x128xf32> to vector<2x1x128xf32>
    %839 = vector.broadcast %838 : vector<2x1x128xf32> to vector<2x16x128xf32>
    %840 = arith.addf %828, %839 : vector<2x16x128xf32>
    %cst_171 = arith.constant dense<0.000000e+00> : vector<2x16xf32>
    %841 = vector.multi_reduction <add>, %840, %cst_171 [2] : vector<2x16x128xf32> to vector<2x16xf32>
    %842 = vector.shape_cast %841 : vector<2x16xf32> to vector<2x16x1xf32>
    %cst_172 = arith.constant 1.280000e+02 : f32
    %843 = vector.broadcast %cst_172 : f32 to vector<2x16x1xf32>
    %844 = arith.divf %842, %843 : vector<2x16x1xf32>
    %845 = vector.broadcast %844 : vector<2x16x1xf32> to vector<2x16x128xf32>
    %846 = arith.subf %840, %845 : vector<2x16x128xf32>
    %847 = arith.mulf %846, %846 : vector<2x16x128xf32>
    %cst_173 = arith.constant dense<0.000000e+00> : vector<2x16xf32>
    %848 = vector.multi_reduction <add>, %847, %cst_173 [2] : vector<2x16x128xf32> to vector<2x16xf32>
    %849 = vector.shape_cast %848 : vector<2x16xf32> to vector<2x16x1xf32>
    %cst_174 = arith.constant 1.280000e+02 : f32
    %850 = vector.broadcast %cst_174 : f32 to vector<2x16x1xf32>
    %851 = arith.divf %849, %850 : vector<2x16x1xf32>
    %852 = vector.broadcast %844 : vector<2x16x1xf32> to vector<2x16x128xf32>
    %853 = arith.subf %840, %852 : vector<2x16x128xf32>
    %cst_175 = arith.constant 9.99999974E-6 : f32
    %854 = vector.broadcast %cst_175 : f32 to vector<2x16x1xf32>
    %855 = arith.addf %851, %854 : vector<2x16x1xf32>
    %856 = math.rsqrt %855 : vector<2x16x1xf32>
    %857 = vector.broadcast %856 : vector<2x16x1xf32> to vector<2x16x128xf32>
    %858 = arith.mulf %853, %857 : vector<2x16x128xf32>
    %859 = vector.extract_strided_slice %834 {offsets = [0, 0], sizes = [1, 128], strides = [1, 1]} : vector<3x128xf32> to vector<1x128xf32>
    %860 = vector.shape_cast %859 : vector<1x128xf32> to vector<128xf32>
    %861 = vector.shape_cast %860 : vector<128xf32> to vector<1x1x128xf32>
    %862 = vector.broadcast %861 : vector<1x1x128xf32> to vector<2x16x128xf32>
    %863 = arith.mulf %858, %862 : vector<2x16x128xf32>
    %864 = vector.extract_strided_slice %835 {offsets = [0, 0], sizes = [1, 128], strides = [1, 1]} : vector<3x128xf32> to vector<1x128xf32>
    %865 = vector.shape_cast %864 : vector<1x128xf32> to vector<128xf32>
    %866 = vector.shape_cast %865 : vector<128xf32> to vector<1x1x128xf32>
    %867 = vector.broadcast %866 : vector<1x1x128xf32> to vector<2x16x128xf32>
    %868 = arith.addf %863, %867 : vector<2x16x128xf32>
    %869 = math.tanh %868 : vector<2x16x128xf32>
    %870 = vector.extract_strided_slice %836 {offsets = [0, 0], sizes = [1, 128], strides = [1, 1]} : vector<3x128xf32> to vector<1x128xf32>
    %871 = vector.shape_cast %870 : vector<1x128xf32> to vector<128xf32>
    %872 = vector.shape_cast %871 : vector<128xf32> to vector<1x1x128xf32>
    %873 = vector.broadcast %872 : vector<1x1x128xf32> to vector<2x16x128xf32>
    %874 = arith.mulf %869, %873 : vector<2x16x128xf32>
    %cst_176 = arith.constant dense<0.000000e+00> : vector<2x16xf32>
    %875 = vector.multi_reduction <add>, %874, %cst_176 [2] : vector<2x16x128xf32> to vector<2x16xf32>
    %876 = vector.extract_strided_slice %837 {offsets = [0, 0], sizes = [1, 1], strides = [1, 1]} : vector<3x1xf32> to vector<1x1xf32>
    %877 = vector.extract %876[0, 0] : f32 from vector<1x1xf32>
    %878 = vector.broadcast %877 : f32 to vector<2x16xf32>
    %879 = arith.addf %875, %878 : vector<2x16xf32>
    %cst_177 = arith.constant dense<0xFF800000> : vector<2xf32>
    %880 = vector.multi_reduction <maximumf>, %879, %cst_177 [1] : vector<2x16xf32> to vector<2xf32>
    %881 = vector.shape_cast %880 : vector<2xf32> to vector<2x1xf32>
    %882 = vector.broadcast %881 : vector<2x1xf32> to vector<2x16xf32>
    %883 = arith.subf %879, %882 : vector<2x16xf32>
    %884 = math.exp %883 : vector<2x16xf32>
    %cst_178 = arith.constant dense<0.000000e+00> : vector<2xf32>
    %885 = vector.multi_reduction <add>, %884, %cst_178 [1] : vector<2x16xf32> to vector<2xf32>
    %886 = vector.shape_cast %885 : vector<2xf32> to vector<2x1xf32>
    %887 = vector.broadcast %886 : vector<2x1xf32> to vector<2x16xf32>
    %888 = arith.divf %884, %887 : vector<2x16xf32>
    %889 = vector.shape_cast %888 : vector<2x16xf32> to vector<2x16x1xf32>
    %890 = vector.broadcast %889 : vector<2x16x1xf32> to vector<2x16x128xf32>
    %891 = arith.mulf %890, %828 : vector<2x16x128xf32>
    %cst_179 = arith.constant dense<0.000000e+00> : vector<2x128xf32>
    %892 = vector.multi_reduction <add>, %891, %cst_179 [1] : vector<2x16x128xf32> to vector<2x128xf32>
    %cst_180 = arith.constant 6.250000e-02 : f32
    %893 = vector.broadcast %cst_180 : f32 to vector<2x16xf32>
    %c0_181 = arith.constant 0 : index
    %c0_182 = arith.constant 0 : index
    %894 = vector.load %arg30[%c0_181, %c0_182] : memref<128x128xf32, #tpu.memory_space<vmem>>, vector<128x128xf32>
    %cst_183 = arith.constant dense<0.000000e+00> : vector<2x128xf32>
    %895 = tpu.matmul %892, %894, %cst_183 {dimension_numbers = #tpu.dot_dimension_numbers<[1], [0], [0], [1], [0, 0, 1, 1], [], []>} : vector<2x128xf32>, vector<128x128xf32>, vector<2x128xf32> -> vector<2x128xf32>
    %c0_184 = arith.constant 0 : index
    %c0_185 = arith.constant 0 : index
    %896 = vector.load %arg31[%c0_184, %c0_185] : memref<256x128xf32, #tpu.memory_space<vmem>>, vector<256x128xf32>
    %cst_186 = arith.constant dense<0.000000e+00> : vector<2x128xf32>
    %897 = tpu.matmul %822, %896, %cst_186 {dimension_numbers = #tpu.dot_dimension_numbers<[1], [0], [0], [1], [0, 0, 1, 1], [], []>} : vector<2x256xf32>, vector<256x128xf32>, vector<2x128xf32> -> vector<2x128xf32>
    %898 = arith.addf %895, %897 : vector<2x128xf32>
    %c0_187 = arith.constant 0 : index
    %c0_188 = arith.constant 0 : index
    %899 = vector.load %arg32[%c0_187, %c0_188] : memref<1x128xf32, #tpu.memory_space<vmem>>, vector<1x128xf32>
    %900 = vector.broadcast %899 : vector<1x128xf32> to vector<2x128xf32>
    %901 = arith.addf %898, %900 : vector<2x128xf32>
    %c0_189 = arith.constant 0 : index
    %c0_190 = arith.constant 0 : index
    %902 = vector.load %arg33[%c0_189, %c0_190] : memref<1x128xf32, #tpu.memory_space<vmem>>, vector<1x128xf32>
    %903 = vector.broadcast %902 : vector<1x128xf32> to vector<2x128xf32>
    %904 = arith.mulf %901, %903 : vector<2x128xf32>
    %c0_191 = arith.constant 0 : index
    %c0_192 = arith.constant 0 : index
    %905 = vector.load %arg34[%c0_191, %c0_192] : memref<1x128xf32, #tpu.memory_space<vmem>>, vector<1x128xf32>
    %906 = vector.broadcast %905 : vector<1x128xf32> to vector<2x128xf32>
    %907 = arith.addf %904, %906 : vector<2x128xf32>
    %cst_193 = arith.constant 0.000000e+00 : f32
    %908 = vector.broadcast %cst_193 : f32 to vector<2x128xf32>
    %909 = arith.maximumf %907, %908 : vector<2x128xf32>
    %c0_194 = arith.constant 0 : index
    %c0_195 = arith.constant 0 : index
    %910 = vector.load %arg35[%c0_194, %c0_195] : memref<128x16xf32, #tpu.memory_space<vmem>>, vector<128x16xf32>
    %cst_196 = arith.constant dense<0.000000e+00> : vector<2x16xf32>
    %911 = tpu.matmul %909, %910, %cst_196 {dimension_numbers = #tpu.dot_dimension_numbers<[1], [0], [0], [1], [0, 0, 1, 1], [], []>} : vector<2x128xf32>, vector<128x16xf32>, vector<2x16xf32> -> vector<2x16xf32>
    %c0_197 = arith.constant 0 : index
    %c0_198 = arith.constant 0 : index
    %912 = vector.load %arg36[%c0_197, %c0_198] : memref<1x16xf32, #tpu.memory_space<vmem>>, vector<1x16xf32>
    %913 = vector.broadcast %912 : vector<1x16xf32> to vector<2x16xf32>
    %914 = arith.addf %911, %913 : vector<2x16xf32>
    %cst_199 = arith.constant 0.000000e+00 : f32
    %915 = vector.broadcast %cst_199 : f32 to vector<2x96xf32>
    %916 = tpu.concatenate %914, %893, %915 in 1 : vector<2x16xf32>, vector<2x16xf32>, vector<2x96xf32> -> vector<2x128xf32>
    %c0_200 = arith.constant 0 : index
    %c0_201 = arith.constant 0 : index
    %917 = vector.load %arg37[%c0_200, %c0_201] : memref<2x128xf32, #tpu.memory_space<vmem>>, vector<2x128xf32>
    tpu.vector_store %arg37[%c0_200, %c0_201], %916 {strides = array<i32>} : memref<2x128xf32, #tpu.memory_space<vmem>>, vector<2x128xf32>,
    return
  }
}

</mosaic_0001>

<bundles_post_ra>
// kernel: vqa_forward.1
= control target key start
LH: loop header
LB: loop body
LE: loop exit
PB: predicated region body
PF: predicated region fallthrough
CT: control target
= control target key end

     0   :  { %s5851_s6 = smov 1   ;;  %s5852_s10 = smov 2   ;;  %vm432_vm0 = vcmask 1043456   ;;  %vm561_vm1 = vcmask 261120   ;;  %vm419_vm2 = vcmask 31744   ;;  %vm745_vm3 = vcmask 523264   ;;  %s7363_s0 = inlined_call_operand.smem [shape: u32[38], index: -1, kind: input, shape index: {}] }
   0x1   :  { %s5901_s5 = sld [smem:[%s7363_s0]]   ;;  %s5853_s14 = smov 5   ;;  %vm1626_vm4 = vcmask 1041408   ;;  %vm1629_vm5 = vcmask 1045504   ;;  %vm5866_vm6 = vmmov 0   ;;  %vm4567_vm7 = vcmask 130112  }
   0x2   :  { %s5952_s9 = sld [smem:[%s7363_s0 + %s5851_s6]]   ;;  %s5854_s18 = smov 4   ;;  %vm4578_vm8 = vcmask 1041409   ;;  %vm4581_vm9 = vcmask 123904   ;;  %vm5012_vm10 = vcmask 130048  }
   0x3   :  { %s5959_s13 = sld [smem:[%s7363_s0 + %s5852_s10]]   ;;  %s5856_s22 = smov 6  }
   0x4   :  { %s5972_s17 = sld [smem:[%s7363_s0 + %s5853_s14]]   ;;  %s5857_s26 = smov 7  }
   0x5   :  { %s6004_s21 = sld [smem:[%s7363_s0 + %s5854_s18]]   ;;  %s5858_s30 = smov 64  }
   0x6   :  { %s6033_s25 = sld [smem:[%s7363_s0 + %s5856_s22]]   ;;  %s5859_s1 = smov 8  }
   0x7   :  { %v201_v0 = vld [vmem:[%s5901_s5 + $0xf8] sm:$0xff]  ;;  %v200_v4 = vld [vmem:[%s5901_s5 + $0xf0] sm:$0xff]  ;;  %v199_v8 = vld [vmem:[%s5901_s5 + $0xe8] sm:$0xff]  ;;  %s5026_s29 = sld [smem:[%s7363_s0 + %s5857_s26]]   ;;  %s5870_s11 = smov 24  }
   0x8   :  { %v233_v1 = vld [vmem:[%s5901_s5 + $0x1f8] sm:$0xff]  ;;  %5154 = vmatprep.subr.mxu0 %v201_v0  ;;  %v232_v5 = vld [vmem:[%s5901_s5 + $0x1f0] sm:$0xff]  ;;  %v231_v9 = vld [vmem:[%s5901_s5 + $0x1e8] sm:$0xff]  ;;  %s6355_s4 = sld [smem:[%s7363_s0 + %s5859_s1]]   ;;  %s5871_s15 = smov 31  }
   0x9   :  { %v185_v2 = vld [vmem:[%s5901_s5 + $0x78] sm:$0xff]  ;;  %5198 = vmatprep.subr.mxu1 %v233_v1  ;;  %v184_v6 = vld [vmem:[%s5901_s5 + $0x70] sm:$0xff]  ;;  %v183_v10 = vld [vmem:[%s5901_s5 + $0x68] sm:$0xff]  ;;  %s7118_s14 = sld [smem:[%s7363_s0 + %s5870_s11]]   ;;  %s5872_s19 = smov 15  }
   0xa   :  { %v217_v3 = vld [vmem:[%s5901_s5 + $0x178] sm:$0xff]  ;;  %5155 = vmatpush3.msra.mxu0 %v185_v2  ;;  %v216_v7 = vld [vmem:[%s5901_s5 + $0x170] sm:$0xff]  ;;  %v215_v11 = vld [vmem:[%s5901_s5 + $0x168] sm:$0xff]  ;;  %s7123_s18 = sld [smem:[%s7363_s0 + %s5871_s15]]   ;;  %s5873_s23 = smov 16  }
   0xb   :  { %5199 = vmatpush3.msra.mxu1 %v217_v3  ;;  %5156 = vmatprep.subr.mxu0 %v200_v4  ;;  %v198_v12 = vld [vmem:[%s5901_s5 + $0xe0] sm:$0xff]  ;;  %v197_v16 = vld [vmem:[%s5901_s5 + $0xd8] sm:$0xff]  ;;  %v196_v20 = vld [vmem:[%s5901_s5 + $0xd0] sm:$0xff]  ;;  %s5034_s22 = sld [smem:[%s7363_s0 + %s5872_s19]]   ;;  %s5874_s27 = smov 17  }
   0xc   :  { %5200 = vmatprep.subr.mxu1 %v232_v5  ;;  %5157 = vmatpush3.msra.mxu0 %v184_v6  ;;  %v230_v13 = vld [vmem:[%s5901_s5 + $0x1e0] sm:$0xff]  ;;  %v229_v17 = vld [vmem:[%s5901_s5 + $0x1d8] sm:$0xff]  ;;  %v228_v21 = vld [vmem:[%s5901_s5 + $0x1d0] sm:$0xff]  ;;  %s5035_s26 = sld [smem:[%s7363_s0 + %s5873_s23]]   ;;  %s5875_s2 = smov 19  }
   0xd   :  { %5201 = vmatpush3.msra.mxu1 %v216_v7  ;;  %5158 = vmatprep.subr.mxu0 %v199_v8  ;;  %v182_v14 = vld [vmem:[%s5901_s5 + $0x60] sm:$0xff]  ;;  %v181_v18 = vld [vmem:[%s5901_s5 + $0x58] sm:$0xff]  ;;  %v180_v22 = vld [vmem:[%s5901_s5 + $0x50] sm:$0xff]  ;;  %s5036_s1 = sld [smem:[%s7363_s0 + %s5874_s27]]   ;;  %s5876_s6 = smov 20  }
   0xe   :  { %5202 = vmatprep.subr.mxu1 %v231_v9  ;;  %v214_v15 = vld [vmem:[%s5901_s5 + $0x160] sm:$0xff]  ;;  %5159 = vmatpush3.msra.mxu0 %v183_v10  ;;  %v213_v19 = vld [vmem:[%s5901_s5 + $0x158] sm:$0xff]  ;;  %v212_v23 = vld [vmem:[%s5901_s5 + $0x150] sm:$0xff] }
   0xf   :  { %5203 = vmatpush3.msra.mxu1 %v215_v11  ;;  %5160 = vmatprep.subr.mxu0 %v198_v12  ;;  %v195_v24 = vld [vmem:[%s5901_s5 + $0xc8] sm:$0xff]  ;;  %v194_v28 = vld [vmem:[%s5901_s5 + $0xc0] sm:$0xff]  ;;  %v193_v32 = vld [vmem:[%s5901_s5 + $0xb8] sm:$0xff] }
  0x10   :  { %5204 = vmatprep.subr.mxu1 %v230_v13  ;;  %5161 = vmatpush3.msra.mxu0 %v182_v14  ;;  %v227_v25 = vld [vmem:[%s5901_s5 + $0x1c8] sm:$0xff]  ;;  %v226_v29 = vld [vmem:[%s5901_s5 + $0x1c0] sm:$0xff]  ;;  %v225_v33 = vld [vmem:[%s5901_s5 + $0x1b8] sm:$0xff] }
  0x11   :  { %5205 = vmatpush3.msra.mxu1 %v214_v15  ;;  %5162 = vmatprep.subr.mxu0 %v197_v16  ;;  %v179_v26 = vld [vmem:[%s5901_s5 + $0x48] sm:$0xff]  ;;  %v178_v30 = vld [vmem:[%s5901_s5 + $0x40] sm:$0xff]  ;;  %v177_v34 = vld [vmem:[%s5901_s5 + $0x38] sm:$0xff] }
  0x12   :  { %5206 = vmatprep.subr.mxu1 %v229_v17  ;;  %5163 = vmatpush3.msra.mxu0 %v181_v18  ;;  %v211_v27 = vld [vmem:[%s5901_s5 + $0x148] sm:$0xff]  ;;  %v210_v31 = vld [vmem:[%s5901_s5 + $0x140] sm:$0xff]  ;;  %v209_v35 = vld [vmem:[%s5901_s5 + $0x138] sm:$0xff] }
  0x13   :  { %5207 = vmatpush3.msra.mxu1 %v213_v19  ;;  %5164 = vmatprep.subr.mxu0 %v196_v20  ;;  %v192_v36 = vld [vmem:[%s5901_s5 + $0xb0] sm:$0xff]  ;;  %v191_v40 = vld [vmem:[%s5901_s5 + $0xa8] sm:$0xff]  ;;  %v190_v44 = vld [vmem:[%s5901_s5 + $0xa0] sm:$0xff] }
  0x14   :  { %5208 = vmatprep.subr.mxu1 %v228_v21  ;;  %5165 = vmatpush3.msra.mxu0 %v180_v22  ;;  %v224_v37 = vld [vmem:[%s5901_s5 + $0x1b0] sm:$0xff]  ;;  %v223_v41 = vld [vmem:[%s5901_s5 + $0x1a8] sm:$0xff]  ;;  %v222_v45 = vld [vmem:[%s5901_s5 + $0x1a0] sm:$0xff] }
  0x15   :  { %5209 = vmatpush3.msra.mxu1 %v212_v23  ;;  %5166 = vmatprep.subr.mxu0 %v195_v24  ;;  %v176_v38 = vld [vmem:[%s5901_s5 + $0x30] sm:$0xff]  ;;  %v175_v42 = vld [vmem:[%s5901_s5 + $0x28] sm:$0xff]  ;;  %v174_v46 = vld [vmem:[%s5901_s5 + $0x20] sm:$0xff] }
  0x16   :  { %5210 = vmatprep.subr.mxu1 %v227_v25  ;;  %5167 = vmatpush3.msra.mxu0 %v179_v26  ;;  %v208_v39 = vld [vmem:[%s5901_s5 + $0x130] sm:$0xff]  ;;  %v207_v43 = vld [vmem:[%s5901_s5 + $0x128] sm:$0xff]  ;;  %v206_v47 = vld [vmem:[%s5901_s5 + $0x120] sm:$0xff] }
  0x17   :  { %5211 = vmatpush3.msra.mxu1 %v211_v27  ;;  %5168 = vmatprep.subr.mxu0 %v194_v28  ;;  %v189_v48 = vld [vmem:[%s5901_s5 + $0x98] sm:$0xff]  ;;  %v188_v52 = vld [vmem:[%s5901_s5 + $0x90] sm:$0xff]  ;;  %v187_v56 = vld [vmem:[%s5901_s5 + $0x88] sm:$0xff]  ;;  %v5855_v27 = vmov 0.0  }
  0x18   :  { %5212 = vmatprep.subr.mxu1 %v226_v29  ;;  %5169 = vmatpush3.msra.mxu0 %v178_v30  ;;  %v221_v49 = vld [vmem:[%s5901_s5 + $0x198] sm:$0xff]  ;;  %v220_v53 = vld [vmem:[%s5901_s5 + $0x190] sm:$0xff]  ;;  %v219_v57 = vld [vmem:[%s5901_s5 + $0x188] sm:$0xff] }
  0x19   :  { %5213 = vmatpush3.msra.mxu1 %v210_v31  ;;  %5170 = vmatprep.subr.mxu0 %v193_v32  ;;  %v173_v50 = vld [vmem:[%s5901_s5 + $0x18] sm:$0xff]  ;;  %v172_v54 = vld [vmem:[%s5901_s5 + $0x10] sm:$0xff]  ;;  %v171_v58 = vld [vmem:[%s5901_s5 + $0x8] sm:$0xff] }
  0x1a   :  { %5214 = vmatprep.subr.mxu1 %v225_v33  ;;  %5171 = vmatpush3.msra.mxu0 %v177_v34  ;;  %v205_v51 = vld [vmem:[%s5901_s5 + $0x118] sm:$0xff]  ;;  %v204_v55 = vld [vmem:[%s5901_s5 + $0x110] sm:$0xff]  ;;  %v203_v59 = vld [vmem:[%s5901_s5 + $0x108] sm:$0xff] }
  0x1b   :  { %5215 = vmatpush3.msra.mxu1 %v209_v35  ;;  %5172 = vmatprep.subr.mxu0 %v192_v36  ;;  %v186_v60 = vld [vmem:[%s5901_s5 + $0x80] sm:$0xff]  ;;  %v155_v63 = vld [vmem:[%s5952_s9 + $0x8] sm:$0xff]  ;;  %v157_v2 = vld [vmem:[%s5952_s9 + $0x18] sm:$0xff] }
  0x1c   :  { %5216 = vmatprep.subr.mxu1 %v224_v37  ;;  %5173 = vmatpush3.msra.mxu0 %v176_v38  ;;  %v218_v61 = vld [vmem:[%s5901_s5 + $0x180] sm:$0xff]  ;;  %v156_v4 = vld [vmem:[%s5952_s9 + $0x10] sm:$0xff]  ;;  %v159_v5 = vld [vmem:[%s5952_s9 + $0x28] sm:$0xff] }
  0x1d   :  { %5217 = vmatpush3.msra.mxu1 %v208_v39  ;;  %5174 = vmatprep.subr.mxu0 %v191_v40  ;;  %v170_v62 = vld [vmem:[%s5901_s5] sm:$0xff]  ;;  %v161_v6 = vld [vmem:[%s5952_s9 + $0x38] sm:$0xff]  ;;  %v558_v8 = vld [vmem:[%s5972_s17 + $0x68] sm:$0xff] }
  0x1e   :  { %5218 = vmatprep.subr.mxu1 %v223_v41  ;;  %5175 = vmatpush3.msra.mxu0 %v175_v42  ;;  %v404_v0 = vld [vmem:[%s5959_s13] sm:$0xff]  ;;  %v160_v11 = vld [vmem:[%s5952_s9 + $0x30] sm:$0xff]  ;;  %v163_v12 = vld [vmem:[%s5952_s9 + $0x48] sm:$0xff]  ;;  %s5862_s13 = smov 11  }
  0x1f   :  { %5219 = vmatpush3.msra.mxu1 %v207_v43  ;;  %5176 = vmatprep.subr.mxu0 %v190_v44  ;;  %v202_v1 = vld [vmem:[%s5901_s5 + $0x100] sm:$0xff]  ;;  %v418_v7 = vcombine.high %v404_v0, %v404_v0  ;;  %v165_v13 = vld [vmem:[%s5952_s9 + $0x58] sm:$0xff]  ;;  %v554_v14 = vld [vmem:[%s5972_s17 + $0x48] sm:$0xff]  ;;  %s5860_s5 = smov 9   ;;  %s6701_s16 = sld [smem:[%s7363_s0 + %s5862_s13]]  }
  0x20   :  { %5220 = vmatprep.subr.mxu1 %v222_v45  ;;  %5177 = vmatpush3.msra.mxu0 %v174_v46  ;;  %v154_v3 = vld [vmem:[%s5952_s9] sm:$0xff]  ;;  %v164_v17 = vld [vmem:[%s5952_s9 + $0x50] sm:$0xff]  ;;  %v167_v18 = vld [vmem:[%s5952_s9 + $0x68] sm:$0xff]  ;;  %s6383_s8 = sld [smem:[%s7363_s0 + %s5860_s5]]   ;;  %s5878_s13 = smov 25  }
  0x21   :  { %5221 = vmatpush3.msra.mxu1 %v206_v47  ;;  %5178 = vmatprep.subr.mxu0 %v189_v48  ;;  %v557_v9 = vld [vmem:[%s5972_s17 + $0x60] sm:$0xff]  ;;  %v169_v19 = vld [vmem:[%s5952_s9 + $0x78] sm:$0xff]  ;;  %v550_v20 = vld [vmem:[%s5972_s17 + $0x28] sm:$0xff]  ;;  %s5038_s5 = sld [smem:[%s7363_s0 + %s5875_s2]]  }
  0x22   :  { %5222 = vmatprep.subr.mxu1 %v221_v49  ;;  %5179 = vmatpush3.msra.mxu0 %v173_v50  ;;  %v158_v10 = vld [vmem:[%s5952_s9 + $0x20] sm:$0xff]  ;;  %v168_v23 = vld [vmem:[%s5952_s9 + $0x70] sm:$0xff]  ;;  %v546_v24 = vld [vmem:[%s5972_s17 + $0x8] sm:$0xff] }
  0x23   :  { %5223 = vmatpush3.msra.mxu1 %v205_v51  ;;  %5180 = vmatprep.subr.mxu0 %v188_v52  ;;  %v553_v15 = vld [vmem:[%s5972_s17 + $0x40] sm:$0xff]  ;;  %v560_v26 = vld [vmem:[%s5972_s17 + $0x78] sm:$0xff]  ;;  %v559_v29 = vld [vmem:[%s5972_s17 + $0x70] sm:$0xff] }
  0x24   :  { %5224 = vmatprep.subr.mxu1 %v220_v53  ;;  %5181 = vmatpush3.msra.mxu0 %v172_v54  ;;  %v162_v16 = vld [vmem:[%s5952_s9 + $0x40] sm:$0xff]  ;;  %v556_v30 = vld [vmem:[%s5972_s17 + $0x58] sm:$0xff]  ;;  %v555_v31 = vld [vmem:[%s5972_s17 + $0x50] sm:$0xff] }
  0x25   :  { %5225 = vmatpush3.msra.mxu1 %v204_v55  ;;  %5182 = vmatprep.subr.mxu0 %v187_v56  ;;  %v549_v21 = vld [vmem:[%s5972_s17 + $0x20] sm:$0xff]  ;;  %v527_v32 = vld [vmem:[%s6004_s21 + $0x8] sm:$0xff]  ;;  %v552_v33 = vld [vmem:[%s5972_s17 + $0x38] sm:$0xff] }
  0x26   :  { %5226 = vmatprep.subr.mxu1 %v219_v57  ;;  %5183 = vmatpush3.msra.mxu0 %v171_v58  ;;  %v166_v22 = vld [vmem:[%s5952_s9 + $0x60] sm:$0xff]  ;;  %v551_v34 = vld [vmem:[%s5972_s17 + $0x30] sm:$0xff]  ;;  %v548_v35 = vld [vmem:[%s5972_s17 + $0x18] sm:$0xff]  ;;  %s5861_s9 = smov 10  }
  0x27   :  { %5227 = vmatpush3.msra.mxu1 %v203_v59  ;;  %5184 = vmatprep.subr.mxu0 %v186_v60  ;;  %v545_v25 = vld [vmem:[%s5972_s17] sm:$0xff]  ;;  %v547_v36 = vld [vmem:[%s5972_s17 + $0x10] sm:$0xff]  ;;  %v6039_v37 = vld [vmem:[%s6033_s25 + $0x78] sm:$0xff]  ;;  %s5029_s12 = sld [smem:[%s7363_s0 + %s5861_s9]]   ;;  %s5863_s17 = smov 12  }
  0x28   :  { %5228 = vmatprep.subr.mxu1 %v218_v61  ;;  %5185 = vmatpush3.msra.mxu0 %v170_v62  ;;  %v526_v28 = vld [vmem:[%s6004_s21] sm:$0xff]  ;;  %v6044_v38 = vld [vmem:[%s6033_s25 + $0x70] sm:$0xff]  ;;  %v6048_v39 = vld [vmem:[%s6033_s25 + $0x68] sm:$0xff]  ;;  %s6729_s20 = sld [smem:[%s7363_s0 + %s5863_s17]]   ;;  %s5864_s21 = smov 13  }
  0x29   :  { %298 = vmatprep.mubr.f32.mxu0 %v155_v63  ;;  %5229 = vmatpush3.msra.mxu1 %v202_v1  ;;  %v6052_v40 = vld [vmem:[%s6033_s25 + $0x60] sm:$0xff]  ;;  %v6056_v41 = vld [vmem:[%s6033_s25 + $0x58] sm:$0xff]  ;;  %v6060_v42 = vld [vmem:[%s6033_s25 + $0x50] sm:$0xff]  ;;  %s5032_s24 = sld [smem:[%s7363_s0 + %s5864_s21]]   ;;  %s5877_s9 = smov 21  }
  0x2a   :  { %383 = vmatprep.mubr.f32.mxu1 %v157_v2  ;;  %299 = vmatmul.mubr.f32.vlgmr.msra.gmra.mxu0 %v154_v3  ;;  %v6064_v43 = vld [vmem:[%s6033_s25 + $0x48] sm:$0xff]  ;;  %v6068_v44 = vld [vmem:[%s6033_s25 + $0x40] sm:$0xff]  ;;  %v6072_v45 = vld [vmem:[%s6033_s25 + $0x38] sm:$0xff]  ;;  %v407_v2 = vlaneseq  ;;  %s5880_s17 = smov 23   ;;  %s5881_s21 = smov 29  }
  0x2b   :  { %384 = vmatmul.mubr.f32.vlgmr.msra.gmra.mxu1 %v156_v4  ;;  %303 = vmatprep.mubr.f32.mxu0 %v159_v5  ;;  %v6076_v46 = vld [vmem:[%s6033_s25 + $0x30] sm:$0xff]  ;;  %v6080_v47 = vld [vmem:[%s6033_s25 + $0x28] sm:$0xff]  ;;  %v6084_v48 = vld [vmem:[%s6033_s25 + $0x20] sm:$0xff] }
  0x2c   :  { %388 = vmatprep.mubr.f32.mxu1 %v161_v6  ;;  %592 = vmatprep.subr.mxu1 %v558_v8  ;;  %v6088_v49 = vld [vmem:[%s6033_s25 + $0x18] sm:$0xff]  ;;  %v6092_v50 = vld [vmem:[%s6033_s25 + $0x10] sm:$0xff]  ;;  %v6096_v51 = vld [vmem:[%s6033_s25 + $0x8] sm:$0xff] }
  0x2d   :  { %5057 = vmatprep.subr.msk.mxu0 %vm432_vm0, %v418_v7  ;;  %593 = vmatpush1.msra.mxu1 %v557_v9  ;;  %v6100_v52 = vld [vmem:[%s6033_s25] sm:$0xff]  ;;  %s5865_s25 = smov 14  }
  0x2e   :  { %5058 = vmatpush1.msk.msra.mxu0 %vm432_vm0, %v404_v0  ;;  %594 = vmatprep.subr.mxu1 %v554_v14  ;;  %s5033_s28 = sld [smem:[%s7363_s0 + %s5865_s25]]   ;;  %s5882_s25 = smov 26  }
  0x2f   :  { %304 = vmatmul.mubr.f32.gmra.mxu0 %v158_v10  ;;  %389 = vmatmul.mubr.f32.gmra.mxu1 %v160_v11  ;;  %v6116_v10 = vshrl.u32 %v407_v2, 7 }
  0x30   :  { %308 = vmatprep.mubr.f32.mxu0 %v163_v12  ;;  %393 = vmatprep.mubr.f32.mxu1 %v165_v13 }
  0x31   :  { %595 = vmatpush1.msra.mxu1 %v553_v15  ;;  %765 = vmatprep.subr.mxu0 %v6039_v37 }
  0x32   :  { %596 = vmatprep.subr.mxu1 %v550_v20 }
  0x33   :  { %309 = vmatmul.mubr.f32.gmra.mxu0 %v162_v16  ;;  %394 = vmatmul.mubr.f32.gmra.mxu1 %v164_v17 }
  0x34   :  { %313 = vmatprep.mubr.f32.mxu0 %v167_v18  ;;  %398 = vmatprep.mubr.f32.mxu1 %v169_v19  ;;  %v6125_v18 = vsub.s32 0, %v6116_v10  ;;  %v544_v19 = vld [vmem:[%s5026_s29] sm:$0x3]  ;;  %s5867_s29 = smov 22  }
  0x35   :  { %597 = vmatpush1.msra.mxu1 %v549_v21  ;;  %s7018_s3 = sld [smem:[%s7363_s0 + %s5867_s29]]   ;;  %s5883_s29 = smov 27  }
  0x36   :  { %598 = vmatprep.subr.mxu1 %v546_v24  ;;  %v726_v24 = vrot.slane %v544_v19, %v6125_v18 }
  0x37   :  { %314 = vmatmul.mubr.f32.gmra.mxu0 %v166_v22  ;;  %399 = vmatmul.mubr.f32.gmra.mxu1 %v168_v23  ;;  %v6131_v22 = vsub.s32 1, %v6116_v10 }
  0x38   :  { %632 = vmatprep.mubr.f32.mxu1 %v5855_v27  ;;  %599 = vmatpush1.msra.mxu1 %v545_v25 }
  0x39   :  { %501 = vmatprep.mubr.f32.mxu0 %v5855_v27  ;;  %669 = vmatprep.subr.mxu1 %v560_v26  ;;  %v730_v26 = vrot.slane %v544_v19, %v6131_v22 }
  0x3b   :  { %5063 = vmatmul.mubr.msk.f32.vlgmr.msra.gmra.mxu1 %vm561_vm1, %v526_v28 }
  0x3c   :  { %670 = vmatpush1.msra.mxu1 %v559_v29  ;;  %638 = vmatprep.mubr.f32.mxu1 %v5855_v27 }
  0x3d   :  { %671 = vmatprep.subr.mxu1 %v556_v30 }
  0x3e   :  { %672 = vmatpush1.msra.mxu1 %v555_v31 }
  0x3f   :  { %5064 = vmatmul.mubr.msk.f32.gmra.mxu1 %vm561_vm1, %v527_v32  ;;  %673 = vmatprep.subr.mxu1 %v552_v33 }
  0x40   :  { %674 = vmatpush1.msra.mxu1 %v551_v34  ;;  %709 = vmatprep.mubr.f32.mxu1 %v5855_v27 }
  0x41   :  { %675 = vmatprep.subr.mxu1 %v548_v35 }
  0x42   :  { %676 = vmatpush1.msra.mxu1 %v547_v36 }
  0x43   :  { %5065 = vmatmul.mubr.msk.f32.vlgmr.msra.gmra.mxu1 %vm561_vm1, %v526_v28  ;;  %871 = vmatprep.subr.mxu1 %v6039_v37 }
  0x44   :  { %715 = vmatprep.mubr.f32.mxu1 %v5855_v27  ;;  %872 = vmatpush1.msra.mxu1 %v6044_v38 }
  0x45   :  { %873 = vmatprep.subr.mxu1 %v6048_v39 }
  0x46   :  { %874 = vmatpush1.msra.mxu1 %v6052_v40 }
  0x47   :  { %5066 = vmatmul.mubr.msk.f32.gmra.mxu1 %vm561_vm1, %v527_v32  ;;  %875 = vmatprep.subr.mxu1 %v6056_v41 }
  0x48   :  { %919 = vmatprep.mubr.f32.mxu1 %v5855_v27  ;;  %876 = vmatpush1.msra.mxu1 %v6060_v42 }
  0x49   :  { %877 = vmatprep.subr.mxu1 %v6064_v43 }
  0x4a   :  { %878 = vmatpush1.msra.mxu1 %v6068_v44 }
  0x4b   :  { %879 = vmatprep.subr.mxu1 %v6072_v45 }
  0x4c   :  { %880 = vmatpush1.msra.mxu1 %v6076_v46 }
  0x4d   :  { %881 = vmatprep.subr.mxu1 %v6080_v47 }
  0x4e   :  { %882 = vmatpush1.msra.mxu1 %v6084_v48 }
  0x4f   :  { %883 = vmatprep.subr.mxu1 %v6088_v49 }
  0x50   :  { %884 = vmatpush1.msra.mxu1 %v6092_v50 }
  0x51   :  { %885 = vmatprep.subr.mxu1 %v6096_v51 }
  0x52   :  { %886 = vmatpush1.msra.mxu1 %v6100_v52 }
  0x53   :  { %1091 = vmatprep.subr.mxu1 %v6039_v37 }
  0xea   :  { %v5186_v53 = vpop.f32.mrf.mxu0 }
  0xeb   :  { %v5230_v54 = vpop.f32.mrf.mxu1 }
  0xec   :  { %v5187_v55 = vpop.f32.mrf.mxu0 }
  0xed   :  { %v5231_v56 = vpop.f32.mrf.mxu1  ;;  %v5188_v57 = vadd.f32 %v5187_v55, %v5186_v53 }
  0xee   :  { %v5232_v58 = vadd.f32 %v5231_v56, %v5230_v54 }
  0xef   :  { %v5189_v59 = vpop.f32.mrf.mxu0  ;;  %v5233_v60 = vpop.f32.mrf.mxu1 }
  0xf0   :  { %v386_v61 = vadd.f32 %v5232_v58, %v5188_v57 }
  0xf1   :  { %v5190_v62 = vpop.f32.mrf.mxu0  ;;  %v5234_v63 = vpop.f32.mrf.mxu1 }
  0xf2   :  { %v5191_v0 = vadd.f32 %v5190_v62, %v5189_v59  ;;  %v5235_v1 = vadd.f32 %v5234_v63, %v5233_v60  ;;  %5059 = vmatmul.mubr.msk.f32.vlgmr.msra.gmra.mxu0 %vm419_vm2, %v386_v61 }
  0xf3   :  { %766 = vmatpush1.msra.mxu0 %v6044_v38  ;;  %v5192_v3 = vpop.f32.mrf.mxu0  ;;  %v5236_v4 = vpop.f32.mrf.mxu1  ;;  %507 = vmatprep.mubr.f32.mxu0 %v5855_v27 }
  0xf4   :  { %v391_v5 = vadd.f32 %v5235_v1, %v5191_v0  ;;  %767 = vmatprep.subr.mxu0 %v6048_v39 }
  0xf5   :  { %768 = vmatpush1.msra.mxu0 %v6052_v40  ;;  %v5193_v6 = vpop.f32.mrf.mxu0  ;;  %v5237_v7 = vpop.f32.mrf.mxu1 }
  0xf6   :  { %v5194_v8 = vadd.f32 %v5193_v6, %v5192_v3  ;;  %v5238_v9 = vadd.f32 %v5237_v7, %v5236_v4  ;;  %769 = vmatprep.subr.mxu0 %v6056_v41  ;;  %5060 = vmatmul.mubr.msk.f32.gmra.mxu0 %vm419_vm2, %v391_v5 }
  0xf7   :  { %770 = vmatpush1.msra.mxu0 %v6060_v42  ;;  %v5195_v11 = vpop.f32.mrf.mxu0  ;;  %v5239_v12 = vpop.f32.mrf.mxu1  ;;  %513 = vmatprep.mubr.f32.mxu0 %v5855_v27 }
  0xf8   :  { %v396_v13 = vadd.f32 %v5238_v9, %v5194_v8  ;;  %771 = vmatprep.subr.mxu0 %v6064_v43 }
  0xf9   :  { %772 = vmatpush1.msra.mxu0 %v6068_v44  ;;  %v5196_v14 = vpop.f32.mrf.mxu0  ;;  %v5240_v15 = vpop.f32.mrf.mxu1 }
  0xfa   :  { %v5197_v16 = vadd.f32 %v5196_v14, %v5195_v11  ;;  %v5241_v17 = vadd.f32 %v5240_v15, %v5239_v12  ;;  %773 = vmatprep.subr.mxu0 %v6072_v45  ;;  %5061 = vmatmul.mubr.msk.f32.gmra.mxu0 %vm419_vm2, %v396_v13 }
  0xfb   :  { %774 = vmatpush1.msra.mxu0 %v6076_v46  ;;  %519 = vmatprep.mubr.f32.mxu0 %v5855_v27  ;;  %v634_v20 = vpop.f32.mrf.mxu1 }
  0xfc   :  { %v401_v21 = vadd.f32 %v5241_v17, %v5197_v16  ;;  %775 = vmatprep.subr.mxu0 %v6080_v47  ;;  %v733_v34 = vadd.f32 %v726_v24, %v634_v20 }
  0xfd   :  { %776 = vmatpush1.msra.mxu0 %v6084_v48  ;;  %v636_v23 = vpop.f32.mrf.mxu1 }
  0xfe   :  { %777 = vmatprep.subr.mxu0 %v6088_v49  ;;  %5062 = vmatmul.mubr.msk.f32.gmra.mxu0 %vm419_vm2, %v401_v21  ;;  %v734_v13 = vadd.f32 %v730_v26, %v636_v23 }
  0xff   :  { %778 = vmatpush1.msra.mxu0 %v6092_v50  ;;  %813 = vmatprep.mubr.f32.mxu0 %v5855_v27  ;;  %v640_v25 = vpop.f32.mrf.mxu1 }
 0x100   :  { %779 = vmatprep.subr.mxu0 %v6096_v51  ;;  %v735_v28 = vadd.f32 %v726_v24, %v640_v25 }
 0x101   :  { %780 = vmatpush1.msra.mxu0 %v6100_v52  ;;  %v642_v29 = vpop.f32.mrf.mxu1 }
 0x102   :  { %814 = vmatmul.mubr.f32.vlgmr.msra.gmra.mxu0 %v5855_v27  ;;  %v736_v30 = vadd.f32 %v730_v26, %v642_v29  ;;  %981 = vmatprep.subr.mxu0 %v6039_v37 }
 0x103   :  { %982 = vmatpush1.msra.mxu0 %v6044_v38  ;;  %1029 = vmatprep.mubr.f32.mxu0 %v5855_v27  ;;  %v711_v31 = vpop.f32.mrf.mxu1 }
 0x104   :  { %983 = vmatprep.subr.mxu0 %v6048_v39  ;;  %v1291_v32 = vrot.slane %v711_v31, 2  ;;  %v1181_v57 = vrot.slane %v711_v31, 6 }
 0x105   :  { %984 = vmatpush1.msra.mxu0 %v6052_v40  ;;  %v713_v33 = vpop.f32.mrf.mxu1 }
 0x106   :  { %985 = vmatprep.subr.mxu0 %v6056_v41  ;;  %v6161_v35 = vadd.f32 %v1291_v32, %v735_v28  ;;  %v1292_v36 = vrot.slane %v713_v33, 2  ;;  %v1182_v58 = vrot.slane %v713_v33, 6  ;;  %v6167_v59 = vadd.f32 %v1181_v57, %v735_v28 }
 0x107   :  { %986 = vmatpush1.msra.mxu0 %v6060_v42  ;;  %v717_v53 = vpop.f32.mrf.mxu1 }
 0x108   :  { %987 = vmatprep.subr.mxu0 %v6064_v43  ;;  %v6163_v54 = vadd.f32 %v1292_v36, %v736_v30  ;;  %v844_v55 = vrot.slane %v717_v53, 2  ;;  %v6169_v60 = vadd.f32 %v1182_v58, %v736_v30  ;;  %v739_v4 = vrot.slane %v717_v53, 6 }
 0x109   :  { %988 = vmatpush1.msra.mxu0 %v6068_v44  ;;  %v719_v12 = vpop.f32.mrf.mxu1 }
 0x10a   :  { %989 = vmatprep.subr.mxu0 %v6072_v45  ;;  %v6165_v56 = vadd.f32 %v844_v55, %v733_v34  ;;  %v6187_v7 = vadd.f32 %v739_v4, %v733_v34  ;;  %v740_v14 = vrot.slane %v719_v12, 6 }
 0x10b   :  { %990 = vmatpush1.msra.mxu0 %v6076_v46 }
 0x10c   :  { %991 = vmatprep.subr.mxu0 %v6080_v47  ;;  %v6190_v16 = vadd.f32 %v740_v14, %v734_v13 }
 0x10d   :  { %992 = vmatpush1.msra.mxu0 %v6084_v48 }
 0x10e   :  { %993 = vmatprep.subr.mxu0 %v6088_v49 }
 0x10f   :  { %994 = vmatpush1.msra.mxu0 %v6092_v50 }
 0x110   :  { %995 = vmatprep.subr.mxu0 %v6096_v51 }
 0x111   :  { %996 = vmatpush1.msra.mxu0 %v6100_v52 }
 0x112   :  { %1209 = vmatprep.subr.mxu0 %v6039_v37 }
 0x1b2   :  { %v6171_v61 = vpop.f32.mrf.mxu0 }
 0x1b4   :  { %v6173_v62 = vpop.f32.mrf.mxu0 }
 0x1b6   :  { %v6175_v63 = vpop.f32.mrf.mxu0 }
 0x1b8   :  { %v6177_v0 = vpop.f32.mrf.mxu0 }
 0x1ba   :  { %v6179_v1 = vpop.f32.mrf.mxu0 }
 0x1bc   :  { %v6181_v3 = vpop.f32.mrf.mxu0 }
 0x1be   :  { %v6183_v5 = vpop.f32.mrf.mxu0 }
 0x1c0   :  { %v6185_v6 = vpop.f32.mrf.mxu0 }
 0x1c2   :  { %v815_v8 = vpop.f32.mrf.mxu0 }
 0x1c3   :  { %v820_v9 = vadd.f32 %v815_v8, %v6187_v7  ;;  %v845_v8 = vrot.slane %v719_v12, 2 }
 0x1c4   :  { %v817_v15 = vpop.f32.mrf.mxu0 }
 0x1c5   :  { %v5067_v11 = vmul.f32 -1.442695, %v820_v9  ;;  %v821_v17 = vadd.f32 %v817_v15, %v6190_v16 }
 0x1c7   :  { %5535 = vpow2.f32 %v5067_v11  ;;  %v5068_v28 = vmul.f32 -1.442695, %v821_v17  ;;  %v6217_v11 = vadd.f32 %v845_v8, %v734_v13 }
 0x1c8   :  { %5537 = vtanh.f32 %v821_v17 }
 0x1d4   :  { %v5536_v19 = vpop.eup %5535 }
 0x1d5   :  { %v825_v20 = vadd.f32 1.0, %v5536_v19  ;;  %v5538_v21 = vpop.eup %5537 }
 0x1d7   :  { %5539 = vrcp.f32 %v825_v20 }
 0x1d8   :  { %5541 = vpow2.f32 %v5068_v28 }
 0x1e4   :  { %v5540_v24 = vpop.eup %5539 }
 0x1e5   :  { %v836_v25 = vmul.f32 %v5540_v24, %v5538_v21  ;;  %v5542_v29 = vpop.eup %5541  ;;  %v835_v26 = vmul.f32 0.0, %v5540_v24 }
 0x1e6   :  { %v832_v23 = vadd.f32 1.0, %v5542_v29 }
 0x1e7   :  { %838 = vrot.lane.b32.xlu0 %v836_v25, %s5858_s30 }
 0x1e8   :  { %5543 = vrcp.f32 %v832_v23 }
 0x1f5   :  { %v5544_v32 = vpop.eup %5543 }
 0x259   :  { %v839_v30 = vpop.permute.xlu0 %838 }
 0x25a   :  { %v841_v31 = vadd.f32 %v839_v30, %v835_v26 }
 0x25c   :  { %5545 = vtanh.f32 %v841_v31  ;;  %v948_v20 = vrot.slane %v841_v31, 6 }
 0x269   :  { %v5546_v33 = vpop.eup %5545 }
 0x26a   :  { %v6194_v34 = vmul.f32 %v5546_v33, %v5544_v32 }
 0x26c   :  { %851 = vrot.lane.b32.xlu0 %v6194_v34, %s5858_s30 }
 0x2de   :  { %v852_v36 = vpop.permute.xlu0 %851 }
 0x2df   :  { %5069 = vmatmul.mubr.msk.f32.vlgmr.msra.gmra.mxu1 %vm745_vm3, %v852_v36 }
 0x2e0   :  { %1092 = vmatpush1.msra.mxu1 %v6044_v38  ;;  %1139 = vmatprep.mubr.f32.mxu1 %v5855_v27 }
 0x2e1   :  { %1093 = vmatprep.subr.mxu1 %v6048_v39 }
 0x2e2   :  { %1094 = vmatpush1.msra.mxu1 %v6052_v40 }
 0x2e3   :  { %1095 = vmatprep.subr.mxu1 %v6056_v41 }
 0x2e4   :  { %1096 = vmatpush1.msra.mxu1 %v6060_v42 }
 0x2e5   :  { %1097 = vmatprep.subr.mxu1 %v6064_v43 }
 0x2e6   :  { %1098 = vmatpush1.msra.mxu1 %v6068_v44 }
 0x2e7   :  { %1099 = vmatprep.subr.mxu1 %v6072_v45 }
 0x2e8   :  { %1100 = vmatpush1.msra.mxu1 %v6076_v46 }
 0x2e9   :  { %1101 = vmatprep.subr.mxu1 %v6080_v47 }
 0x2ea   :  { %1102 = vmatpush1.msra.mxu1 %v6084_v48 }
 0x2eb   :  { %1103 = vmatprep.subr.mxu1 %v6088_v49 }
 0x2ec   :  { %1104 = vmatpush1.msra.mxu1 %v6092_v50 }
 0x2ed   :  { %1105 = vmatprep.subr.mxu1 %v6096_v51 }
 0x2ee   :  { %1106 = vmatpush1.msra.mxu1 %v6100_v52 }
 0x2ef   :  { %1318 = vmatprep.subr.mxu1 %v6039_v37 }
 0x39f   :  { %v921_v53 = vpop.f32.mrf.mxu1 }
 0x3a0   :  { %v928_v55 = vrot.slane %v921_v53, 6 }
 0x3a1   :  { %v923_v4 = vpop.f32.mrf.mxu1 }
 0x3a2   :  { %v932_v57 = vadd.f32 %v928_v55, %v6165_v56  ;;  %v929_v9 = vrot.slane %v923_v4, 6 }
 0x3a4   :  { %v5070_v58 = vmul.f32 -1.442695, %v932_v57  ;;  %v933_v14 = vadd.f32 %v929_v9, %v6217_v11 }
 0x3a6   :  { %5547 = vpow2.f32 %v5070_v58  ;;  %v5071_v28 = vmul.f32 -1.442695, %v933_v14 }
 0x3a7   :  { %5549 = vtanh.f32 %v933_v14 }
 0x3b3   :  { %v5548_v15 = vpop.eup %5547 }
 0x3b4   :  { %v937_v17 = vadd.f32 1.0, %v5548_v15  ;;  %v5550_v19 = vpop.eup %5549 }
 0x3b6   :  { %5551 = vrcp.f32 %v937_v17 }
 0x3b7   :  { %5553 = vpow2.f32 %v5071_v28 }
 0x3c3   :  { %v5552_v21 = vpop.eup %5551 }
 0x3c4   :  { %v951_v24 = vmul.f32 %v5552_v21, %v5550_v19  ;;  %v950_v25 = vmul.f32 %v5552_v21, %v948_v20  ;;  %v5554_v29 = vpop.eup %5553 }
 0x3c5   :  { %v944_v12 = vadd.f32 1.0, %v5554_v29 }
 0x3c6   :  { %953 = vrot.lane.b32.xlu1 %v951_v24, %s5858_s30 }
 0x3c7   :  { %5555 = vrcp.f32 %v944_v12 }
 0x3d4   :  { %v5556_v26 = vpop.eup %5555 }
 0x438   :  { %v954_v23 = vpop.permute.xlu1 %953 }
 0x439   :  { %v956_v13 = vadd.f32 %v954_v23, %v950_v25 }
 0x43b   :  { %5557 = vtanh.f32 %v956_v13  ;;  %v1058_v17 = vrot.slane %v956_v13, 6 }
 0x448   :  { %v5558_v30 = vpop.eup %5557 }
 0x449   :  { %v6221_v32 = vmul.f32 %v5558_v30, %v5556_v26 }
 0x44b   :  { %v960_v33 = vrot.slane %v6221_v32, 2  ;;  %v1627_v13 = vsel %vm1626_vm4, %v6194_v34, %v6221_v32 }
 0x44d   :  { %961 = vrot.lane.b32.xlu1 %v960_v33, %s5858_s30 }
 0x4bf   :  { %v962_v31 = vpop.permute.xlu1 %961 }
 0x4c0   :  { %5072 = vmatmul.mubr.msk.f32.vlgmr.msra.gmra.mxu0 %vm745_vm3, %v962_v31 }
 0x4c1   :  { %1210 = vmatpush1.msra.mxu0 %v6044_v38  ;;  %1257 = vmatprep.mubr.f32.mxu0 %v5855_v27 }
 0x4c2   :  { %1211 = vmatprep.subr.mxu0 %v6048_v39 }
 0x4c3   :  { %1212 = vmatpush1.msra.mxu0 %v6052_v40 }
 0x4c4   :  { %1213 = vmatprep.subr.mxu0 %v6056_v41 }
 0x4c5   :  { %1214 = vmatpush1.msra.mxu0 %v6060_v42 }
 0x4c6   :  { %1215 = vmatprep.subr.mxu0 %v6064_v43 }
 0x4c7   :  { %1216 = vmatpush1.msra.mxu0 %v6068_v44 }
 0x4c8   :  { %1217 = vmatprep.subr.mxu0 %v6072_v45 }
 0x4c9   :  { %1218 = vmatpush1.msra.mxu0 %v6076_v46 }
 0x4ca   :  { %1219 = vmatprep.subr.mxu0 %v6080_v47 }
 0x4cb   :  { %1220 = vmatpush1.msra.mxu0 %v6084_v48 }
 0x4cc   :  { %1221 = vmatprep.subr.mxu0 %v6088_v49 }
 0x4cd   :  { %1222 = vmatpush1.msra.mxu0 %v6092_v50 }
 0x4ce   :  { %1223 = vmatprep.subr.mxu0 %v6096_v51 }
 0x4cf   :  { %1224 = vmatpush1.msra.mxu0 %v6100_v52 }
 0x4d0   :  { %1428 = vmatprep.subr.mxu0 %v6039_v37 }
 0x580   :  { %v1031_v36 = vpop.f32.mrf.mxu0 }
 0x581   :  { %v1038_v53 = vrot.slane %v1031_v36, 4 }
 0x582   :  { %v1033_v58 = vpop.f32.mrf.mxu0 }
 0x583   :  { %v1042_v55 = vadd.f32 %v1038_v53, %v6187_v7  ;;  %v1039_v4 = vrot.slane %v1033_v58, 4 }
 0x585   :  { %v5073_v57 = vmul.f32 -1.442695, %v1042_v55  ;;  %v1043_v8 = vadd.f32 %v1039_v4, %v6190_v16 }
 0x587   :  { %5559 = vpow2.f32 %v5073_v57  ;;  %v5074_v24 = vmul.f32 -1.442695, %v1043_v8 }
 0x588   :  { %5561 = vtanh.f32 %v1043_v8 }
 0x594   :  { %v5560_v9 = vpop.eup %5559 }
 0x595   :  { %v1047_v14 = vadd.f32 1.0, %v5560_v9  ;;  %v5562_v15 = vpop.eup %5561 }
 0x597   :  { %5563 = vrcp.f32 %v1047_v14 }
 0x598   :  { %5565 = vpow2.f32 %v5074_v24 }
 0x5a4   :  { %v5564_v19 = vpop.eup %5563 }
 0x5a5   :  { %v1061_v20 = vmul.f32 %v5564_v19, %v5562_v15  ;;  %v1060_v21 = vmul.f32 %v5564_v19, %v1058_v17  ;;  %v5566_v7 = vpop.eup %5565 }
 0x5a6   :  { %v1054_v25 = vadd.f32 1.0, %v5566_v7 }
 0x5a7   :  { %1063 = vrot.lane.b32.xlu0 %v1061_v20, %s5858_s30 }
 0x5a8   :  { %5567 = vrcp.f32 %v1054_v25 }
 0x5b5   :  { %v5568_v16 = vpop.eup %5567 }
 0x619   :  { %v1064_v28 = vpop.permute.xlu0 %1063 }
 0x61a   :  { %v1066_v29 = vadd.f32 %v1064_v28, %v1060_v21 }
 0x61c   :  { %5569 = vtanh.f32 %v1066_v29  ;;  %v1168_v15 = vrot.slane %v1066_v29, 6 }
 0x629   :  { %v5570_v12 = vpop.eup %5569 }
 0x62a   :  { %v1068_v23 = vmul.f32 %v5570_v12, %v5568_v16 }
 0x62c   :  { %v1070_v26 = vrot.slane %v1068_v23, 4  ;;  %v1628_v30 = vsel %vm432_vm0, %v1627_v13, %v1068_v23  ;;  %v1644_v12 = vrot.slane %v1068_v23, 2  ;;  %v1646_v13 = vrot.slane %v6221_v32, 6 }
 0x62e   :  { %1071 = vrot.lane.b32.xlu1 %v1070_v26, %s5858_s30 }
 0x6a0   :  { %v1072_v33 = vpop.permute.xlu1 %1071 }
 0x6a1   :  { %5075 = vmatmul.mubr.msk.f32.vlgmr.msra.gmra.mxu1 %vm745_vm3, %v1072_v33 }
 0x6a2   :  { %1319 = vmatpush1.msra.mxu1 %v6044_v38  ;;  %1366 = vmatprep.mubr.f32.mxu1 %v5855_v27 }
 0x6a3   :  { %1320 = vmatprep.subr.mxu1 %v6048_v39 }
 0x6a4   :  { %1321 = vmatpush1.msra.mxu1 %v6052_v40 }
 0x6a5   :  { %1322 = vmatprep.subr.mxu1 %v6056_v41 }
 0x6a6   :  { %1323 = vmatpush1.msra.mxu1 %v6060_v42 }
 0x6a7   :  { %1324 = vmatprep.subr.mxu1 %v6064_v43 }
 0x6a8   :  { %1325 = vmatpush1.msra.mxu1 %v6068_v44 }
 0x6a9   :  { %1326 = vmatprep.subr.mxu1 %v6072_v45 }
 0x6aa   :  { %1327 = vmatpush1.msra.mxu1 %v6076_v46 }
 0x6ab   :  { %1328 = vmatprep.subr.mxu1 %v6080_v47 }
 0x6ac   :  { %1329 = vmatpush1.msra.mxu1 %v6084_v48 }
 0x6ad   :  { %1330 = vmatprep.subr.mxu1 %v6088_v49 }
 0x6ae   :  { %1331 = vmatpush1.msra.mxu1 %v6092_v50 }
 0x6af   :  { %1332 = vmatprep.subr.mxu1 %v6096_v51 }
 0x6b0   :  { %1333 = vmatpush1.msra.mxu1 %v6100_v52 }
 0x6b1   :  { %1538 = vmatprep.subr.mxu1 %v6039_v37 }
 0x761   :  { %v1141_v31 = vpop.f32.mrf.mxu1 }
 0x762   :  { %v1148_v36 = vrot.slane %v1141_v31, 2 }
 0x763   :  { %v1143_v57 = vpop.f32.mrf.mxu1 }
 0x764   :  { %v1152_v53 = vadd.f32 %v1148_v36, %v6165_v56  ;;  %v1149_v58 = vrot.slane %v1143_v57, 2 }
 0x766   :  { %v5076_v55 = vmul.f32 -1.442695, %v1152_v53  ;;  %v1153_v4 = vadd.f32 %v1149_v58, %v6217_v11 }
 0x768   :  { %5571 = vpow2.f32 %v5076_v55  ;;  %v5077_v37 = vmul.f32 -1.442695, %v1153_v4 }
 0x769   :  { %5573 = vtanh.f32 %v1153_v4 }
 0x775   :  { %v5572_v8 = vpop.eup %5571 }
 0x776   :  { %v1157_v9 = vadd.f32 1.0, %v5572_v8  ;;  %v5574_v14 = vpop.eup %5573 }
 0x778   :  { %5575 = vrcp.f32 %v1157_v9 }
 0x779   :  { %5577 = vpow2.f32 %v5077_v37 }
 0x785   :  { %v5576_v17 = vpop.eup %5575 }
 0x786   :  { %v1171_v19 = vmul.f32 %v5576_v17, %v5574_v14  ;;  %v1170_v20 = vmul.f32 %v5576_v17, %v1168_v15  ;;  %v5578_v56 = vpop.eup %5577 }
 0x787   :  { %v1164_v21 = vadd.f32 1.0, %v5578_v56 }
 0x788   :  { %1173 = vrot.lane.b32.xlu0 %v1171_v19, %s5858_s30 }
 0x789   :  { %5579 = vrcp.f32 %v1164_v21 }
 0x796   :  { %v5580_v11 = vpop.eup %5579 }
 0x7fa   :  { %v1174_v24 = vpop.permute.xlu0 %1173 }
 0x7fb   :  { %v1176_v7 = vadd.f32 %v1174_v24, %v1170_v20 }
 0x7fd   :  { %5581 = vtanh.f32 %v1176_v7  ;;  %v1280_v4 = vrot.slane %v1176_v7, 6 }
 0x80a   :  { %v5582_v25 = vpop.eup %5581 }
 0x80b   :  { %v1178_v28 = vmul.f32 %v5582_v25, %v5580_v11 }
 0x80d   :  { %v1188_v16 = vrot.slane %v1178_v28, 6  ;;  %v6273_v29 = vsel %vm1629_vm5, %v1628_v30, %v1178_v28 }
 0x80f   :  { %1189 = vrot.lane.b32.xlu1 %v1188_v16, %s5858_s30  ;;  %v1653_v26 = vsel %vm1626_vm4, %v1188_v16, %v1644_v12 }
 0x810   :  { %v6279_v33 = vsel %vm432_vm0, %v1653_v26, %v1646_v13 }
 0x881   :  { %v1190_v31 = vpop.permute.xlu1 %1189 }
 0x882   :  { %5078 = vmatmul.mubr.msk.f32.vlgmr.msra.gmra.mxu0 %vm745_vm3, %v1190_v31 }
 0x883   :  { %1429 = vmatpush1.msra.mxu0 %v6044_v38  ;;  %1476 = vmatprep.mubr.f32.mxu0 %v5855_v27 }
 0x884   :  { %1430 = vmatprep.subr.mxu0 %v6048_v39 }
 0x885   :  { %1431 = vmatpush1.msra.mxu0 %v6052_v40 }
 0x886   :  { %1432 = vmatprep.subr.mxu0 %v6056_v41 }
 0x887   :  { %1433 = vmatpush1.msra.mxu0 %v6060_v42 }
 0x888   :  { %1434 = vmatprep.subr.mxu0 %v6064_v43 }
 0x889   :  { %1435 = vmatpush1.msra.mxu0 %v6068_v44 }
 0x88a   :  { %1436 = vmatprep.subr.mxu0 %v6072_v45 }
 0x88b   :  { %1437 = vmatpush1.msra.mxu0 %v6076_v46 }
 0x88c   :  { %1438 = vmatprep.subr.mxu0 %v6080_v47 }
 0x88d   :  { %1439 = vmatpush1.msra.mxu0 %v6084_v48 }
 0x88e   :  { %1440 = vmatprep.subr.mxu0 %v6088_v49 }
 0x88f   :  { %1441 = vmatpush1.msra.mxu0 %v6092_v50 }
 0x890   :  { %1442 = vmatprep.subr.mxu0 %v6096_v51 }
 0x891   :  { %1443 = vmatpush1.msra.mxu0 %v6100_v52 }
 0x942   :  { %v1259_v32 = vpop.f32.mrf.mxu0 }
 0x943   :  { %v1264_v23 = vadd.f32 %v1259_v32, %v6167_v59 }
 0x944   :  { %v1261_v36 = vpop.f32.mrf.mxu0 }
 0x945   :  { %v5079_v30 = vmul.f32 -1.442695, %v1264_v23  ;;  %v1265_v53 = vadd.f32 %v1261_v36, %v6169_v60 }
 0x947   :  { %5583 = vpow2.f32 %v5079_v30  ;;  %v5080_v15 = vmul.f32 -1.442695, %v1265_v53 }
 0x948   :  { %5585 = vtanh.f32 %v1265_v53 }
 0x954   :  { %v5584_v55 = vpop.eup %5583 }
 0x955   :  { %v1269_v57 = vadd.f32 1.0, %v5584_v55  ;;  %v5586_v58 = vpop.eup %5585 }
 0x957   :  { %5587 = vrcp.f32 %v1269_v57 }
 0x958   :  { %5589 = vpow2.f32 %v5080_v15 }
 0x964   :  { %v5588_v8 = vpop.eup %5587 }
 0x965   :  { %v1283_v9 = vmul.f32 %v5588_v8, %v5586_v58  ;;  %v1282_v14 = vmul.f32 %v5588_v8, %v1280_v4  ;;  %v5590_v17 = vpop.eup %5589 }
 0x966   :  { %v1276_v19 = vadd.f32 1.0, %v5590_v17 }
 0x967   :  { %1285 = vrot.lane.b32.xlu0 %v1283_v9, %s5858_s30 }
 0x968   :  { %5591 = vrcp.f32 %v1276_v19 }
 0x975   :  { %v5592_v56 = vpop.eup %5591 }
 0x9d9   :  { %v1286_v20 = vpop.permute.xlu0 %1285 }
 0x9da   :  { %v1288_v37 = vadd.f32 %v1286_v20, %v1282_v14 }
 0x9dc   :  { %5593 = vtanh.f32 %v1288_v37 }
 0x9e9   :  { %v5594_v21 = vpop.eup %5593 }
 0x9ea   :  { %v6301_v24 = vmul.f32 %v5594_v21, %v5592_v56 }
 0x9ec   :  { %1298 = vrot.lane.b32.xlu1 %v6301_v24, %s5858_s30 }
 0xa5e   :  { %v1299_v7 = vpop.permute.xlu1 %1298 }
 0xa5f   :  { %5081 = vmatmul.mubr.msk.f32.vlgmr.msra.gmra.mxu1 %vm745_vm3, %v1299_v7 }
 0xa60   :  { %1539 = vmatpush1.msra.mxu1 %v6044_v38  ;;  %1586 = vmatprep.mubr.f32.mxu1 %v5855_v27 }
 0xa61   :  { %1540 = vmatprep.subr.mxu1 %v6048_v39 }
 0xa62   :  { %1541 = vmatpush1.msra.mxu1 %v6052_v40 }
 0xa63   :  { %1542 = vmatprep.subr.mxu1 %v6056_v41 }
 0xa64   :  { %1543 = vmatpush1.msra.mxu1 %v6060_v42 }
 0xa65   :  { %1544 = vmatprep.subr.mxu1 %v6064_v43 }
 0xa66   :  { %1545 = vmatpush1.msra.mxu1 %v6068_v44 }
 0xa67   :  { %1546 = vmatprep.subr.mxu1 %v6072_v45 }
 0xa68   :  { %1547 = vmatpush1.msra.mxu1 %v6076_v46 }
 0xa69   :  { %1548 = vmatprep.subr.mxu1 %v6080_v47 }
 0xa6a   :  { %1549 = vmatpush1.msra.mxu1 %v6084_v48  ;;  %v1395_v48 = vrot.slane %v1288_v37, 6 }
 0xa6b   :  { %1550 = vmatprep.subr.mxu1 %v6088_v49 }
 0xa6c   :  { %1551 = vmatpush1.msra.mxu1 %v6092_v50 }
 0xa6d   :  { %1552 = vmatprep.subr.mxu1 %v6096_v51 }
 0xa6e   :  { %1553 = vmatpush1.msra.mxu1 %v6100_v52 }
 0xb1f   :  { %v1368_v38 = vpop.f32.mrf.mxu1 }
 0xb20   :  { %v1375_v39 = vrot.slane %v1368_v38, 6 }
 0xb21   :  { %v1370_v42 = vpop.f32.mrf.mxu1 }
 0xb22   :  { %v1379_v40 = vadd.f32 %v1375_v39, %v6161_v35  ;;  %v1376_v43 = vrot.slane %v1370_v42, 6 }
 0xb24   :  { %v5082_v41 = vmul.f32 -1.442695, %v1379_v40  ;;  %v1380_v44 = vadd.f32 %v1376_v43, %v6163_v54 }
 0xb26   :  { %5595 = vpow2.f32 %v5082_v41  ;;  %v5083_v52 = vmul.f32 -1.442695, %v1380_v44 }
 0xb27   :  { %5597 = vtanh.f32 %v1380_v44 }
 0xb33   :  { %v5596_v45 = vpop.eup %5595 }
 0xb34   :  { %v1384_v46 = vadd.f32 1.0, %v5596_v45  ;;  %v5598_v47 = vpop.eup %5597 }
 0xb36   :  { %5599 = vrcp.f32 %v1384_v46 }
 0xb37   :  { %5601 = vpow2.f32 %v5083_v52 }
 0xb43   :  { %v5600_v49 = vpop.eup %5599 }
 0xb44   :  { %v1398_v50 = vmul.f32 %v5600_v49, %v5598_v47  ;;  %v1397_v51 = vmul.f32 %v5600_v49, %v1395_v48  ;;  %v5602_v11 = vpop.eup %5601 }
 0xb45   :  { %v1391_v25 = vadd.f32 1.0, %v5602_v11 }
 0xb46   :  { %1400 = vrot.lane.b32.xlu0 %v1398_v50, %s5858_s30 }
 0xb47   :  { %5603 = vrcp.f32 %v1391_v25 }
 0xb54   :  { %v5604_v12 = vpop.eup %5603 }
 0xbb8   :  { %v1401_v28 = vpop.permute.xlu0 %1400 }
 0xbb9   :  { %v1403_v16 = vadd.f32 %v1401_v28, %v1397_v51 }
 0xbbb   :  { %5605 = vtanh.f32 %v1403_v16  ;;  %v1505_v14 = vrot.slane %v1403_v16, 6  ;;  %v1722_v16 = vld [vmem:[%s6355_s4 + $0xf8] sm:$0xff] }
 0xbbc   :  { %1822 = vmatprep.subr.mxu1 %v1722_v16 }
 0xbc8   :  { %v5606_v13 = vpop.eup %5605 }
 0xbc9   :  { %v6325_v26 = vmul.f32 %v5606_v13, %v5604_v12  ;;  %v1716_v12 = vld [vmem:[%s6355_s4 + $0xc8] sm:$0xff]  ;;  %v1721_v13 = vld [vmem:[%s6355_s4 + $0xf0] sm:$0xff] }
 0xbcb   :  { %v1407_v31 = vrot.slane %v6325_v26, 2  ;;  %v1631_v39 = vsel %vm1626_vm4, %v6301_v24, %v6325_v26 }
 0xbcd   :  { %1408 = vrot.lane.b32.xlu1 %v1407_v31, %s5858_s30  ;;  %v1715_v31 = vld [vmem:[%s6355_s4 + $0xc0] sm:$0xff] }
 0xc3f   :  { %v1409_v32 = vpop.permute.xlu1 %1408 }
 0xc40   :  { %5084 = vmatmul.mubr.msk.f32.vlgmr.msra.gmra.mxu0 %vm745_vm3, %v1409_v32  ;;  %v1718_v32 = vld [vmem:[%s6355_s4 + $0xd8] sm:$0xff] }
 0xc41   :  { %1793 = vmatprep.mubr.f32.mxu0 %v5855_v27 }
 0xd00   :  { %v1478_v23 = vpop.f32.mrf.mxu0 }
 0xd01   :  { %v1485_v30 = vrot.slane %v1478_v23, 4  ;;  %v1712_v23 = vld [vmem:[%s6355_s4 + $0xa8] sm:$0xff] }
 0xd02   :  { %v1480_v55 = vpop.f32.mrf.mxu0 }
 0xd03   :  { %v1489_v36 = vadd.f32 %v1485_v30, %v6167_v59  ;;  %v1486_v57 = vrot.slane %v1480_v55, 4  ;;  %v1717_v30 = vld [vmem:[%s6355_s4 + $0xd0] sm:$0xff]  ;;  %v1708_v55 = vld [vmem:[%s6355_s4 + $0x88] sm:$0xff] }
 0xd05   :  { %v5085_v53 = vmul.f32 -1.442695, %v1489_v36  ;;  %v1490_v58 = vadd.f32 %v1486_v57, %v6169_v60  ;;  %v1711_v36 = vld [vmem:[%s6355_s4 + $0xa0] sm:$0xff]  ;;  %v1713_v57 = vld [vmem:[%s6355_s4 + $0xb0] sm:$0xff] }
 0xd07   :  { %5607 = vpow2.f32 %v5085_v53  ;;  %v5086_v20 = vmul.f32 -1.442695, %v1490_v58  ;;  %v1714_v53 = vld [vmem:[%s6355_s4 + $0xb8] sm:$0xff] }
 0xd08   :  { %5609 = vtanh.f32 %v1490_v58  ;;  %v1710_v58 = vld [vmem:[%s6355_s4 + $0x98] sm:$0xff] }
 0xd14   :  { %v5608_v4 = vpop.eup %5607 }
 0xd15   :  { %v1494_v8 = vadd.f32 1.0, %v5608_v4  ;;  %v5610_v9 = vpop.eup %5609  ;;  %v1707_v4 = vld [vmem:[%s6355_s4 + $0x80] sm:$0xff] }
 0xd17   :  { %5611 = vrcp.f32 %v1494_v8  ;;  %v1709_v8 = vld [vmem:[%s6355_s4 + $0x90] sm:$0xff] }
 0xd18   :  { %5613 = vpow2.f32 %v5086_v20  ;;  %v1702_v20 = vld [vmem:[%s6355_s4 + $0x58] sm:$0xff] }
 0xd24   :  { %v5612_v15 = vpop.eup %5611 }
 0xd25   :  { %v1508_v17 = vmul.f32 %v5612_v15, %v5610_v9  ;;  %v1507_v19 = vmul.f32 %v5612_v15, %v1505_v14  ;;  %v5614_v59 = vpop.eup %5613  ;;  %v1704_v9 = vld [vmem:[%s6355_s4 + $0x68] sm:$0xff]  ;;  %v1706_v14 = vld [vmem:[%s6355_s4 + $0x78] sm:$0xff]  ;;  %v1703_v15 = vld [vmem:[%s6355_s4 + $0x60] sm:$0xff] }
 0xd26   :  { %v1501_v37 = vadd.f32 1.0, %v5614_v59  ;;  %v1699_v59 = vld [vmem:[%s6355_s4 + $0x40] sm:$0xff] }
 0xd27   :  { %1510 = vrot.lane.b32.xlu0 %v1508_v17, %s5858_s30  ;;  %v1705_v17 = vld [vmem:[%s6355_s4 + $0x70] sm:$0xff] }
 0xd28   :  { %5615 = vrcp.f32 %v1501_v37 }
 0xd35   :  { %v5616_v60 = vpop.eup %5615 }
 0xd99   :  { %v1511_v56 = vpop.permute.xlu0 %1510 }
 0xd9a   :  { %v1513_v21 = vadd.f32 %v1511_v56, %v1507_v19  ;;  %v1700_v19 = vld [vmem:[%s6355_s4 + $0x48] sm:$0xff] }
 0xd9c   :  { %5617 = vtanh.f32 %v1513_v21  ;;  %v1615_v52 = vrot.slane %v1513_v21, 6 }
 0xda9   :  { %v5618_v7 = vpop.eup %5617 }
 0xdaa   :  { %v6334_v38 = vmul.f32 %v5618_v7, %v5616_v60 }
 0xdac   :  { %v1517_v40 = vrot.slane %v6334_v38, 4  ;;  %v6342_v41 = vsel %vm432_vm0, %v1631_v39, %v6334_v38  ;;  %v1696_v39 = vld [vmem:[%s6355_s4 + $0x28] sm:$0xff] }
 0xdae   :  { %1518 = vrot.lane.b32.xlu1 %v1517_v40, %s5858_s30  ;;  %v1701_v40 = vld [vmem:[%s6355_s4 + $0x50] sm:$0xff] }
 0xdb2   :  { %1658 = vrot.lane.b32.xlu1 %v6273_v29, %s5858_s30 }
 0xe20   :  { %v1519_v42 = vpop.permute.xlu1 %1518 }
 0xe21   :  { %5087 = vmatmul.mubr.msk.f32.vlgmr.msra.gmra.mxu1 %vm745_vm3, %v1519_v42  ;;  %v1695_v42 = vld [vmem:[%s6355_s4 + $0x20] sm:$0xff] }
 0xe22   :  { %1870 = vmatprep.mubr.f32.mxu1 %v5855_v27  ;;  %1823 = vmatpush1.msra.mxu1 %v1721_v13 }
 0xe23   :  { %1824 = vmatprep.subr.mxu1 %v1718_v32  ;;  %v6418_v32 = vld [vmem:[%s6383_s8 + $0x68] sm:$0xff] }
 0xe24   :  { %1825 = vmatpush1.msra.mxu1 %v1717_v30 }
 0xe25   :  { %1826 = vmatprep.subr.mxu1 %v1714_v53 }
 0xe26   :  { %1827 = vmatpush1.msra.mxu1 %v1713_v57  ;;  %v6444_v57 = vld [vmem:[%s6383_s8 + $0x40] sm:$0xff] }
 0xe27   :  { %1828 = vmatprep.subr.mxu1 %v1710_v58  ;;  %v6449_v58 = vld [vmem:[%s6383_s8 + $0x38] sm:$0xff] }
 0xe28   :  { %1829 = vmatpush1.msra.mxu1 %v1709_v8  ;;  %v6458_v8 = vld [vmem:[%s6383_s8 + $0x28] sm:$0xff] }
 0xe29   :  { %1830 = vmatprep.subr.mxu1 %v1706_v14  ;;  %v6468_v14 = vld [vmem:[%s6383_s8 + $0x18] sm:$0xff] }
 0xe2a   :  { %1831 = vmatpush1.msra.mxu1 %v1705_v17  ;;  %v6478_v17 = vld [vmem:[%s6383_s8 + $0x8] sm:$0xff] }
 0xe2b   :  { %1832 = vmatprep.subr.mxu1 %v1702_v20  ;;  %v1690_v20 = vld [vmem:[%s5029_s12] sm:$0x3]  ;;  %s5040_s12 = sld [smem:[%s7363_s0 + %s5877_s9]]  }
 0xe2c   :  { %1833 = vmatpush1.msra.mxu1 %v1701_v40 }
 0xee1   :  { %v1588_v43 = vpop.f32.mrf.mxu1 }
 0xee2   :  { %v1595_v44 = vrot.slane %v1588_v43, 2  ;;  %v1698_v43 = vld [vmem:[%s6355_s4 + $0x38] sm:$0xff] }
 0xee3   :  { %v1590_v47 = vpop.f32.mrf.mxu1  ;;  %1834 = vmatprep.subr.mxu1 %v1698_v43 }
 0xee4   :  { %v1599_v45 = vadd.f32 %v1595_v44, %v6161_v35  ;;  %v1596_v48 = vrot.slane %v1590_v47, 2  ;;  %v1720_v35 = vld [vmem:[%s6355_s4 + $0xe8] sm:$0xff]  ;;  %v1694_v47 = vld [vmem:[%s6355_s4 + $0x18] sm:$0xff] }
 0xee5   :  { %1745 = vmatprep.subr.mxu0 %v1720_v35  ;;  %v1692_v44 = vld [vmem:[%s6355_s4 + $0x8] sm:$0xff]  ;;  %v1641_v35 = vrot.slane %v6301_v24, 2  ;;  %v6414_v24 = vld [vmem:[%s6383_s8 + $0x70] sm:$0xff] }
 0xee6   :  { %v5088_v46 = vmul.f32 -1.442695, %v1599_v45  ;;  %v1600_v49 = vadd.f32 %v1596_v48, %v6163_v54  ;;  %v1719_v54 = vld [vmem:[%s6355_s4 + $0xe0] sm:$0xff]  ;;  %v1697_v45 = vld [vmem:[%s6355_s4 + $0x30] sm:$0xff] }
 0xee7   :  { %1746 = vmatpush1.msra.mxu0 %v1719_v54  ;;  %1835 = vmatpush1.msra.mxu1 %v1697_v45  ;;  %v1693_v48 = vld [vmem:[%s6355_s4 + $0x10] sm:$0xff] }
 0xee8   :  { %5619 = vpow2.f32 %v5088_v46  ;;  %1747 = vmatprep.subr.mxu0 %v1716_v12  ;;  %v5089_v37 = vmul.f32 -1.442695, %v1600_v49  ;;  %v1691_v46 = vld [vmem:[%s6355_s4] sm:$0xff]  ;;  %1836 = vmatprep.subr.mxu1 %v1694_v47  ;;  %s5868_s4 = smov 18  }
 0xee9   :  { %5621 = vtanh.f32 %v1600_v49  ;;  %1748 = vmatpush1.msra.mxu0 %v1715_v31  ;;  %v6395_v49 = vld [vmem:[%s6383_s8 + $0x78] sm:$0xff]  ;;  %1837 = vmatpush1.msra.mxu1 %v1693_v48  ;;  %s7030_s7 = sld [smem:[%s7363_s0 + %s5868_s4]]   ;;  %s5884_s4 = smov 28  }
 0xeea   :  { %1749 = vmatprep.subr.mxu0 %v1712_v23  ;;  %2028 = vmatprep.subr.mxu1 %v6395_v49 }
 0xeeb   :  { %1750 = vmatpush1.msra.mxu0 %v1711_v36  ;;  %v6433_v36 = vld [vmem:[%s6383_s8 + $0x50] sm:$0xff] }
 0xeec   :  { %1751 = vmatprep.subr.mxu0 %v1708_v55  ;;  %v6438_v55 = vld [vmem:[%s6383_s8 + $0x48] sm:$0xff] }
 0xeed   :  { %1752 = vmatpush1.msra.mxu0 %v1707_v4  ;;  %v6453_v4 = vld [vmem:[%s6383_s8 + $0x30] sm:$0xff] }
 0xeee   :  { %1753 = vmatprep.subr.mxu0 %v1704_v9  ;;  %v6463_v9 = vld [vmem:[%s6383_s8 + $0x20] sm:$0xff] }
 0xeef   :  { %1754 = vmatpush1.msra.mxu0 %v1703_v15  ;;  %v6473_v15 = vld [vmem:[%s6383_s8 + $0x10] sm:$0xff] }
 0xef0   :  { %1755 = vmatprep.subr.mxu0 %v1700_v19  ;;  %v6483_v19 = vld [vmem:[%s6383_s8] sm:$0xff] }
 0xef1   :  { %1756 = vmatpush1.msra.mxu0 %v1699_v59 }
 0xef2   :  { %1757 = vmatprep.subr.mxu0 %v1696_v39 }
 0xef3   :  { %1758 = vmatpush1.msra.mxu0 %v1695_v42  ;;  %v1891_v42 = vrot.slane %v1690_v20, %v6131_v22 }
 0xef4   :  { %1759 = vmatprep.subr.mxu0 %v1692_v44 }
 0xef5   :  { %v5620_v50 = vpop.eup %5619  ;;  %1760 = vmatpush1.msra.mxu0 %v1691_v46 }
 0xef6   :  { %v1604_v51 = vadd.f32 1.0, %v5620_v50  ;;  %v5622_v29 = vpop.eup %5621  ;;  %1922 = vmatprep.subr.mxu0 %v6395_v49 }
 0xef8   :  { %5623 = vrcp.f32 %v1604_v51 }
 0xef9   :  { %5625 = vpow2.f32 %v5089_v37 }
 0xf05   :  { %v5624_v11 = vpop.eup %5623 }
 0xf06   :  { %v1618_v25 = vmul.f32 %v5624_v11, %v5622_v29  ;;  %v1617_v28 = vmul.f32 %v5624_v11, %v1615_v52  ;;  %v5626_v56 = vpop.eup %5625 }
 0xf07   :  { %v1611_v21 = vadd.f32 1.0, %v5626_v56  ;;  %v1887_v56 = vrot.slane %v1690_v20, %v6125_v18 }
 0xf08   :  { %1620 = vrot.lane.b32.xlu0 %v1618_v25, %s5858_s30  ;;  %v1637_v25 = vrot.slane %v6334_v38, 2 }
 0xf09   :  { %5627 = vrcp.f32 %v1611_v21 }
 0xf16   :  { %v5628_v50 = vpop.eup %5627 }
 0xf7a   :  { %v1621_v60 = vpop.permute.xlu0 %1620 }
 0xf7b   :  { %v1623_v7 = vadd.f32 %v1621_v60, %v1617_v28  ;;  %v1639_v28 = vrot.slane %v6325_v26, 6  ;;  %v1659_v26 = vpop.permute.xlu1 %1658 }
 0xf7d   :  { %5629 = vtanh.f32 %v1623_v7 }
 0xf8a   :  { %v5630_v51 = vpop.eup %5629 }
 0xf8b   :  { %v1625_v29 = vmul.f32 %v5630_v51, %v5628_v50 }
 0xf8d   :  { %v1633_v52 = vsel %vm1629_vm5, %v6342_v41, %v1625_v29  ;;  %v1635_v11 = vrot.slane %v1625_v29, 6  ;;  %v1648_v41 = vrot.slane %v6194_v34, 2  ;;  %v6423_v34 = vld [vmem:[%s6383_s8 + $0x60] sm:$0xff] }
 0xf8e   :  { %1660 = vrot.lane.b32.xlu1 %v1633_v52, %s5858_s30 }
 0xf8f   :  { %v1650_v54 = vsel %vm1626_vm4, %v1635_v11, %v1637_v25  ;;  %v1655_v38 = vsel %vm1629_vm5, %v6279_v33, %v1648_v41  ;;  %v6428_v33 = vld [vmem:[%s6383_s8 + $0x58] sm:$0xff]  ;;  %s5039_s8 = sld [smem:[%s7363_s0 + %s5876_s6]]  }
 0xf90   :  { %v1651_v16 = vsel %vm432_vm0, %v1650_v54, %v1639_v28 }
 0xf91   :  { %v1652_v12 = vsel %vm1629_vm5, %v1651_v16, %v1641_v35 }
 0xf92   :  { %1666 = vrot.lane.b32.xlu0 %v1652_v12, %s5858_s30 }
 0xf96   :  { %1668 = vrot.lane.b32.xlu0 %v1655_v38, %s5858_s30 }
0x1000   :  { %v1661_v23 = vpop.permute.xlu1 %1660 }
0x1004   :  { %v1667_v13 = vpop.permute.xlu0 %1666 }
0x1005   :  { %v1672_v31 = vsel %vm561_vm1, %v1659_v26, %v1667_v13 }
0x1006   :  { %5090 = vmatmul.mubr.msk.f32.vlgmr.msra.gmra.mxu0 %vm745_vm3, %v1672_v31  ;;  %5092 = vmatmul.mubr.msk.f32.vlgmr.msra.gmra.mxu1 %vm745_vm3, %v1672_v31 }
0x1007   :  { %1923 = vmatpush1.msra.mxu0 %v6414_v24  ;;  %1799 = vmatprep.mubr.f32.mxu0 %v5855_v27 }
0x1008   :  { %1924 = vmatprep.subr.mxu0 %v6418_v32  ;;  %v1669_v30 = vpop.permute.xlu0 %1668  ;;  %1876 = vmatprep.mubr.f32.mxu1 %v5855_v27 }
0x1009   :  { %1925 = vmatpush1.msra.mxu0 %v6423_v34  ;;  %v1673_v53 = vsel %vm561_vm1, %v1661_v23, %v1669_v30  ;;  %2029 = vmatpush1.msra.mxu1 %v6414_v24 }
0x100a   :  { %1926 = vmatprep.subr.mxu0 %v6428_v33  ;;  %5091 = vmatmul.mubr.msk.f32.gmra.mxu0 %vm745_vm3, %v1673_v53 }
0x100b   :  { %5093 = vmatmul.mubr.msk.f32.gmra.mxu1 %vm745_vm3, %v1673_v53  ;;  %1927 = vmatpush1.msra.mxu0 %v6433_v36 }
0x100c   :  { %1928 = vmatprep.subr.mxu0 %v6438_v55  ;;  %1970 = vmatprep.mubr.f32.mxu0 %v5855_v27 }
0x100d   :  { %1929 = vmatpush1.msra.mxu0 %v6444_v57  ;;  %2030 = vmatprep.subr.mxu1 %v6418_v32 }
0x100e   :  { %1930 = vmatprep.subr.mxu0 %v6449_v58  ;;  %2031 = vmatpush1.msra.mxu1 %v6423_v34 }
0x100f   :  { %1931 = vmatpush1.msra.mxu0 %v6453_v4  ;;  %2032 = vmatprep.subr.mxu1 %v6428_v33 }
0x1010   :  { %1932 = vmatprep.subr.mxu0 %v6458_v8  ;;  %2033 = vmatpush1.msra.mxu1 %v6433_v36 }
0x1011   :  { %1933 = vmatpush1.msra.mxu0 %v6463_v9  ;;  %2034 = vmatprep.subr.mxu1 %v6438_v55 }
0x1012   :  { %1934 = vmatprep.subr.mxu0 %v6468_v14  ;;  %2035 = vmatpush1.msra.mxu1 %v6444_v57 }
0x1013   :  { %1935 = vmatpush1.msra.mxu0 %v6473_v15  ;;  %2036 = vmatprep.subr.mxu1 %v6449_v58 }
0x1014   :  { %1936 = vmatprep.subr.mxu0 %v6478_v17  ;;  %2037 = vmatpush1.msra.mxu1 %v6453_v4 }
0x1015   :  { %1937 = vmatpush1.msra.mxu0 %v6483_v19  ;;  %2038 = vmatprep.subr.mxu1 %v6458_v8 }
0x1016   :  { %1971 = vmatmul.mubr.f32.vlgmr.msra.gmra.mxu0 %v5855_v27  ;;  %2039 = vmatpush1.msra.mxu1 %v6463_v9 }
0x1017   :  { %2040 = vmatprep.subr.mxu1 %v6468_v14  ;;  %2076 = vmatprep.mubr.f32.mxu1 %v5855_v27 }
0x1018   :  { %2041 = vmatpush1.msra.mxu1 %v6473_v15  ;;  %2138 = vmatprep.subr.mxu0 %v6395_v49 }
0x1019   :  { %2042 = vmatprep.subr.mxu1 %v6478_v17  ;;  %2139 = vmatpush1.msra.mxu0 %v6414_v24 }
0x101a   :  { %2043 = vmatpush1.msra.mxu1 %v6483_v19  ;;  %2140 = vmatprep.subr.mxu0 %v6418_v32 }
0x101b   :  { %2141 = vmatpush1.msra.mxu0 %v6423_v34  ;;  %2186 = vmatprep.mubr.f32.mxu0 %v5855_v27 }
0x101c   :  { %2142 = vmatprep.subr.mxu0 %v6428_v33  ;;  %2248 = vmatprep.subr.mxu1 %v6395_v49 }
0x101d   :  { %2143 = vmatpush1.msra.mxu0 %v6433_v36 }
0x101e   :  { %2144 = vmatprep.subr.mxu0 %v6438_v55 }
0x101f   :  { %2145 = vmatpush1.msra.mxu0 %v6444_v57 }
0x1020   :  { %2146 = vmatprep.subr.mxu0 %v6449_v58 }
0x1021   :  { %2147 = vmatpush1.msra.mxu0 %v6453_v4 }
0x1022   :  { %2148 = vmatprep.subr.mxu0 %v6458_v8 }
0x1023   :  { %2149 = vmatpush1.msra.mxu0 %v6463_v9 }
0x1024   :  { %2150 = vmatprep.subr.mxu0 %v6468_v14 }
0x1025   :  { %2151 = vmatpush1.msra.mxu0 %v6473_v15 }
0x1026   :  { %2152 = vmatprep.subr.mxu0 %v6478_v17 }
0x1027   :  { %2153 = vmatpush1.msra.mxu0 %v6483_v19 }
0x1028   :  { %2366 = vmatprep.subr.mxu0 %v6395_v49 }
0x10c6   :  { %v1795_v59 = vpop.f32.mrf.mxu0  ;;  %v1872_v37 = vpop.f32.mrf.mxu1 }
0x10c7   :  { %v2338_v39 = vrot.slane %v1872_v37, 6  ;;  %v2448_v40 = vrot.slane %v1872_v37, 2  ;;  %v1894_v45 = vadd.f32 %v1887_v56, %v1795_v59 }
0x10c8   :  { %v1797_v21 = vpop.f32.mrf.mxu0  ;;  %v1874_v60 = vpop.f32.mrf.mxu1 }
0x10c9   :  { %v2339_v46 = vrot.slane %v1874_v60, 6  ;;  %v2449_v50 = vrot.slane %v1874_v60, 2  ;;  %v1895_v13 = vadd.f32 %v1891_v42, %v1797_v21 }
0x10ca   :  { %v1801_v7 = vpop.f32.mrf.mxu0 }
0x10cb   :  { %v1896_v43 = vadd.f32 %v1887_v56, %v1801_v7  ;;  %v1878_v44 = vpop.f32.mrf.mxu1 }
0x10cc   :  { %v2001_v47 = vrot.slane %v1878_v44, 2  ;;  %v1803_v48 = vpop.f32.mrf.mxu0  ;;  %v1900_v35 = vrot.slane %v1878_v44, 6 }
0x10cd   :  { %v6523_v51 = vadd.f32 %v2448_v40, %v1896_v43  ;;  %v1897_v29 = vadd.f32 %v1891_v42, %v1803_v48  ;;  %v6525_v52 = vadd.f32 %v2338_v39, %v1896_v43  ;;  %v1880_v38 = vpop.f32.mrf.mxu1 }
0x10ce   :  { %v6527_v11 = vadd.f32 %v2001_v47, %v1894_v45  ;;  %v6533_v54 = vadd.f32 %v1900_v35, %v1894_v45  ;;  %v1901_v26 = vrot.slane %v1880_v38, 6 }
0x10cf   :  { %v6529_v25 = vadd.f32 %v2449_v50, %v1897_v29  ;;  %v6531_v28 = vadd.f32 %v2339_v46, %v1897_v29 }
0x10d0   :  { %v6536_v23 = vadd.f32 %v1901_v26, %v1895_v13 }
0x10d6   :  { %v1972_v16 = vpop.f32.mrf.mxu0 }
0x10d7   :  { %v1977_v12 = vadd.f32 %v1972_v16, %v6533_v54  ;;  %v2002_v16 = vrot.slane %v1880_v38, 2 }
0x10d8   :  { %v1974_v31 = vpop.f32.mrf.mxu0 }
0x10d9   :  { %v5094_v41 = vmul.f32 -1.442695, %v1977_v12  ;;  %v1978_v30 = vadd.f32 %v1974_v31, %v6536_v23 }
0x10db   :  { %5631 = vpow2.f32 %v5094_v41  ;;  %v5095_v60 = vmul.f32 -1.442695, %v1978_v30  ;;  %v6563_v41 = vadd.f32 %v2002_v16, %v1895_v13 }
0x10dc   :  { %5633 = vtanh.f32 %v1978_v30 }
0x10e8   :  { %v5632_v53 = vpop.eup %5631 }
0x10e9   :  { %v1982_v20 = vadd.f32 1.0, %v5632_v53  ;;  %v5634_v59 = vpop.eup %5633 }
0x10eb   :  { %5635 = vrcp.f32 %v1982_v20 }
0x10ec   :  { %5637 = vpow2.f32 %v5095_v60 }
0x10f8   :  { %v5636_v37 = vpop.eup %5635 }
0x10f9   :  { %v1993_v56 = vmul.f32 %v5636_v37, %v5634_v59  ;;  %v5638_v7 = vpop.eup %5637  ;;  %v1992_v40 = vmul.f32 0.0, %v5636_v37 }
0x10fa   :  { %v1989_v39 = vadd.f32 1.0, %v5638_v7 }
0x10fb   :  { %1995 = vrot.lane.b32.xlu1 %v1993_v56, %s5858_s30 }
0x10fc   :  { %5639 = vrcp.f32 %v1989_v39 }
0x1109   :  { %v5640_v43 = vpop.eup %5639 }
0x116d   :  { %v1996_v21 = vpop.permute.xlu1 %1995 }
0x116e   :  { %v1998_v42 = vadd.f32 %v1996_v21, %v1992_v40 }
0x1170   :  { %5641 = vtanh.f32 %v1998_v42  ;;  %v2105_v20 = vrot.slane %v1998_v42, 6 }
0x117d   :  { %v5642_v44 = vpop.eup %5641 }
0x117e   :  { %v6540_v45 = vmul.f32 %v5642_v44, %v5640_v43 }
0x1180   :  { %2008 = vrot.lane.b32.xlu0 %v6540_v45, %s5858_s30 }
0x11f2   :  { %v2009_v46 = vpop.permute.xlu0 %2008 }
0x11f3   :  { %5096 = vmatmul.mubr.msk.f32.vlgmr.msra.gmra.mxu1 %vm745_vm3, %v2009_v46 }
0x11f4   :  { %2249 = vmatpush1.msra.mxu1 %v6414_v24  ;;  %2296 = vmatprep.mubr.f32.mxu1 %v5855_v27 }
0x11f5   :  { %2250 = vmatprep.subr.mxu1 %v6418_v32 }
0x11f6   :  { %2251 = vmatpush1.msra.mxu1 %v6423_v34 }
0x11f7   :  { %2252 = vmatprep.subr.mxu1 %v6428_v33 }
0x11f8   :  { %2253 = vmatpush1.msra.mxu1 %v6433_v36 }
0x11f9   :  { %2254 = vmatprep.subr.mxu1 %v6438_v55 }
0x11fa   :  { %2255 = vmatpush1.msra.mxu1 %v6444_v57 }
0x11fb   :  { %2256 = vmatprep.subr.mxu1 %v6449_v58 }
0x11fc   :  { %2257 = vmatpush1.msra.mxu1 %v6453_v4 }
0x11fd   :  { %2258 = vmatprep.subr.mxu1 %v6458_v8 }
0x11fe   :  { %2259 = vmatpush1.msra.mxu1 %v6463_v9 }
0x11ff   :  { %2260 = vmatprep.subr.mxu1 %v6468_v14 }
0x1200   :  { %2261 = vmatpush1.msra.mxu1 %v6473_v15 }
0x1201   :  { %2262 = vmatprep.subr.mxu1 %v6478_v17 }
0x1202   :  { %2263 = vmatpush1.msra.mxu1 %v6483_v19 }
0x1203   :  { %2475 = vmatprep.subr.mxu1 %v6395_v49 }
0x12b3   :  { %v2078_v47 = vpop.f32.mrf.mxu1 }
0x12b4   :  { %v2085_v48 = vrot.slane %v2078_v47, 6 }
0x12b5   :  { %v2080_v35 = vpop.f32.mrf.mxu1 }
0x12b6   :  { %v2089_v50 = vadd.f32 %v2085_v48, %v6527_v11  ;;  %v2086_v12 = vrot.slane %v2080_v35, 6 }
0x12b8   :  { %v5097_v29 = vmul.f32 -1.442695, %v2089_v50  ;;  %v2090_v26 = vadd.f32 %v2086_v12, %v6563_v41 }
0x12ba   :  { %5643 = vpow2.f32 %v5097_v29  ;;  %v5098_v60 = vmul.f32 -1.442695, %v2090_v26 }
0x12bb   :  { %5645 = vtanh.f32 %v2090_v26 }
0x12c7   :  { %v5644_v31 = vpop.eup %5643 }
0x12c8   :  { %v2094_v30 = vadd.f32 1.0, %v5644_v31  ;;  %v5646_v53 = vpop.eup %5645 }
0x12ca   :  { %5647 = vrcp.f32 %v2094_v30 }
0x12cb   :  { %5649 = vpow2.f32 %v5098_v60 }
0x12d7   :  { %v5648_v59 = vpop.eup %5647 }
0x12d8   :  { %v2108_v37 = vmul.f32 %v5648_v59, %v5646_v53  ;;  %v2107_v56 = vmul.f32 %v5648_v59, %v2105_v20  ;;  %v5650_v7 = vpop.eup %5649 }
0x12d9   :  { %v2101_v38 = vadd.f32 1.0, %v5650_v7 }
0x12da   :  { %2110 = vrot.lane.b32.xlu1 %v2108_v37, %s5858_s30 }
0x12db   :  { %5651 = vrcp.f32 %v2101_v38 }
0x12e8   :  { %v5652_v40 = vpop.eup %5651 }
0x134c   :  { %v2111_v39 = vpop.permute.xlu1 %2110 }
0x134d   :  { %v2113_v13 = vadd.f32 %v2111_v39, %v2107_v56 }
0x134f   :  { %5653 = vtanh.f32 %v2113_v13  ;;  %v2215_v30 = vrot.slane %v2113_v13, 6 }
0x135c   :  { %v5654_v21 = vpop.eup %5653 }
0x135d   :  { %v6567_v43 = vmul.f32 %v5654_v21, %v5652_v40 }
0x135f   :  { %v2117_v44 = vrot.slane %v6567_v43, 2  ;;  %v2783_v13 = vsel %vm1626_vm4, %v6540_v45, %v6567_v43 }
0x1361   :  { %2118 = vrot.lane.b32.xlu0 %v2117_v44, %s5858_s30 }
0x13d3   :  { %v2119_v42 = vpop.permute.xlu0 %2118 }
0x13d4   :  { %5099 = vmatmul.mubr.msk.f32.vlgmr.msra.gmra.mxu0 %vm745_vm3, %v2119_v42 }
0x13d5   :  { %2367 = vmatpush1.msra.mxu0 %v6414_v24  ;;  %2414 = vmatprep.mubr.f32.mxu0 %v5855_v27 }
0x13d6   :  { %2368 = vmatprep.subr.mxu0 %v6418_v32 }
0x13d7   :  { %2369 = vmatpush1.msra.mxu0 %v6423_v34 }
0x13d8   :  { %2370 = vmatprep.subr.mxu0 %v6428_v33 }
0x13d9   :  { %2371 = vmatpush1.msra.mxu0 %v6433_v36 }
0x13da   :  { %2372 = vmatprep.subr.mxu0 %v6438_v55 }
0x13db   :  { %2373 = vmatpush1.msra.mxu0 %v6444_v57 }
0x13dc   :  { %2374 = vmatprep.subr.mxu0 %v6449_v58 }
0x13dd   :  { %2375 = vmatpush1.msra.mxu0 %v6453_v4 }
0x13de   :  { %2376 = vmatprep.subr.mxu0 %v6458_v8 }
0x13df   :  { %2377 = vmatpush1.msra.mxu0 %v6463_v9 }
0x13e0   :  { %2378 = vmatprep.subr.mxu0 %v6468_v14 }
0x13e1   :  { %2379 = vmatpush1.msra.mxu0 %v6473_v15 }
0x13e2   :  { %2380 = vmatprep.subr.mxu0 %v6478_v17 }
0x13e3   :  { %2381 = vmatpush1.msra.mxu0 %v6483_v19 }
0x13e4   :  { %2585 = vmatprep.subr.mxu0 %v6395_v49 }
0x1494   :  { %v2188_v46 = vpop.f32.mrf.mxu0 }
0x1495   :  { %v2195_v47 = vrot.slane %v2188_v46, 4 }
0x1496   :  { %v2190_v29 = vpop.f32.mrf.mxu0 }
0x1497   :  { %v2199_v48 = vadd.f32 %v2195_v47, %v6533_v54  ;;  %v2196_v35 = vrot.slane %v2190_v29, 4 }
0x1499   :  { %v5100_v50 = vmul.f32 -1.442695, %v2199_v48  ;;  %v2200_v16 = vadd.f32 %v2196_v35, %v6536_v23 }
0x149b   :  { %5655 = vpow2.f32 %v5100_v50  ;;  %v5101_v37 = vmul.f32 -1.442695, %v2200_v16 }
0x149c   :  { %5657 = vtanh.f32 %v2200_v16 }
0x14a8   :  { %v5656_v12 = vpop.eup %5655 }
0x14a9   :  { %v2204_v26 = vadd.f32 1.0, %v5656_v12  ;;  %v5658_v31 = vpop.eup %5657 }
0x14ab   :  { %5659 = vrcp.f32 %v2204_v26 }
0x14ac   :  { %5661 = vpow2.f32 %v5101_v37 }
0x14b8   :  { %v5660_v53 = vpop.eup %5659 }
0x14b9   :  { %v2218_v20 = vmul.f32 %v5660_v53, %v5658_v31  ;;  %v2217_v59 = vmul.f32 %v5660_v53, %v2215_v30  ;;  %v5662_v54 = vpop.eup %5661 }
0x14ba   :  { %v2211_v56 = vadd.f32 1.0, %v5662_v54 }
0x14bb   :  { %2220 = vrot.lane.b32.xlu1 %v2218_v20, %s5858_s30 }
0x14bc   :  { %5663 = vrcp.f32 %v2211_v56 }
0x14c9   :  { %v5664_v23 = vpop.eup %5663 }
0x152d   :  { %v2221_v60 = vpop.permute.xlu1 %2220 }
0x152e   :  { %v2223_v7 = vadd.f32 %v2221_v60, %v2217_v59 }
0x1530   :  { %5665 = vtanh.f32 %v2223_v7  ;;  %v2325_v31 = vrot.slane %v2223_v7, 6 }
0x153d   :  { %v5666_v38 = vpop.eup %5665 }
0x153e   :  { %v2225_v39 = vmul.f32 %v5666_v38, %v5664_v23 }
0x1540   :  { %v2227_v40 = vrot.slane %v2225_v39, 4  ;;  %v2784_v21 = vsel %vm432_vm0, %v2783_v13, %v2225_v39  ;;  %v2799_v7 = vrot.slane %v2225_v39, 2  ;;  %v2801_v13 = vrot.slane %v6567_v43, 6 }
0x1542   :  { %2228 = vrot.lane.b32.xlu0 %v2227_v40, %s5858_s30 }
0x15b4   :  { %v2229_v44 = vpop.permute.xlu0 %2228 }
0x15b5   :  { %5102 = vmatmul.mubr.msk.f32.vlgmr.msra.gmra.mxu1 %vm745_vm3, %v2229_v44 }
0x15b6   :  { %2476 = vmatpush1.msra.mxu1 %v6414_v24  ;;  %2523 = vmatprep.mubr.f32.mxu1 %v5855_v27 }
0x15b7   :  { %2477 = vmatprep.subr.mxu1 %v6418_v32 }
0x15b8   :  { %2478 = vmatpush1.msra.mxu1 %v6423_v34 }
0x15b9   :  { %2479 = vmatprep.subr.mxu1 %v6428_v33 }
0x15ba   :  { %2480 = vmatpush1.msra.mxu1 %v6433_v36 }
0x15bb   :  { %2481 = vmatprep.subr.mxu1 %v6438_v55 }
0x15bc   :  { %2482 = vmatpush1.msra.mxu1 %v6444_v57 }
0x15bd   :  { %2483 = vmatprep.subr.mxu1 %v6449_v58 }
0x15be   :  { %2484 = vmatpush1.msra.mxu1 %v6453_v4 }
0x15bf   :  { %2485 = vmatprep.subr.mxu1 %v6458_v8 }
0x15c0   :  { %2486 = vmatpush1.msra.mxu1 %v6463_v9 }
0x15c1   :  { %2487 = vmatprep.subr.mxu1 %v6468_v14 }
0x15c2   :  { %2488 = vmatpush1.msra.mxu1 %v6473_v15 }
0x15c3   :  { %2489 = vmatprep.subr.mxu1 %v6478_v17 }
0x15c4   :  { %2490 = vmatpush1.msra.mxu1 %v6483_v19 }
0x15c5   :  { %2695 = vmatprep.subr.mxu1 %v6395_v49 }
0x1675   :  { %v2298_v42 = vpop.f32.mrf.mxu1 }
0x1676   :  { %v2305_v46 = vrot.slane %v2298_v42, 2 }
0x1677   :  { %v2300_v50 = vpop.f32.mrf.mxu1 }
0x1678   :  { %v2309_v47 = vadd.f32 %v2305_v46, %v6527_v11  ;;  %v2306_v29 = vrot.slane %v2300_v50, 2 }
0x167a   :  { %v5103_v48 = vmul.f32 -1.442695, %v2309_v47  ;;  %v2310_v35 = vadd.f32 %v2306_v29, %v6563_v41 }
0x167c   :  { %5667 = vpow2.f32 %v5103_v48  ;;  %v5104_v49 = vmul.f32 -1.442695, %v2310_v35 }
0x167d   :  { %5669 = vtanh.f32 %v2310_v35 }
0x1689   :  { %v5668_v16 = vpop.eup %5667 }
0x168a   :  { %v2314_v12 = vadd.f32 1.0, %v5668_v16  ;;  %v5670_v26 = vpop.eup %5669 }
0x168c   :  { %5671 = vrcp.f32 %v2314_v12 }
0x168d   :  { %5673 = vpow2.f32 %v5104_v49 }
0x1699   :  { %v5672_v30 = vpop.eup %5671 }
0x169a   :  { %v2328_v53 = vmul.f32 %v5672_v30, %v5670_v26  ;;  %v2327_v20 = vmul.f32 %v5672_v30, %v2325_v31  ;;  %v5674_v11 = vpop.eup %5673 }
0x169b   :  { %v2321_v59 = vadd.f32 1.0, %v5674_v11 }
0x169c   :  { %2330 = vrot.lane.b32.xlu1 %v2328_v53, %s5858_s30 }
0x169d   :  { %5675 = vrcp.f32 %v2321_v59 }
0x16aa   :  { %v5676_v41 = vpop.eup %5675 }
0x170e   :  { %v2331_v37 = vpop.permute.xlu1 %2330 }
0x170f   :  { %v2333_v54 = vadd.f32 %v2331_v37, %v2327_v20 }
0x1711   :  { %5677 = vtanh.f32 %v2333_v54  ;;  %v2437_v35 = vrot.slane %v2333_v54, 6 }
0x171e   :  { %v5678_v56 = vpop.eup %5677 }
0x171f   :  { %v2335_v60 = vmul.f32 %v5678_v56, %v5676_v41 }
0x1721   :  { %v2345_v23 = vrot.slane %v2335_v60, 6  ;;  %v6619_v38 = vsel %vm1629_vm5, %v2784_v21, %v2335_v60 }
0x1723   :  { %2346 = vrot.lane.b32.xlu0 %v2345_v23, %s5858_s30  ;;  %v2808_v40 = vsel %vm1626_vm4, %v2345_v23, %v2799_v7 }
0x1724   :  { %v6625_v44 = vsel %vm432_vm0, %v2808_v40, %v2801_v13 }
0x1795   :  { %v2347_v42 = vpop.permute.xlu0 %2346 }
0x1796   :  { %5105 = vmatmul.mubr.msk.f32.vlgmr.msra.gmra.mxu0 %vm745_vm3, %v2347_v42 }
0x1797   :  { %2586 = vmatpush1.msra.mxu0 %v6414_v24  ;;  %2633 = vmatprep.mubr.f32.mxu0 %v5855_v27 }
0x1798   :  { %2587 = vmatprep.subr.mxu0 %v6418_v32 }
0x1799   :  { %2588 = vmatpush1.msra.mxu0 %v6423_v34 }
0x179a   :  { %2589 = vmatprep.subr.mxu0 %v6428_v33 }
0x179b   :  { %2590 = vmatpush1.msra.mxu0 %v6433_v36 }
0x179c   :  { %2591 = vmatprep.subr.mxu0 %v6438_v55 }
0x179d   :  { %2592 = vmatpush1.msra.mxu0 %v6444_v57 }
0x179e   :  { %2593 = vmatprep.subr.mxu0 %v6449_v58 }
0x179f   :  { %2594 = vmatpush1.msra.mxu0 %v6453_v4 }
0x17a0   :  { %2595 = vmatprep.subr.mxu0 %v6458_v8 }
0x17a1   :  { %2596 = vmatpush1.msra.mxu0 %v6463_v9 }
0x17a2   :  { %2597 = vmatprep.subr.mxu0 %v6468_v14 }
0x17a3   :  { %2598 = vmatpush1.msra.mxu0 %v6473_v15 }
0x17a4   :  { %2599 = vmatprep.subr.mxu0 %v6478_v17 }
0x17a5   :  { %2600 = vmatpush1.msra.mxu0 %v6483_v19 }
0x1856   :  { %v2416_v43 = vpop.f32.mrf.mxu0 }
0x1857   :  { %v2421_v39 = vadd.f32 %v2416_v43, %v6525_v52 }
0x1858   :  { %v2418_v46 = vpop.f32.mrf.mxu0 }
0x1859   :  { %v5106_v21 = vmul.f32 -1.442695, %v2421_v39  ;;  %v2422_v47 = vadd.f32 %v2418_v46, %v6531_v28 }
0x185b   :  { %5679 = vpow2.f32 %v5106_v21  ;;  %v5107_v31 = vmul.f32 -1.442695, %v2422_v47 }
0x185c   :  { %5681 = vtanh.f32 %v2422_v47 }
0x1868   :  { %v5680_v48 = vpop.eup %5679 }
0x1869   :  { %v2426_v50 = vadd.f32 1.0, %v5680_v48  ;;  %v5682_v29 = vpop.eup %5681 }
0x186b   :  { %5683 = vrcp.f32 %v2426_v50 }
0x186c   :  { %5685 = vpow2.f32 %v5107_v31 }
0x1878   :  { %v5684_v16 = vpop.eup %5683 }
0x1879   :  { %v2440_v12 = vmul.f32 %v5684_v16, %v5682_v29  ;;  %v2439_v26 = vmul.f32 %v5684_v16, %v2437_v35  ;;  %v5686_v30 = vpop.eup %5685 }
0x187a   :  { %v2433_v53 = vadd.f32 1.0, %v5686_v30 }
0x187b   :  { %2442 = vrot.lane.b32.xlu1 %v2440_v12, %s5858_s30 }
0x187c   :  { %5687 = vrcp.f32 %v2433_v53 }
0x1889   :  { %v5688_v11 = vpop.eup %5687 }
0x18ed   :  { %v2443_v20 = vpop.permute.xlu1 %2442 }
0x18ee   :  { %v2445_v49 = vadd.f32 %v2443_v20, %v2439_v26 }
0x18f0   :  { %5689 = vtanh.f32 %v2445_v49 }
0x18fd   :  { %v5690_v59 = vpop.eup %5689 }
0x18fe   :  { %v6647_v37 = vmul.f32 %v5690_v59, %v5688_v11 }
0x1900   :  { %2455 = vrot.lane.b32.xlu0 %v6647_v37, %s5858_s30 }
0x1972   :  { %v2456_v54 = vpop.permute.xlu0 %2455 }
0x1973   :  { %5108 = vmatmul.mubr.msk.f32.vlgmr.msra.gmra.mxu1 %vm745_vm3, %v2456_v54 }
0x1974   :  { %2696 = vmatpush1.msra.mxu1 %v6414_v24  ;;  %2743 = vmatprep.mubr.f32.mxu1 %v5855_v27 }
0x1975   :  { %2697 = vmatprep.subr.mxu1 %v6418_v32 }
0x1976   :  { %2698 = vmatpush1.msra.mxu1 %v6423_v34 }
0x1977   :  { %2699 = vmatprep.subr.mxu1 %v6428_v33 }
0x1978   :  { %2700 = vmatpush1.msra.mxu1 %v6433_v36 }
0x1979   :  { %2701 = vmatprep.subr.mxu1 %v6438_v55 }
0x197a   :  { %2702 = vmatpush1.msra.mxu1 %v6444_v57 }
0x197b   :  { %2703 = vmatprep.subr.mxu1 %v6449_v58 }
0x197c   :  { %2704 = vmatpush1.msra.mxu1 %v6453_v4 }
0x197d   :  { %2705 = vmatprep.subr.mxu1 %v6458_v8 }
0x197e   :  { %2706 = vmatpush1.msra.mxu1 %v6463_v9  ;;  %v2552_v9 = vrot.slane %v2445_v49, 6 }
0x197f   :  { %2707 = vmatprep.subr.mxu1 %v6468_v14 }
0x1980   :  { %2708 = vmatpush1.msra.mxu1 %v6473_v15 }
0x1981   :  { %2709 = vmatprep.subr.mxu1 %v6478_v17 }
0x1982   :  { %2710 = vmatpush1.msra.mxu1 %v6483_v19 }
0x1a33   :  { %v2525_v24 = vpop.f32.mrf.mxu1 }
0x1a34   :  { %v2532_v32 = vrot.slane %v2525_v24, 6 }
0x1a35   :  { %v2527_v36 = vpop.f32.mrf.mxu1 }
0x1a36   :  { %v2536_v34 = vadd.f32 %v2532_v32, %v6523_v51  ;;  %v2533_v55 = vrot.slane %v2527_v36, 6 }
0x1a38   :  { %v5109_v33 = vmul.f32 -1.442695, %v2536_v34  ;;  %v2537_v57 = vadd.f32 %v2533_v55, %v6529_v25 }
0x1a3a   :  { %5691 = vpow2.f32 %v5109_v33  ;;  %v5110_v19 = vmul.f32 -1.442695, %v2537_v57 }
0x1a3b   :  { %5693 = vtanh.f32 %v2537_v57 }
0x1a47   :  { %v5692_v58 = vpop.eup %5691 }
0x1a48   :  { %v2541_v4 = vadd.f32 1.0, %v5692_v58  ;;  %v5694_v8 = vpop.eup %5693 }
0x1a4a   :  { %5695 = vrcp.f32 %v2541_v4 }
0x1a4b   :  { %5697 = vpow2.f32 %v5110_v19 }
0x1a57   :  { %v5696_v14 = vpop.eup %5695 }
0x1a58   :  { %v2555_v15 = vmul.f32 %v5696_v14, %v5694_v8  ;;  %v2554_v17 = vmul.f32 %v5696_v14, %v2552_v9  ;;  %v5698_v41 = vpop.eup %5697 }
0x1a59   :  { %v2548_v56 = vadd.f32 1.0, %v5698_v41 }
0x1a5a   :  { %2557 = vrot.lane.b32.xlu1 %v2555_v15, %s5858_s30 }
0x1a5b   :  { %5699 = vrcp.f32 %v2548_v56 }
0x1a68   :  { %v5700_v7 = vpop.eup %5699 }
0x1acc   :  { %v2558_v60 = vpop.permute.xlu1 %2557 }
0x1acd   :  { %v2560_v23 = vadd.f32 %v2558_v60, %v2554_v17 }
0x1acf   :  { %5701 = vtanh.f32 %v2560_v23  ;;  %v2662_v26 = vrot.slane %v2560_v23, 6  ;;  %v2877_v23 = vld [vmem:[%s6701_s16 + $0xf8] sm:$0xff] }
0x1ad0   :  { %2977 = vmatprep.subr.mxu1 %v2877_v23 }
0x1adc   :  { %v5702_v13 = vpop.eup %5701 }
0x1add   :  { %v6671_v40 = vmul.f32 %v5702_v13, %v5700_v7  ;;  %v2871_v7 = vld [vmem:[%s6701_s16 + $0xc8] sm:$0xff]  ;;  %v2876_v13 = vld [vmem:[%s6701_s16 + $0xf0] sm:$0xff] }
0x1adf   :  { %v2564_v42 = vrot.slane %v6671_v40, 2  ;;  %v2786_v32 = vsel %vm1626_vm4, %v6647_v37, %v6671_v40 }
0x1ae1   :  { %2565 = vrot.lane.b32.xlu0 %v2564_v42, %s5858_s30  ;;  %v2870_v42 = vld [vmem:[%s6701_s16 + $0xc0] sm:$0xff] }
0x1b53   :  { %v2566_v43 = vpop.permute.xlu0 %2565 }
0x1b54   :  { %5111 = vmatmul.mubr.msk.f32.vlgmr.msra.gmra.mxu0 %vm745_vm3, %v2566_v43  ;;  %v2873_v43 = vld [vmem:[%s6701_s16 + $0xd8] sm:$0xff] }
0x1b55   :  { %2948 = vmatprep.mubr.f32.mxu0 %v5855_v27 }
0x1c14   :  { %v2635_v39 = vpop.f32.mrf.mxu0 }
0x1c15   :  { %v2642_v21 = vrot.slane %v2635_v39, 4  ;;  %v2867_v39 = vld [vmem:[%s6701_s16 + $0xa8] sm:$0xff] }
0x1c16   :  { %v2637_v48 = vpop.f32.mrf.mxu0 }
0x1c17   :  { %v2646_v46 = vadd.f32 %v2642_v21, %v6525_v52  ;;  %v2643_v50 = vrot.slane %v2637_v48, 4  ;;  %v2872_v21 = vld [vmem:[%s6701_s16 + $0xd0] sm:$0xff]  ;;  %v2863_v48 = vld [vmem:[%s6701_s16 + $0x88] sm:$0xff] }
0x1c19   :  { %v5112_v47 = vmul.f32 -1.442695, %v2646_v46  ;;  %v2647_v29 = vadd.f32 %v2643_v50, %v6531_v28  ;;  %v2866_v46 = vld [vmem:[%s6701_s16 + $0xa0] sm:$0xff]  ;;  %v2868_v50 = vld [vmem:[%s6701_s16 + $0xb0] sm:$0xff] }
0x1c1b   :  { %5703 = vpow2.f32 %v5112_v47  ;;  %v5113_v20 = vmul.f32 -1.442695, %v2647_v29  ;;  %v2869_v47 = vld [vmem:[%s6701_s16 + $0xb8] sm:$0xff] }
0x1c1c   :  { %5705 = vtanh.f32 %v2647_v29  ;;  %v2865_v29 = vld [vmem:[%s6701_s16 + $0x98] sm:$0xff] }
0x1c28   :  { %v5704_v35 = vpop.eup %5703 }
0x1c29   :  { %v2651_v16 = vadd.f32 1.0, %v5704_v35  ;;  %v5706_v12 = vpop.eup %5705  ;;  %v2862_v35 = vld [vmem:[%s6701_s16 + $0x80] sm:$0xff] }
0x1c2b   :  { %5707 = vrcp.f32 %v2651_v16  ;;  %v2864_v16 = vld [vmem:[%s6701_s16 + $0x90] sm:$0xff] }
0x1c2c   :  { %5709 = vpow2.f32 %v5113_v20  ;;  %v2857_v20 = vld [vmem:[%s6701_s16 + $0x58] sm:$0xff] }
0x1c38   :  { %v5708_v31 = vpop.eup %5707 }
0x1c39   :  { %v2665_v30 = vmul.f32 %v5708_v31, %v5706_v12  ;;  %v2664_v53 = vmul.f32 %v5708_v31, %v2662_v26  ;;  %v5710_v52 = vpop.eup %5709  ;;  %v2859_v12 = vld [vmem:[%s6701_s16 + $0x68] sm:$0xff]  ;;  %v2861_v26 = vld [vmem:[%s6701_s16 + $0x78] sm:$0xff]  ;;  %v2858_v31 = vld [vmem:[%s6701_s16 + $0x60] sm:$0xff] }
0x1c3a   :  { %v2658_v49 = vadd.f32 1.0, %v5710_v52  ;;  %v2854_v52 = vld [vmem:[%s6701_s16 + $0x40] sm:$0xff] }
0x1c3b   :  { %2667 = vrot.lane.b32.xlu1 %v2665_v30, %s5858_s30  ;;  %v2860_v30 = vld [vmem:[%s6701_s16 + $0x70] sm:$0xff] }
0x1c3c   :  { %5711 = vrcp.f32 %v2658_v49 }
0x1c49   :  { %v5712_v28 = vpop.eup %5711 }
0x1cad   :  { %v2668_v11 = vpop.permute.xlu1 %2667 }
0x1cae   :  { %v2670_v59 = vadd.f32 %v2668_v11, %v2664_v53  ;;  %v2855_v53 = vld [vmem:[%s6701_s16 + $0x48] sm:$0xff] }
0x1cb0   :  { %5713 = vtanh.f32 %v2670_v59  ;;  %v2772_v19 = vrot.slane %v2670_v59, 6 }
0x1cbd   :  { %v5714_v54 = vpop.eup %5713 }
0x1cbe   :  { %v6680_v24 = vmul.f32 %v5714_v54, %v5712_v28 }
0x1cc0   :  { %v2674_v34 = vrot.slane %v6680_v24, 4  ;;  %v6688_v33 = vsel %vm432_vm0, %v2786_v32, %v6680_v24  ;;  %v2851_v32 = vld [vmem:[%s6701_s16 + $0x28] sm:$0xff] }
0x1cc2   :  { %2675 = vrot.lane.b32.xlu0 %v2674_v34, %s5858_s30  ;;  %v2856_v34 = vld [vmem:[%s6701_s16 + $0x50] sm:$0xff] }
0x1cc6   :  { %2813 = vrot.lane.b32.xlu0 %v6619_v38, %s5858_s30 }
0x1d34   :  { %v2676_v36 = vpop.permute.xlu0 %2675 }
0x1d35   :  { %5114 = vmatmul.mubr.msk.f32.vlgmr.msra.gmra.mxu1 %vm745_vm3, %v2676_v36  ;;  %v2850_v36 = vld [vmem:[%s6701_s16 + $0x20] sm:$0xff] }
0x1d36   :  { %3025 = vmatprep.mubr.f32.mxu1 %v5855_v27  ;;  %2978 = vmatpush1.msra.mxu1 %v2876_v13 }
0x1d37   :  { %2979 = vmatprep.subr.mxu1 %v2873_v43  ;;  %v6764_v43 = vld [vmem:[%s6729_s20 + $0x68] sm:$0xff] }
0x1d38   :  { %2980 = vmatpush1.msra.mxu1 %v2872_v21 }
0x1d39   :  { %2981 = vmatprep.subr.mxu1 %v2869_v47 }
0x1d3a   :  { %2982 = vmatpush1.msra.mxu1 %v2868_v50  ;;  %v6790_v50 = vld [vmem:[%s6729_s20 + $0x40] sm:$0xff] }
0x1d3b   :  { %2983 = vmatprep.subr.mxu1 %v2865_v29  ;;  %v6795_v29 = vld [vmem:[%s6729_s20 + $0x38] sm:$0xff] }
0x1d3c   :  { %2984 = vmatpush1.msra.mxu1 %v2864_v16  ;;  %v6804_v16 = vld [vmem:[%s6729_s20 + $0x28] sm:$0xff] }
0x1d3d   :  { %2985 = vmatprep.subr.mxu1 %v2861_v26  ;;  %v6814_v26 = vld [vmem:[%s6729_s20 + $0x18] sm:$0xff] }
0x1d3e   :  { %2986 = vmatpush1.msra.mxu1 %v2860_v30  ;;  %v6824_v30 = vld [vmem:[%s6729_s20 + $0x8] sm:$0xff] }
0x1d3f   :  { %2987 = vmatprep.subr.mxu1 %v2857_v20  ;;  %v2845_v20 = vld [vmem:[%s5032_s24] sm:$0x3]  ;;  %s5048_s24 = sld [smem:[%s7363_s0 + %s5881_s21]]  }
0x1d40   :  { %2988 = vmatpush1.msra.mxu1 %v2856_v34 }
0x1df5   :  { %v2745_v55 = vpop.f32.mrf.mxu1 }
0x1df6   :  { %v2752_v57 = vrot.slane %v2745_v55, 2  ;;  %v2853_v55 = vld [vmem:[%s6701_s16 + $0x38] sm:$0xff] }
0x1df7   :  { %v2747_v8 = vpop.f32.mrf.mxu1  ;;  %2989 = vmatprep.subr.mxu1 %v2853_v55 }
0x1df8   :  { %v2756_v58 = vadd.f32 %v2752_v57, %v6523_v51  ;;  %v2753_v9 = vrot.slane %v2747_v8, 2  ;;  %v2875_v51 = vld [vmem:[%s6701_s16 + $0xe8] sm:$0xff]  ;;  %v2849_v8 = vld [vmem:[%s6701_s16 + $0x18] sm:$0xff] }
0x1df9   :  { %2900 = vmatprep.subr.mxu0 %v2875_v51  ;;  %v2847_v57 = vld [vmem:[%s6701_s16 + $0x8] sm:$0xff]  ;;  %v2796_v51 = vrot.slane %v6647_v37, 2  ;;  %v6760_v37 = vld [vmem:[%s6729_s20 + $0x70] sm:$0xff] }
0x1dfa   :  { %v5115_v4 = vmul.f32 -1.442695, %v2756_v58  ;;  %v2757_v14 = vadd.f32 %v2753_v9, %v6529_v25  ;;  %v2874_v25 = vld [vmem:[%s6701_s16 + $0xe0] sm:$0xff]  ;;  %v2852_v58 = vld [vmem:[%s6701_s16 + $0x30] sm:$0xff] }
0x1dfb   :  { %2901 = vmatpush1.msra.mxu0 %v2874_v25  ;;  %2990 = vmatpush1.msra.mxu1 %v2852_v58  ;;  %v2848_v9 = vld [vmem:[%s6701_s16 + $0x10] sm:$0xff] }
0x1dfc   :  { %5715 = vpow2.f32 %v5115_v4  ;;  %2902 = vmatprep.subr.mxu0 %v2871_v7  ;;  %v5116_v49 = vmul.f32 -1.442695, %v2757_v14  ;;  %v2846_v4 = vld [vmem:[%s6701_s16] sm:$0xff]  ;;  %2991 = vmatprep.subr.mxu1 %v2849_v8  ;;  %s5044_s16 = sld [smem:[%s7363_s0 + %s5878_s13]]  }
0x1dfd   :  { %5717 = vtanh.f32 %v2757_v14  ;;  %2903 = vmatpush1.msra.mxu0 %v2870_v42  ;;  %v6741_v14 = vld [vmem:[%s6729_s20 + $0x78] sm:$0xff]  ;;  %2992 = vmatpush1.msra.mxu1 %v2848_v9 }
0x1dfe   :  { %2904 = vmatprep.subr.mxu0 %v2867_v39  ;;  %3183 = vmatprep.subr.mxu1 %v6741_v14 }
0x1dff   :  { %2905 = vmatpush1.msra.mxu0 %v2866_v46  ;;  %v6779_v46 = vld [vmem:[%s6729_s20 + $0x50] sm:$0xff] }
0x1e00   :  { %2906 = vmatprep.subr.mxu0 %v2863_v48  ;;  %v6784_v48 = vld [vmem:[%s6729_s20 + $0x48] sm:$0xff] }
0x1e01   :  { %2907 = vmatpush1.msra.mxu0 %v2862_v35  ;;  %v6799_v35 = vld [vmem:[%s6729_s20 + $0x30] sm:$0xff] }
0x1e02   :  { %2908 = vmatprep.subr.mxu0 %v2859_v12  ;;  %v6809_v12 = vld [vmem:[%s6729_s20 + $0x20] sm:$0xff] }
0x1e03   :  { %2909 = vmatpush1.msra.mxu0 %v2858_v31  ;;  %v6819_v31 = vld [vmem:[%s6729_s20 + $0x10] sm:$0xff] }
0x1e04   :  { %2910 = vmatprep.subr.mxu0 %v2855_v53  ;;  %v6829_v53 = vld [vmem:[%s6729_s20] sm:$0xff] }
0x1e05   :  { %2911 = vmatpush1.msra.mxu0 %v2854_v52 }
0x1e06   :  { %2912 = vmatprep.subr.mxu0 %v2851_v32 }
0x1e07   :  { %2913 = vmatpush1.msra.mxu0 %v2850_v36  ;;  %v3046_v36 = vrot.slane %v2845_v20, %v6131_v22 }
0x1e08   :  { %2914 = vmatprep.subr.mxu0 %v2847_v57 }
0x1e09   :  { %v5716_v15 = vpop.eup %5715  ;;  %2915 = vmatpush1.msra.mxu0 %v2846_v4 }
0x1e0a   :  { %v2761_v17 = vadd.f32 1.0, %v5716_v15  ;;  %v5718_v38 = vpop.eup %5717  ;;  %3077 = vmatprep.subr.mxu0 %v6741_v14 }
0x1e0c   :  { %5719 = vrcp.f32 %v2761_v17 }
0x1e0d   :  { %5721 = vpow2.f32 %v5116_v49 }
0x1e19   :  { %v5720_v41 = vpop.eup %5719 }
0x1e1a   :  { %v2775_v56 = vmul.f32 %v5720_v41, %v5718_v38  ;;  %v2774_v60 = vmul.f32 %v5720_v41, %v2772_v19  ;;  %v5722_v11 = vpop.eup %5721 }
0x1e1b   :  { %v2768_v59 = vadd.f32 1.0, %v5722_v11  ;;  %v3042_v11 = vrot.slane %v2845_v20, %v6125_v18 }
0x1e1c   :  { %2777 = vrot.lane.b32.xlu1 %v2775_v56, %s5858_s30  ;;  %v2792_v56 = vrot.slane %v6680_v24, 2 }
0x1e1d   :  { %5723 = vrcp.f32 %v2768_v59 }
0x1e2a   :  { %v5724_v15 = vpop.eup %5723 }
0x1e8e   :  { %v2778_v28 = vpop.permute.xlu1 %2777 }
0x1e8f   :  { %v2780_v54 = vadd.f32 %v2778_v28, %v2774_v60  ;;  %v2794_v60 = vrot.slane %v6671_v40, 6  ;;  %v2814_v40 = vpop.permute.xlu0 %2813 }
0x1e91   :  { %5725 = vtanh.f32 %v2780_v54 }
0x1e9e   :  { %v5726_v17 = vpop.eup %5725 }
0x1e9f   :  { %v2782_v38 = vmul.f32 %v5726_v17, %v5724_v15 }
0x1ea1   :  { %v2788_v19 = vsel %vm1629_vm5, %v6688_v33, %v2782_v38  ;;  %v2790_v41 = vrot.slane %v2782_v38, 6  ;;  %v2803_v33 = vrot.slane %v6540_v45, 2  ;;  %v6769_v45 = vld [vmem:[%s6729_s20 + $0x60] sm:$0xff] }
0x1ea2   :  { %2815 = vrot.lane.b32.xlu0 %v2788_v19, %s5858_s30 }
0x1ea3   :  { %v2805_v25 = vsel %vm1626_vm4, %v2790_v41, %v2792_v56  ;;  %v2810_v24 = vsel %vm1629_vm5, %v6625_v44, %v2803_v33  ;;  %v6774_v44 = vld [vmem:[%s6729_s20 + $0x58] sm:$0xff]  ;;  %s5042_s20 = sld [smem:[%s7363_s0 + %s5880_s17]]  }
0x1ea4   :  { %v2806_v23 = vsel %vm432_vm0, %v2805_v25, %v2794_v60 }
0x1ea5   :  { %v2807_v7 = vsel %vm1629_vm5, %v2806_v23, %v2796_v51 }
0x1ea6   :  { %2821 = vrot.lane.b32.xlu1 %v2807_v7, %s5858_s30 }
0x1eaa   :  { %2823 = vrot.lane.b32.xlu1 %v2810_v24, %s5858_s30 }
0x1f14   :  { %v2816_v39 = vpop.permute.xlu0 %2815 }
0x1f18   :  { %v2822_v13 = vpop.permute.xlu1 %2821 }
0x1f19   :  { %v2827_v42 = vsel %vm561_vm1, %v2814_v40, %v2822_v13 }
0x1f1a   :  { %5117 = vmatmul.mubr.msk.f32.vlgmr.msra.gmra.mxu0 %vm745_vm3, %v2827_v42  ;;  %5119 = vmatmul.mubr.msk.f32.vlgmr.msra.gmra.mxu1 %vm745_vm3, %v2827_v42 }
0x1f1b   :  { %3078 = vmatpush1.msra.mxu0 %v6760_v37  ;;  %2954 = vmatprep.mubr.f32.mxu0 %v5855_v27 }
0x1f1c   :  { %3079 = vmatprep.subr.mxu0 %v6764_v43  ;;  %v2824_v21 = vpop.permute.xlu1 %2823  ;;  %3031 = vmatprep.mubr.f32.mxu1 %v5855_v27 }
0x1f1d   :  { %3080 = vmatpush1.msra.mxu0 %v6769_v45  ;;  %v2828_v47 = vsel %vm561_vm1, %v2816_v39, %v2824_v21  ;;  %3184 = vmatpush1.msra.mxu1 %v6760_v37 }
0x1f1e   :  { %3081 = vmatprep.subr.mxu0 %v6774_v44  ;;  %5118 = vmatmul.mubr.msk.f32.gmra.mxu0 %vm745_vm3, %v2828_v47 }
0x1f1f   :  { %5120 = vmatmul.mubr.msk.f32.gmra.mxu1 %vm745_vm3, %v2828_v47  ;;  %3082 = vmatpush1.msra.mxu0 %v6779_v46 }
0x1f20   :  { %3083 = vmatprep.subr.mxu0 %v6784_v48  ;;  %3125 = vmatprep.mubr.f32.mxu0 %v5855_v27 }
0x1f21   :  { %3084 = vmatpush1.msra.mxu0 %v6790_v50  ;;  %3185 = vmatprep.subr.mxu1 %v6764_v43 }
0x1f22   :  { %3085 = vmatprep.subr.mxu0 %v6795_v29  ;;  %3186 = vmatpush1.msra.mxu1 %v6769_v45 }
0x1f23   :  { %3086 = vmatpush1.msra.mxu0 %v6799_v35  ;;  %3187 = vmatprep.subr.mxu1 %v6774_v44 }
0x1f24   :  { %3087 = vmatprep.subr.mxu0 %v6804_v16  ;;  %3188 = vmatpush1.msra.mxu1 %v6779_v46 }
0x1f25   :  { %3088 = vmatpush1.msra.mxu0 %v6809_v12  ;;  %3189 = vmatprep.subr.mxu1 %v6784_v48 }
0x1f26   :  { %3089 = vmatprep.subr.mxu0 %v6814_v26  ;;  %3190 = vmatpush1.msra.mxu1 %v6790_v50 }
0x1f27   :  { %3090 = vmatpush1.msra.mxu0 %v6819_v31  ;;  %3191 = vmatprep.subr.mxu1 %v6795_v29 }
0x1f28   :  { %3091 = vmatprep.subr.mxu0 %v6824_v30  ;;  %3192 = vmatpush1.msra.mxu1 %v6799_v35 }
0x1f29   :  { %3092 = vmatpush1.msra.mxu0 %v6829_v53  ;;  %3193 = vmatprep.subr.mxu1 %v6804_v16 }
0x1f2a   :  { %3126 = vmatmul.mubr.f32.vlgmr.msra.gmra.mxu0 %v5855_v27  ;;  %3194 = vmatpush1.msra.mxu1 %v6809_v12 }
0x1f2b   :  { %3195 = vmatprep.subr.mxu1 %v6814_v26  ;;  %3231 = vmatprep.mubr.f32.mxu1 %v5855_v27 }
0x1f2c   :  { %3196 = vmatpush1.msra.mxu1 %v6819_v31  ;;  %3293 = vmatprep.subr.mxu0 %v6741_v14 }
0x1f2d   :  { %3197 = vmatprep.subr.mxu1 %v6824_v30  ;;  %3294 = vmatpush1.msra.mxu0 %v6760_v37 }
0x1f2e   :  { %3198 = vmatpush1.msra.mxu1 %v6829_v53  ;;  %3295 = vmatprep.subr.mxu0 %v6764_v43 }
0x1f2f   :  { %3296 = vmatpush1.msra.mxu0 %v6769_v45  ;;  %3341 = vmatprep.mubr.f32.mxu0 %v5855_v27 }
0x1f30   :  { %3297 = vmatprep.subr.mxu0 %v6774_v44  ;;  %3403 = vmatprep.subr.mxu1 %v6741_v14 }
0x1f31   :  { %3298 = vmatpush1.msra.mxu0 %v6779_v46 }
0x1f32   :  { %3299 = vmatprep.subr.mxu0 %v6784_v48 }
0x1f33   :  { %3300 = vmatpush1.msra.mxu0 %v6790_v50 }
0x1f34   :  { %3301 = vmatprep.subr.mxu0 %v6795_v29 }
0x1f35   :  { %3302 = vmatpush1.msra.mxu0 %v6799_v35 }
0x1f36   :  { %3303 = vmatprep.subr.mxu0 %v6804_v16 }
0x1f37   :  { %3304 = vmatpush1.msra.mxu0 %v6809_v12 }
0x1f38   :  { %3305 = vmatprep.subr.mxu0 %v6814_v26 }
0x1f39   :  { %3306 = vmatpush1.msra.mxu0 %v6819_v31 }
0x1f3a   :  { %3307 = vmatprep.subr.mxu0 %v6824_v30 }
0x1f3b   :  { %3308 = vmatpush1.msra.mxu0 %v6829_v53 }
0x1f3c   :  { %3521 = vmatprep.subr.mxu0 %v6741_v14 }
0x1fda   :  { %v2950_v52 = vpop.f32.mrf.mxu0  ;;  %v3027_v49 = vpop.f32.mrf.mxu1 }
0x1fdb   :  { %v3493_v32 = vrot.slane %v3027_v49, 6  ;;  %v3603_v34 = vrot.slane %v3027_v49, 2  ;;  %v3049_v58 = vadd.f32 %v3042_v11, %v2950_v52 }
0x1fdc   :  { %v2952_v59 = vpop.f32.mrf.mxu0  ;;  %v3029_v28 = vpop.f32.mrf.mxu1 }
0x1fdd   :  { %v3494_v4 = vrot.slane %v3029_v28, 6  ;;  %v3604_v15 = vrot.slane %v3029_v28, 2  ;;  %v3050_v13 = vadd.f32 %v3046_v36, %v2952_v59 }
0x1fde   :  { %v2956_v54 = vpop.f32.mrf.mxu0 }
0x1fdf   :  { %v3051_v55 = vadd.f32 %v3042_v11, %v2956_v54  ;;  %v3033_v57 = vpop.f32.mrf.mxu1 }
0x1fe0   :  { %v3156_v8 = vrot.slane %v3033_v57, 2  ;;  %v2958_v9 = vpop.f32.mrf.mxu0  ;;  %v3055_v51 = vrot.slane %v3033_v57, 6 }
0x1fe1   :  { %v6869_v17 = vadd.f32 %v3603_v34, %v3051_v55  ;;  %v3052_v38 = vadd.f32 %v3046_v36, %v2958_v9  ;;  %v6871_v19 = vadd.f32 %v3493_v32, %v3051_v55  ;;  %v3035_v24 = vpop.f32.mrf.mxu1 }
0x1fe2   :  { %v6873_v41 = vadd.f32 %v3156_v8, %v3049_v58  ;;  %v6879_v25 = vadd.f32 %v3055_v51, %v3049_v58  ;;  %v3056_v40 = vrot.slane %v3035_v24, 6 }
0x1fe3   :  { %v6875_v56 = vadd.f32 %v3604_v15, %v3052_v38  ;;  %v6877_v60 = vadd.f32 %v3494_v4, %v3052_v38 }
0x1fe4   :  { %v6882_v39 = vadd.f32 %v3056_v40, %v3050_v13 }
0x1fea   :  { %v3127_v23 = vpop.f32.mrf.mxu0 }
0x1feb   :  { %v3132_v7 = vadd.f32 %v3127_v23, %v6879_v25  ;;  %v3157_v23 = vrot.slane %v3035_v24, 2 }
0x1fec   :  { %v3129_v42 = vpop.f32.mrf.mxu0 }
0x1fed   :  { %v5121_v33 = vmul.f32 -1.442695, %v3132_v7  ;;  %v3133_v21 = vadd.f32 %v3129_v42, %v6882_v39 }
0x1fef   :  { %5727 = vpow2.f32 %v5121_v33  ;;  %v5122_v28 = vmul.f32 -1.442695, %v3133_v21  ;;  %v6906_v33 = vadd.f32 %v3157_v23, %v3050_v13 }
0x1ff0   :  { %5729 = vtanh.f32 %v3133_v21 }
0x1ffc   :  { %v5728_v47 = vpop.eup %5727 }
0x1ffd   :  { %v3137_v20 = vadd.f32 1.0, %v5728_v47  ;;  %v5730_v52 = vpop.eup %5729 }
0x1fff   :  { %5731 = vrcp.f32 %v3137_v20 }
0x2000   :  { %5733 = vpow2.f32 %v5122_v28 }
0x200c   :  { %v5732_v49 = vpop.eup %5731 }
0x200d   :  { %v3148_v11 = vmul.f32 %v5732_v49, %v5730_v52  ;;  %v5734_v54 = vpop.eup %5733  ;;  %v3147_v34 = vmul.f32 0.0, %v5732_v49 }
0x200e   :  { %v3144_v32 = vadd.f32 1.0, %v5734_v54 }
0x200f   :  { %3150 = vrot.lane.b32.xlu0 %v3148_v11, %s5858_s30 }
0x2010   :  { %5735 = vrcp.f32 %v3144_v32 }
0x201d   :  { %v5736_v55 = vpop.eup %5735 }
0x2081   :  { %v3151_v59 = vpop.permute.xlu0 %3150 }
0x2082   :  { %v3153_v36 = vadd.f32 %v3151_v59, %v3147_v34 }
0x2084   :  { %5737 = vtanh.f32 %v3153_v36  ;;  %v3260_v20 = vrot.slane %v3153_v36, 6 }
0x2091   :  { %v5738_v57 = vpop.eup %5737 }
0x2092   :  { %v3155_v58 = vmul.f32 %v5738_v57, %v5736_v55 }
0x2094   :  { %3163 = vrot.lane.b32.xlu1 %v3155_v58, %s5858_s30 }
0x2106   :  { %v3164_v4 = vpop.permute.xlu1 %3163 }
0x2107   :  { %5123 = vmatmul.mubr.msk.f32.vlgmr.msra.gmra.mxu1 %vm745_vm3, %v3164_v4 }
0x2108   :  { %3404 = vmatpush1.msra.mxu1 %v6760_v37  ;;  %3451 = vmatprep.mubr.f32.mxu1 %v5855_v27 }
0x2109   :  { %3405 = vmatprep.subr.mxu1 %v6764_v43 }
0x210a   :  { %3406 = vmatpush1.msra.mxu1 %v6769_v45 }
0x210b   :  { %3407 = vmatprep.subr.mxu1 %v6774_v44 }
0x210c   :  { %3408 = vmatpush1.msra.mxu1 %v6779_v46 }
0x210d   :  { %3409 = vmatprep.subr.mxu1 %v6784_v48 }
0x210e   :  { %3410 = vmatpush1.msra.mxu1 %v6790_v50 }
0x210f   :  { %3411 = vmatprep.subr.mxu1 %v6795_v29 }
0x2110   :  { %3412 = vmatpush1.msra.mxu1 %v6799_v35 }
0x2111   :  { %3413 = vmatprep.subr.mxu1 %v6804_v16 }
0x2112   :  { %3414 = vmatpush1.msra.mxu1 %v6809_v12 }
0x2113   :  { %3415 = vmatprep.subr.mxu1 %v6814_v26 }
0x2114   :  { %3416 = vmatpush1.msra.mxu1 %v6819_v31 }
0x2115   :  { %3417 = vmatprep.subr.mxu1 %v6824_v30 }
0x2116   :  { %3418 = vmatpush1.msra.mxu1 %v6829_v53 }
0x2117   :  { %3630 = vmatprep.subr.mxu1 %v6741_v14 }
0x21c7   :  { %v3233_v8 = vpop.f32.mrf.mxu1 }
0x21c8   :  { %v3240_v9 = vrot.slane %v3233_v8, 6 }
0x21c9   :  { %v3235_v51 = vpop.f32.mrf.mxu1 }
0x21ca   :  { %v3244_v15 = vadd.f32 %v3240_v9, %v6873_v41  ;;  %v3241_v7 = vrot.slane %v3235_v51, 6 }
0x21cc   :  { %v5124_v38 = vmul.f32 -1.442695, %v3244_v15  ;;  %v3245_v40 = vadd.f32 %v3241_v7, %v6906_v33 }
0x21ce   :  { %5739 = vpow2.f32 %v5124_v38  ;;  %v5125_v28 = vmul.f32 -1.442695, %v3245_v40 }
0x21cf   :  { %5741 = vtanh.f32 %v3245_v40 }
0x21db   :  { %v5740_v42 = vpop.eup %5739 }
0x21dc   :  { %v3249_v21 = vadd.f32 1.0, %v5740_v42  ;;  %v5742_v47 = vpop.eup %5741 }
0x21de   :  { %5743 = vrcp.f32 %v3249_v21 }
0x21df   :  { %5745 = vpow2.f32 %v5125_v28 }
0x21eb   :  { %v5744_v52 = vpop.eup %5743 }
0x21ec   :  { %v3263_v49 = vmul.f32 %v5744_v52, %v5742_v47  ;;  %v3262_v11 = vmul.f32 %v5744_v52, %v3260_v20  ;;  %v5746_v54 = vpop.eup %5745 }
0x21ed   :  { %v3256_v24 = vadd.f32 1.0, %v5746_v54 }
0x21ee   :  { %3265 = vrot.lane.b32.xlu0 %v3263_v49, %s5858_s30 }
0x21ef   :  { %5747 = vrcp.f32 %v3256_v24 }
0x21fc   :  { %v5748_v34 = vpop.eup %5747 }
0x2260   :  { %v3266_v32 = vpop.permute.xlu0 %3265 }
0x2261   :  { %v3268_v13 = vadd.f32 %v3266_v32, %v3262_v11 }
0x2263   :  { %5749 = vtanh.f32 %v3268_v13  ;;  %v3370_v42 = vrot.slane %v3268_v13, 6 }
0x2270   :  { %v5750_v59 = vpop.eup %5749 }
0x2271   :  { %v3270_v55 = vmul.f32 %v5750_v59, %v5748_v34 }
0x2273   :  { %v3272_v57 = vrot.slane %v3270_v55, 2 }
0x2275   :  { %3273 = vrot.lane.b32.xlu1 %v3272_v57, %s5858_s30 }
0x22e7   :  { %v3274_v36 = vpop.permute.xlu1 %3273 }
0x22e8   :  { %5126 = vmatmul.mubr.msk.f32.vlgmr.msra.gmra.mxu0 %vm745_vm3, %v3274_v36 }
0x22e9   :  { %3522 = vmatpush1.msra.mxu0 %v6760_v37  ;;  %3569 = vmatprep.mubr.f32.mxu0 %v5855_v27 }
0x22ea   :  { %3523 = vmatprep.subr.mxu0 %v6764_v43 }
0x22eb   :  { %3524 = vmatpush1.msra.mxu0 %v6769_v45 }
0x22ec   :  { %3525 = vmatprep.subr.mxu0 %v6774_v44 }
0x22ed   :  { %3526 = vmatpush1.msra.mxu0 %v6779_v46 }
0x22ee   :  { %3527 = vmatprep.subr.mxu0 %v6784_v48 }
0x22ef   :  { %3528 = vmatpush1.msra.mxu0 %v6790_v50 }
0x22f0   :  { %3529 = vmatprep.subr.mxu0 %v6795_v29 }
0x22f1   :  { %3530 = vmatpush1.msra.mxu0 %v6799_v35 }
0x22f2   :  { %3531 = vmatprep.subr.mxu0 %v6804_v16 }
0x22f3   :  { %3532 = vmatpush1.msra.mxu0 %v6809_v12 }
0x22f4   :  { %3533 = vmatprep.subr.mxu0 %v6814_v26 }
0x22f5   :  { %3534 = vmatpush1.msra.mxu0 %v6819_v31 }
0x22f6   :  { %3535 = vmatprep.subr.mxu0 %v6824_v30 }
0x22f7   :  { %3536 = vmatpush1.msra.mxu0 %v6829_v53 }
0x22f8   :  { %3740 = vmatprep.subr.mxu0 %v6741_v14 }
0x23a8   :  { %v3343_v58 = vpop.f32.mrf.mxu0 }
0x23a9   :  { %v3350_v4 = vrot.slane %v3343_v58, 4 }
0x23aa   :  { %v3345_v15 = vpop.f32.mrf.mxu0 }
0x23ab   :  { %v3354_v8 = vadd.f32 %v3350_v4, %v6879_v25  ;;  %v3351_v38 = vrot.slane %v3345_v15, 4 }
0x23ad   :  { %v5127_v9 = vmul.f32 -1.442695, %v3354_v8  ;;  %v3355_v51 = vadd.f32 %v3351_v38, %v6882_v39 }
0x23af   :  { %5751 = vpow2.f32 %v5127_v9  ;;  %v5128_v52 = vmul.f32 -1.442695, %v3355_v51 }
0x23b0   :  { %5753 = vtanh.f32 %v3355_v51 }
0x23bc   :  { %v5752_v23 = vpop.eup %5751 }
0x23bd   :  { %v3359_v7 = vadd.f32 1.0, %v5752_v23  ;;  %v5754_v40 = vpop.eup %5753 }
0x23bf   :  { %5755 = vrcp.f32 %v3359_v7 }
0x23c0   :  { %5757 = vpow2.f32 %v5128_v52 }
0x23cc   :  { %v5756_v21 = vpop.eup %5755 }
0x23cd   :  { %v3373_v47 = vmul.f32 %v5756_v21, %v5754_v40  ;;  %v3372_v20 = vmul.f32 %v5756_v21, %v3370_v42  ;;  %v5758_v25 = vpop.eup %5757 }
0x23ce   :  { %v3366_v49 = vadd.f32 1.0, %v5758_v25 }
0x23cf   :  { %3375 = vrot.lane.b32.xlu0 %v3373_v47, %s5858_s30 }
0x23d0   :  { %5759 = vrcp.f32 %v3366_v49 }
0x23dd   :  { %v5760_v39 = vpop.eup %5759 }
0x2441   :  { %v3376_v11 = vpop.permute.xlu0 %3375 }
0x2442   :  { %v3378_v28 = vadd.f32 %v3376_v11, %v3372_v20 }
0x2444   :  { %5761 = vtanh.f32 %v3378_v28  ;;  %v3480_v38 = vrot.slane %v3378_v28, 6 }
0x2451   :  { %v5762_v54 = vpop.eup %5761 }
0x2452   :  { %v3380_v24 = vmul.f32 %v5762_v54, %v5760_v39 }
0x2454   :  { %v3382_v32 = vrot.slane %v3380_v24, 4 }
0x2456   :  { %3383 = vrot.lane.b32.xlu1 %v3382_v32, %s5858_s30 }
0x24c8   :  { %v3384_v13 = vpop.permute.xlu1 %3383 }
0x24c9   :  { %5129 = vmatmul.mubr.msk.f32.vlgmr.msra.gmra.mxu1 %vm745_vm3, %v3384_v13 }
0x24ca   :  { %3631 = vmatpush1.msra.mxu1 %v6760_v37  ;;  %3678 = vmatprep.mubr.f32.mxu1 %v5855_v27 }
0x24cb   :  { %3632 = vmatprep.subr.mxu1 %v6764_v43 }
0x24cc   :  { %3633 = vmatpush1.msra.mxu1 %v6769_v45 }
0x24cd   :  { %3634 = vmatprep.subr.mxu1 %v6774_v44 }
0x24ce   :  { %3635 = vmatpush1.msra.mxu1 %v6779_v46 }
0x24cf   :  { %3636 = vmatprep.subr.mxu1 %v6784_v48 }
0x24d0   :  { %3637 = vmatpush1.msra.mxu1 %v6790_v50 }
0x24d1   :  { %3638 = vmatprep.subr.mxu1 %v6795_v29 }
0x24d2   :  { %3639 = vmatpush1.msra.mxu1 %v6799_v35 }
0x24d3   :  { %3640 = vmatprep.subr.mxu1 %v6804_v16 }
0x24d4   :  { %3641 = vmatpush1.msra.mxu1 %v6809_v12 }
0x24d5   :  { %3642 = vmatprep.subr.mxu1 %v6814_v26 }
0x24d6   :  { %3643 = vmatpush1.msra.mxu1 %v6819_v31 }
0x24d7   :  { %3644 = vmatprep.subr.mxu1 %v6824_v30 }
0x24d8   :  { %3645 = vmatpush1.msra.mxu1 %v6829_v53 }
0x24d9   :  { %3850 = vmatprep.subr.mxu1 %v6741_v14 }
0x2589   :  { %v3453_v34 = vpop.f32.mrf.mxu1 }
0x258a   :  { %v3460_v59 = vrot.slane %v3453_v34, 2 }
0x258b   :  { %v3455_v36 = vpop.f32.mrf.mxu1 }
0x258c   :  { %v3464_v55 = vadd.f32 %v3460_v59, %v6873_v41  ;;  %v3461_v58 = vrot.slane %v3455_v36, 2 }
0x258e   :  { %v5130_v57 = vmul.f32 -1.442695, %v3464_v55  ;;  %v3465_v4 = vadd.f32 %v3461_v58, %v6906_v33 }
0x2590   :  { %5763 = vpow2.f32 %v5130_v57  ;;  %v5131_v14 = vmul.f32 -1.442695, %v3465_v4 }
0x2591   :  { %5765 = vtanh.f32 %v3465_v4 }
0x259d   :  { %v5764_v8 = vpop.eup %5763 }
0x259e   :  { %v3469_v9 = vadd.f32 1.0, %v5764_v8  ;;  %v5766_v15 = vpop.eup %5765 }
0x25a0   :  { %5767 = vrcp.f32 %v3469_v9 }
0x25a1   :  { %5769 = vpow2.f32 %v5131_v14 }
0x25ad   :  { %v5768_v51 = vpop.eup %5767 }
0x25ae   :  { %v3483_v23 = vmul.f32 %v5768_v51, %v5766_v15  ;;  %v3482_v7 = vmul.f32 %v5768_v51, %v3480_v38  ;;  %v5770_v41 = vpop.eup %5769 }
0x25af   :  { %v3476_v40 = vadd.f32 1.0, %v5770_v41 }
0x25b0   :  { %3485 = vrot.lane.b32.xlu0 %v3483_v23, %s5858_s30 }
0x25b1   :  { %5771 = vrcp.f32 %v3476_v40 }
0x25be   :  { %v5772_v33 = vpop.eup %5771 }
0x2622   :  { %v3486_v42 = vpop.permute.xlu0 %3485 }
0x2623   :  { %v3488_v21 = vadd.f32 %v3486_v42, %v3482_v7 }
0x2625   :  { %5773 = vtanh.f32 %v3488_v21  ;;  %v3592_v34 = vrot.slane %v3488_v21, 6 }
0x2632   :  { %v5774_v47 = vpop.eup %5773 }
0x2633   :  { %v3490_v20 = vmul.f32 %v5774_v47, %v5772_v33 }
0x2635   :  { %v3500_v52 = vrot.slane %v3490_v20, 6 }
0x2637   :  { %3501 = vrot.lane.b32.xlu1 %v3500_v52, %s5858_s30 }
0x26a9   :  { %v3502_v25 = vpop.permute.xlu1 %3501 }
0x26aa   :  { %5132 = vmatmul.mubr.msk.f32.vlgmr.msra.gmra.mxu0 %vm745_vm3, %v3502_v25 }
0x26ab   :  { %3741 = vmatpush1.msra.mxu0 %v6760_v37  ;;  %3788 = vmatprep.mubr.f32.mxu0 %v5855_v27 }
0x26ac   :  { %3742 = vmatprep.subr.mxu0 %v6764_v43 }
0x26ad   :  { %3743 = vmatpush1.msra.mxu0 %v6769_v45 }
0x26ae   :  { %3744 = vmatprep.subr.mxu0 %v6774_v44 }
0x26af   :  { %3745 = vmatpush1.msra.mxu0 %v6779_v46 }
0x26b0   :  { %3746 = vmatprep.subr.mxu0 %v6784_v48 }
0x26b1   :  { %3747 = vmatpush1.msra.mxu0 %v6790_v50 }
0x26b2   :  { %3748 = vmatprep.subr.mxu0 %v6795_v29 }
0x26b3   :  { %3749 = vmatpush1.msra.mxu0 %v6799_v35 }
0x26b4   :  { %3750 = vmatprep.subr.mxu0 %v6804_v16 }
0x26b5   :  { %3751 = vmatpush1.msra.mxu0 %v6809_v12 }
0x26b6   :  { %3752 = vmatprep.subr.mxu0 %v6814_v26 }
0x26b7   :  { %3753 = vmatpush1.msra.mxu0 %v6819_v31 }
0x26b8   :  { %3754 = vmatprep.subr.mxu0 %v6824_v30 }
0x26b9   :  { %3755 = vmatpush1.msra.mxu0 %v6829_v53 }
0x26ba   :  { %5399 = vmatprep.subr.mxu0 %v5855_v27 }
0x276a   :  { %v3571_v49 = vpop.f32.mrf.mxu0 }
0x276b   :  { %v3576_v11 = vadd.f32 %v3571_v49, %v6871_v19 }
0x276c   :  { %v3573_v39 = vpop.f32.mrf.mxu0 }
0x276d   :  { %v5133_v28 = vmul.f32 -1.442695, %v3576_v11  ;;  %v3577_v54 = vadd.f32 %v3573_v39, %v6877_v60 }
0x276f   :  { %5775 = vpow2.f32 %v5133_v28  ;;  %v5134_v36 = vmul.f32 -1.442695, %v3577_v54 }
0x2770   :  { %5777 = vtanh.f32 %v3577_v54 }
0x277c   :  { %v5776_v24 = vpop.eup %5775 }
0x277d   :  { %v3581_v32 = vadd.f32 1.0, %v5776_v24  ;;  %v5778_v13 = vpop.eup %5777 }
0x277f   :  { %5779 = vrcp.f32 %v3581_v32 }
0x2780   :  { %5781 = vpow2.f32 %v5134_v36 }
0x278c   :  { %v5780_v59 = vpop.eup %5779 }
0x278d   :  { %v3595_v55 = vmul.f32 %v5780_v59, %v5778_v13  ;;  %v3594_v57 = vmul.f32 %v5780_v59, %v3592_v34  ;;  %v5782_v58 = vpop.eup %5781 }
0x278e   :  { %v3588_v4 = vadd.f32 1.0, %v5782_v58 }
0x278f   :  { %3597 = vrot.lane.b32.xlu0 %v3595_v55, %s5858_s30 }
0x2790   :  { %5783 = vrcp.f32 %v3588_v4 }
0x279d   :  { %v5784_v15 = vpop.eup %5783 }
0x2801   :  { %v3598_v8 = vpop.permute.xlu0 %3597 }
0x2802   :  { %v3600_v9 = vadd.f32 %v3598_v8, %v3594_v57 }
0x2804   :  { %5785 = vtanh.f32 %v3600_v9 }
0x2811   :  { %v5786_v38 = vpop.eup %5785 }
0x2812   :  { %v3602_v51 = vmul.f32 %v5786_v38, %v5784_v15 }
0x2814   :  { %3610 = vrot.lane.b32.xlu1 %v3602_v51, %s5858_s30 }
0x2886   :  { %v3611_v23 = vpop.permute.xlu1 %3610 }
0x2887   :  { %5135 = vmatmul.mubr.msk.f32.vlgmr.msra.gmra.mxu1 %vm745_vm3, %v3611_v23 }
0x2888   :  { %3851 = vmatpush1.msra.mxu1 %v6760_v37  ;;  %3898 = vmatprep.mubr.f32.mxu1 %v5855_v27 }
0x2889   :  { %3852 = vmatprep.subr.mxu1 %v6764_v43 }
0x288a   :  { %3853 = vmatpush1.msra.mxu1 %v6769_v45 }
0x288b   :  { %3854 = vmatprep.subr.mxu1 %v6774_v44 }
0x288c   :  { %3855 = vmatpush1.msra.mxu1 %v6779_v46 }
0x288d   :  { %3856 = vmatprep.subr.mxu1 %v6784_v48 }
0x288e   :  { %3857 = vmatpush1.msra.mxu1 %v6790_v50 }
0x288f   :  { %3858 = vmatprep.subr.mxu1 %v6795_v29 }
0x2890   :  { %3859 = vmatpush1.msra.mxu1 %v6799_v35 }
0x2891   :  { %3860 = vmatprep.subr.mxu1 %v6804_v16 }
0x2892   :  { %3861 = vmatpush1.msra.mxu1 %v6809_v12  ;;  %v3707_v12 = vrot.slane %v3600_v9, 6 }
0x2893   :  { %3862 = vmatprep.subr.mxu1 %v6814_v26 }
0x2894   :  { %3863 = vmatpush1.msra.mxu1 %v6819_v31 }
0x2895   :  { %3864 = vmatprep.subr.mxu1 %v6824_v30 }
0x2896   :  { %3865 = vmatpush1.msra.mxu1 %v6829_v53 }
0x2947   :  { %v3680_v37 = vpop.f32.mrf.mxu1 }
0x2948   :  { %v3687_v43 = vrot.slane %v3680_v37, 6 }
0x2949   :  { %v3682_v46 = vpop.f32.mrf.mxu1 }
0x294a   :  { %v3691_v45 = vadd.f32 %v3687_v43, %v6869_v17  ;;  %v3688_v48 = vrot.slane %v3682_v46, 6 }
0x294c   :  { %v5136_v44 = vmul.f32 -1.442695, %v3691_v45  ;;  %v3692_v50 = vadd.f32 %v3688_v48, %v6875_v56 }
0x294e   :  { %5787 = vpow2.f32 %v5136_v44  ;;  %v5137_v53 = vmul.f32 -1.442695, %v3692_v50 }
0x294f   :  { %5789 = vtanh.f32 %v3692_v50 }
0x295b   :  { %v5788_v29 = vpop.eup %5787 }
0x295c   :  { %v3696_v35 = vadd.f32 1.0, %v5788_v29  ;;  %v5790_v16 = vpop.eup %5789 }
0x295e   :  { %5791 = vrcp.f32 %v3696_v35 }
0x295f   :  { %5793 = vpow2.f32 %v5137_v53  ;;  %v3942_v53 = vld [vmem:[%s5033_s28 + $0x20] sm:$0xff] }
0x296b   :  { %v5792_v26 = vpop.eup %5791 }
0x296c   :  { %v3710_v31 = vmul.f32 %v5792_v26, %v5790_v16  ;;  %v3709_v30 = vmul.f32 %v5792_v26, %v3707_v12  ;;  %v5794_v7 = vpop.eup %5793 }
0x296d   :  { %v3703_v14 = vadd.f32 1.0, %v5794_v7  ;;  %v3941_v7 = vld [vmem:[%s5033_s28 + $0x18] sm:$0xff] }
0x296e   :  { %3712 = vrot.lane.b32.xlu0 %v3710_v31, %s5858_s30 }
0x296f   :  { %5795 = vrcp.f32 %v3703_v14  ;;  %v3940_v14 = vld [vmem:[%s5033_s28 + $0x10] sm:$0xff] }
0x297c   :  { %v5796_v42 = vpop.eup %5795 }
0x29e0   :  { %v3713_v41 = vpop.permute.xlu0 %3712 }
0x29e1   :  { %v3715_v40 = vadd.f32 %v3713_v41, %v3709_v30  ;;  %v3943_v30 = vld [vmem:[%s5033_s28 + $0x28] sm:$0xff] }
0x29e2   :  { %v3939_v41 = vld [vmem:[%s5033_s28 + $0x8] sm:$0xff] }
0x29e3   :  { %5797 = vtanh.f32 %v3715_v40  ;;  %v3817_v34 = vrot.slane %v3715_v40, 6  ;;  %v3938_v40 = vld [vmem:[%s5033_s28] sm:$0xff] }
0x29f0   :  { %v5798_v21 = vpop.eup %5797 }
0x29f1   :  { %v3717_v33 = vmul.f32 %v5798_v21, %v5796_v42  ;;  %v4222_v42 = vld [vmem:[%s7018_s3 + $0xf8] sm:$0xff] }
0x29f3   :  { %v3719_v47 = vrot.slane %v3717_v33, 2 }
0x29f5   :  { %3720 = vrot.lane.b32.xlu1 %v3719_v47, %s5858_s30 }
0x2a67   :  { %v3721_v20 = vpop.permute.xlu1 %3720 }
0x2a68   :  { %5138 = vmatmul.mubr.msk.f32.vlgmr.msra.gmra.mxu0 %vm745_vm3, %v3721_v20 }
0x2a69   :  { %5415 = vmatprep.mubr.msk.f32.mxu0 %vm5866_vm6, %v5855_v27 }
0x2b28   :  { %v3790_v52 = vpop.f32.mrf.mxu0 }
0x2b29   :  { %v3797_v25 = vrot.slane %v3790_v52, 4 }
0x2b2a   :  { %v3792_v28 = vpop.f32.mrf.mxu0 }
0x2b2b   :  { %v3801_v49 = vadd.f32 %v3797_v25, %v6871_v19  ;;  %v3798_v39 = vrot.slane %v3792_v28, 4 }
0x2b2d   :  { %v5139_v11 = vmul.f32 -1.442695, %v3801_v49  ;;  %v3802_v54 = vadd.f32 %v3798_v39, %v6877_v60  ;;  %v4077_v39 = vld [vmem:[%s7030_s7 + $0xf8] sm:$0xff] }
0x2b2e   :  { %4090 = vmatprep.subr.mxu1 %v4077_v39  ;;  %v4209_v39 = vld [vmem:[%s7018_s3 + $0x90] sm:$0xff] }
0x2b2f   :  { %5799 = vpow2.f32 %v5139_v11  ;;  %v5140_v36 = vmul.f32 -1.442695, %v3802_v54 }
0x2b30   :  { %5801 = vtanh.f32 %v3802_v54  ;;  %v4076_v54 = vld [vmem:[%s7030_s7 + $0xf0] sm:$0xff] }
0x2b3c   :  { %v5800_v24 = vpop.eup %5799 }
0x2b3d   :  { %v3806_v32 = vadd.f32 1.0, %v5800_v24  ;;  %v5802_v13 = vpop.eup %5801  ;;  %v4075_v24 = vld [vmem:[%s7030_s7 + $0xe8] sm:$0xff] }
0x2b3f   :  { %5803 = vrcp.f32 %v3806_v32  ;;  %v4074_v32 = vld [vmem:[%s7030_s7 + $0xe0] sm:$0xff] }
0x2b40   :  { %5805 = vpow2.f32 %v5140_v36  ;;  %v4068_v36 = vld [vmem:[%s7030_s7 + $0xb0] sm:$0xff] }
0x2b4c   :  { %v5804_v59 = vpop.eup %5803 }
0x2b4d   :  { %v3820_v55 = vmul.f32 %v5804_v59, %v5802_v13  ;;  %v3819_v57 = vmul.f32 %v5804_v59, %v3817_v34  ;;  %v5806_v19 = vpop.eup %5805  ;;  %v4073_v13 = vld [vmem:[%s7030_s7 + $0xd8] sm:$0xff]  ;;  %v4072_v34 = vld [vmem:[%s7030_s7 + $0xd0] sm:$0xff]  ;;  %v4071_v59 = vld [vmem:[%s7030_s7 + $0xc8] sm:$0xff] }
0x2b4e   :  { %v3813_v58 = vadd.f32 1.0, %v5806_v19  ;;  %v4067_v19 = vld [vmem:[%s7030_s7 + $0xa8] sm:$0xff] }
0x2b4f   :  { %3822 = vrot.lane.b32.xlu0 %v3820_v55, %s5858_s30  ;;  %v4070_v55 = vld [vmem:[%s7030_s7 + $0xc0] sm:$0xff] }
0x2b50   :  { %5807 = vrcp.f32 %v3813_v58  ;;  %v4066_v58 = vld [vmem:[%s7030_s7 + $0xa0] sm:$0xff] }
0x2b5d   :  { %v5808_v60 = vpop.eup %5807 }
0x2bc1   :  { %v3823_v4 = vpop.permute.xlu0 %3822 }
0x2bc2   :  { %v3825_v8 = vadd.f32 %v3823_v4, %v3819_v57  ;;  %v4069_v57 = vld [vmem:[%s7030_s7 + $0xb8] sm:$0xff] }
0x2bc3   :  { %v4065_v4 = vld [vmem:[%s7030_s7 + $0x98] sm:$0xff] }
0x2bc4   :  { %5809 = vtanh.f32 %v3825_v8  ;;  %v3927_v16 = vrot.slane %v3825_v8, 6  ;;  %v4064_v8 = vld [vmem:[%s7030_s7 + $0x90] sm:$0xff] }
0x2bd1   :  { %v5810_v9 = vpop.eup %5809 }
0x2bd2   :  { %v3827_v15 = vmul.f32 %v5810_v9, %v5808_v60  ;;  %v4063_v60 = vld [vmem:[%s7030_s7 + $0x88] sm:$0xff]  ;;  %v4062_v9 = vld [vmem:[%s7030_s7 + $0x80] sm:$0xff] }
0x2bd4   :  { %v3829_v38 = vrot.slane %v3827_v15, 4  ;;  %v4061_v15 = vld [vmem:[%s7030_s7 + $0x78] sm:$0xff] }
0x2bd6   :  { %3830 = vrot.lane.b32.xlu1 %v3829_v38, %s5858_s30  ;;  %v4060_v38 = vld [vmem:[%s7030_s7 + $0x70] sm:$0xff] }
0x2c48   :  { %v3831_v51 = vpop.permute.xlu1 %3830 }
0x2c49   :  { %5141 = vmatmul.mubr.msk.f32.vlgmr.msra.gmra.mxu1 %vm745_vm3, %v3831_v51  ;;  %v4059_v51 = vld [vmem:[%s7030_s7 + $0x68] sm:$0xff] }
0x2c4a   :  { %4154 = vmatprep.mubr.f32.mxu1 %v5855_v27  ;;  %4091 = vmatpush1.msra.mxu1 %v4076_v54  ;;  %v4193_v54 = vld [vmem:[%s7018_s3 + $0x10] sm:$0xff] }
0x2c4b   :  { %4092 = vmatprep.subr.mxu1 %v4075_v24  ;;  %v4208_v24 = vld [vmem:[%s7018_s3 + $0x88] sm:$0xff] }
0x2c4c   :  { %4093 = vmatpush1.msra.mxu1 %v4074_v32 }
0x2c4d   :  { %4094 = vmatprep.subr.mxu1 %v4073_v13  ;;  %v4192_v13 = vld [vmem:[%s7018_s3 + $0x8] sm:$0xff] }
0x2c4e   :  { %4095 = vmatpush1.msra.mxu1 %v4072_v34  ;;  %v4207_v34 = vld [vmem:[%s7018_s3 + $0x80] sm:$0xff] }
0x2c4f   :  { %4096 = vmatprep.subr.mxu1 %v4071_v59  ;;  %v4191_v59 = vld [vmem:[%s7018_s3] sm:$0xff] }
0x2c50   :  { %4097 = vmatpush1.msra.mxu1 %v4070_v55 }
0x2c51   :  { %4098 = vmatprep.subr.mxu1 %v4069_v57 }
0x2c52   :  { %4099 = vmatpush1.msra.mxu1 %v4068_v36 }
0x2c53   :  { %4100 = vmatprep.subr.mxu1 %v4067_v19 }
0x2c54   :  { %4101 = vmatpush1.msra.mxu1 %v4066_v58 }
0x2c55   :  { %4102 = vmatprep.subr.mxu1 %v4065_v4  ;;  %v4052_v4 = vld [vmem:[%s7030_s7 + $0x30] sm:$0xff] }
0x2c56   :  { %4103 = vmatpush1.msra.mxu1 %v4064_v8  ;;  %v4051_v8 = vld [vmem:[%s7030_s7 + $0x28] sm:$0xff] }
0x2c57   :  { %4104 = vmatprep.subr.mxu1 %v4063_v60  ;;  %v4049_v60 = vld [vmem:[%s7030_s7 + $0x18] sm:$0xff] }
0x2c58   :  { %4105 = vmatpush1.msra.mxu1 %v4062_v9  ;;  %v4047_v9 = vld [vmem:[%s7030_s7 + $0x8] sm:$0xff] }
0x2c59   :  { %4106 = vmatprep.subr.mxu1 %v4061_v15  ;;  %v4046_v15 = vld [vmem:[%s7030_s7] sm:$0xff] }
0x2c5a   :  { %4107 = vmatpush1.msra.mxu1 %v4060_v38  ;;  %v4749_v38 = vld [vmem:[%s7123_s18 + $0xf8] sm:$0xff] }
0x2c5b   :  { %4108 = vmatprep.subr.mxu1 %v4059_v51  ;;  %v4733_v51 = vld [vmem:[%s7123_s18 + $0x78] sm:$0xff] }
0x2d09   :  { %v3900_v23 = vpop.f32.mrf.mxu1 }
0x2d0a   :  { %v3907_v37 = vrot.slane %v3900_v23, 2  ;;  %v4058_v23 = vld [vmem:[%s7030_s7 + $0x60] sm:$0xff] }
0x2d0b   :  { %v3902_v44 = vpop.f32.mrf.mxu1  ;;  %4109 = vmatpush1.msra.mxu1 %v4058_v23  ;;  %v4748_v23 = vld [vmem:[%s7123_s18 + $0xf0] sm:$0xff] }
0x2d0c   :  { %v3911_v43 = vadd.f32 %v3907_v37, %v6869_v17  ;;  %v3908_v46 = vrot.slane %v3902_v44, 2  ;;  %v3945_v17 = vld [vmem:[%s5033_s28 + $0x38] sm:$0xff] }
0x2d0d   :  { %5400 = vmatpush3.msra.mxu0 %v3945_v17  ;;  %v4057_v37 = vld [vmem:[%s7030_s7 + $0x58] sm:$0xff] }
0x2d0e   :  { %v5142_v45 = vmul.f32 -1.442695, %v3911_v43  ;;  %v3912_v48 = vadd.f32 %v3908_v46, %v6875_v56  ;;  %v3944_v56 = vld [vmem:[%s5033_s28 + $0x30] sm:$0xff]  ;;  %5401 = vmatprep.subr.mxu0 %v5855_v27  ;;  %4110 = vmatprep.subr.mxu1 %v4057_v37  ;;  %v4218_v17 = vld [vmem:[%s7018_s3 + $0xd8] sm:$0xff]  ;;  %s5045_s28 = sld [smem:[%s7363_s0 + %s5882_s25]]  }
0x2d0f   :  { %5402 = vmatpush3.msra.mxu0 %v3944_v56  ;;  %v4056_v43 = vld [vmem:[%s7030_s7 + $0x50] sm:$0xff]  ;;  %v4202_v56 = vld [vmem:[%s7018_s3 + $0x58] sm:$0xff] }
0x2d10   :  { %5811 = vpow2.f32 %v5142_v45  ;;  %5403 = vmatprep.subr.mxu0 %v5855_v27  ;;  %v5143_v21 = vmul.f32 -1.442695, %v3912_v48  ;;  %v4055_v45 = vld [vmem:[%s7030_s7 + $0x48] sm:$0xff]  ;;  %4111 = vmatpush1.msra.mxu1 %v4056_v43  ;;  %v4732_v37 = vld [vmem:[%s7123_s18 + $0x70] sm:$0xff] }
0x2d11   :  { %5813 = vtanh.f32 %v3912_v48  ;;  %5404 = vmatpush3.msra.mxu0 %v3943_v30  ;;  %4112 = vmatprep.subr.mxu1 %v4055_v45  ;;  %v4206_v48 = vld [vmem:[%s7018_s3 + $0x78] sm:$0xff]  ;;  %v4217_v30 = vld [vmem:[%s7018_s3 + $0xd0] sm:$0xff]  ;;  %v4747_v43 = vld [vmem:[%s7123_s18 + $0xe8] sm:$0xff] }
0x2d12   :  { %5405 = vmatprep.subr.mxu0 %v5855_v27  ;;  %v4731_v45 = vld [vmem:[%s7123_s18 + $0x68] sm:$0xff] }
0x2d13   :  { %5406 = vmatpush3.msra.mxu0 %v3942_v53  ;;  %v4201_v53 = vld [vmem:[%s7018_s3 + $0x50] sm:$0xff] }
0x2d14   :  { %5407 = vmatprep.subr.mxu0 %v5855_v27 }
0x2d15   :  { %5408 = vmatpush3.msra.mxu0 %v3941_v7  ;;  %v4216_v7 = vld [vmem:[%s7018_s3 + $0xc8] sm:$0xff] }
0x2d16   :  { %5409 = vmatprep.subr.mxu0 %v5855_v27 }
0x2d17   :  { %5410 = vmatpush3.msra.mxu0 %v3940_v14  ;;  %v4200_v14 = vld [vmem:[%s7018_s3 + $0x48] sm:$0xff] }
0x2d18   :  { %5411 = vmatprep.subr.mxu0 %v5855_v27 }
0x2d19   :  { %5412 = vmatpush3.msra.mxu0 %v3939_v41  ;;  %v4215_v41 = vld [vmem:[%s7018_s3 + $0xc0] sm:$0xff] }
0x2d1a   :  { %5413 = vmatprep.subr.mxu0 %v5855_v27 }
0x2d1b   :  { %5414 = vmatpush3.msra.mxu0 %v3938_v40  ;;  %v4199_v40 = vld [vmem:[%s7018_s3 + $0x40] sm:$0xff] }
0x2d1c   :  { %5251 = vmatprep.subr.mxu0 %v4222_v42  ;;  %v4214_v42 = vld [vmem:[%s7018_s3 + $0xb8] sm:$0xff] }
0x2d1d   :  { %v5812_v50 = vpop.eup %5811 }
0x2d1e   :  { %v3916_v29 = vadd.f32 1.0, %v5812_v50  ;;  %v5814_v35 = vpop.eup %5813 }
0x2d20   :  { %5815 = vrcp.f32 %v3916_v29 }
0x2d21   :  { %5817 = vpow2.f32 %v5143_v21  ;;  %v4198_v21 = vld [vmem:[%s7018_s3 + $0x38] sm:$0xff] }
0x2d2d   :  { %v5816_v12 = vpop.eup %5815 }
0x2d2e   :  { %v3930_v26 = vmul.f32 %v5816_v12, %v5814_v35  ;;  %v3929_v31 = vmul.f32 %v5816_v12, %v3927_v16  ;;  %v5818_v33 = vpop.eup %5817  ;;  %v4221_v35 = vld [vmem:[%s7018_s3 + $0xf0] sm:$0xff]  ;;  %v4220_v12 = vld [vmem:[%s7018_s3 + $0xe8] sm:$0xff] }
0x2d2f   :  { %v3923_v47 = vadd.f32 1.0, %v5818_v33  ;;  %v4205_v16 = vld [vmem:[%s7018_s3 + $0x70] sm:$0xff] }
0x2d30   :  { %3932 = vrot.lane.b32.xlu0 %v3930_v26, %s5858_s30  ;;  %v4204_v26 = vld [vmem:[%s7018_s3 + $0x68] sm:$0xff]  ;;  %v4213_v33 = vld [vmem:[%s7018_s3 + $0xb0] sm:$0xff] }
0x2d31   :  { %5819 = vrcp.f32 %v3923_v47  ;;  %v4197_v47 = vld [vmem:[%s7018_s3 + $0x30] sm:$0xff] }
0x2d3e   :  { %v5820_v25 = vpop.eup %5819 }
0x2da2   :  { %v3933_v20 = vpop.permute.xlu0 %3932 }
0x2da3   :  { %v3935_v52 = vadd.f32 %v3933_v20, %v3929_v31  ;;  %v4219_v31 = vld [vmem:[%s7018_s3 + $0xe0] sm:$0xff]  ;;  %v4212_v20 = vld [vmem:[%s7018_s3 + $0xa8] sm:$0xff] }
0x2da5   :  { %5821 = vtanh.f32 %v3935_v52  ;;  %v4196_v52 = vld [vmem:[%s7018_s3 + $0x28] sm:$0xff] }
0x2db2   :  { %v5822_v49 = vpop.eup %5821 }
0x2db3   :  { %v3937_v11 = vmul.f32 %v5822_v49, %v5820_v25  ;;  %v4211_v25 = vld [vmem:[%s7018_s3 + $0xa0] sm:$0xff] }
0x2db4   :  { %v4195_v49 = vld [vmem:[%s7018_s3 + $0x20] sm:$0xff] }
0x2db5   :  { %v3954_v28 = vrot.slane %v3937_v11, 6  ;;  %v4210_v11 = vld [vmem:[%s7018_s3 + $0x98] sm:$0xff] }
0x2db7   :  { %3955 = vrot.lane.b32.xlu1 %v3954_v28, %s5858_s30  ;;  %s5869_s30 = smov 3   ;;  %v4194_v28 = vld [vmem:[%s7018_s3 + $0x18] sm:$0xff] }
0x2db8   :  { %s5022_s10 = sld [smem:[%s7363_s0 + %s5869_s30]]  }
0x2dbe   :  { %v405_v44 = vld [vmem:[%s5022_s10] sm:$0x3] }
0x2dbf   :  { %v7059_v46 = vrot.slane %v405_v44, %v6131_v22  ;;  %v410_v32 = vrot.slane %v405_v44, %v6125_v18  ;;  %v4746_v44 = vld [vmem:[%s7123_s18 + $0xe0] sm:$0xff] }
0x2dc1   :  { %v506_v50 = vadd.f32 %v6173_v62, %v7059_v46  ;;  %v4203_v62 = vld [vmem:[%s7018_s3 + $0x60] sm:$0xff]  ;;  %v504_v55 = vadd.f32 %v6171_v61, %v410_v32  ;;  %v512_v57 = vadd.f32 %v6177_v0, %v7059_v46  ;;  %v510_v36 = vadd.f32 %v6175_v63, %v410_v32  ;;  %s5046_s3 = sld [smem:[%s7363_s0 + %s5883_s29]]  }
0x2dc2   :  { %v518_v19 = vadd.f32 %v6181_v3, %v7059_v46  ;;  %v516_v61 = vadd.f32 %v6179_v1, %v410_v32  ;;  %v524_v0 = vadd.f32 %v6185_v6, %v7059_v46  ;;  %v522_v58 = vadd.f32 %v6183_v5, %v410_v32  ;;  %v4054_v63 = vld [vmem:[%s7030_s7 + $0x40] sm:$0xff]  ;;  %v4053_v3 = vld [vmem:[%s7030_s7 + $0x38] sm:$0xff]  ;;  %v4048_v6 = vld [vmem:[%s7030_s7 + $0x10] sm:$0xff] }
0x2dc3   :  { %4113 = vmatpush1.msra.mxu1 %v4054_v63  ;;  %v4050_v1 = vld [vmem:[%s7030_s7 + $0x20] sm:$0xff]  ;;  %v4346_v5 = vld [vmem:[%s7118_s14 + $0xf8] sm:$0xff]  ;;  %v4341_v32 = vld [vmem:[%s7118_s14 + $0xd0] sm:$0xff]  ;;  %s5047_s7 = sld [smem:[%s7363_s0 + %s5884_s4]]  }
0x2dc4   :  { %4114 = vmatprep.subr.mxu1 %v4053_v3  ;;  %v4730_v46 = vld [vmem:[%s7123_s18 + $0x60] sm:$0xff]  ;;  %v4739_v63 = vld [vmem:[%s7123_s18 + $0xa8] sm:$0xff] }
0x2dc5   :  { %4115 = vmatpush1.msra.mxu1 %v4052_v4  ;;  %v4320_v3 = vld [vmem:[%s7118_s14 + $0x28] sm:$0xff] }
0x2dc6   :  { %4116 = vmatprep.subr.mxu1 %v4051_v8  ;;  %v4723_v4 = vld [vmem:[%s7123_s18 + $0x28] sm:$0xff]  ;;  %v4335_v8 = vld [vmem:[%s7118_s14 + $0xa0] sm:$0xff] }
0x2dc7   :  { %4117 = vmatpush1.msra.mxu1 %v4050_v1  ;;  %v4738_v1 = vld [vmem:[%s7123_s18 + $0xa0] sm:$0xff] }
0x2dc8   :  { %4118 = vmatprep.subr.mxu1 %v4049_v60  ;;  %v4319_v60 = vld [vmem:[%s7118_s14 + $0x20] sm:$0xff] }
0x2dc9   :  { %4119 = vmatpush1.msra.mxu1 %v4048_v6  ;;  %v4722_v6 = vld [vmem:[%s7123_s18 + $0x20] sm:$0xff] }
0x2dca   :  { %4120 = vmatprep.subr.mxu1 %v4047_v9  ;;  %v4334_v9 = vld [vmem:[%s7118_s14 + $0x98] sm:$0xff] }
0x2dcb   :  { %4121 = vmatpush1.msra.mxu1 %v4046_v15  ;;  %v4737_v15 = vld [vmem:[%s7123_s18 + $0x98] sm:$0xff] }
0x2dcc   :  { %5295 = vmatprep.subr.mxu1 %v4346_v5  ;;  %v4318_v5 = vld [vmem:[%s7118_s14 + $0x18] sm:$0xff] }
0x2e29   :  { %v3956_v29 = vpop.permute.xlu1 %3955 }
0x2e2a   :  { %5416 = vmatmul.mubr.msk.f32.vlgmr.msra.gmra.mxu0 %vm745_vm3, %v3956_v29  ;;  %v4744_v29 = vld [vmem:[%s7123_s18 + $0xd0] sm:$0xff] }
0x2e2b   :  { %5252 = vmatpush3.msra.mxu0 %v4206_v48  ;;  %4294 = vmatprep.mubr.f32.mxu0 %v506_v50  ;;  %v4745_v48 = vld [vmem:[%s7123_s18 + $0xd8] sm:$0xff] }
0x2e2c   :  { %5253 = vmatprep.subr.mxu0 %v4221_v35  ;;  %v4729_v50 = vld [vmem:[%s7123_s18 + $0x58] sm:$0xff]  ;;  %v4728_v35 = vld [vmem:[%s7123_s18 + $0x50] sm:$0xff] }
0x2e2d   :  { %5254 = vmatpush3.msra.mxu0 %v4205_v16  ;;  %v4743_v16 = vld [vmem:[%s7123_s18 + $0xc8] sm:$0xff] }
0x2e2e   :  { %5255 = vmatprep.subr.mxu0 %v4220_v12  ;;  %v4727_v12 = vld [vmem:[%s7123_s18 + $0x48] sm:$0xff] }
0x2e2f   :  { %5256 = vmatpush3.msra.mxu0 %v4204_v26  ;;  %v4742_v26 = vld [vmem:[%s7123_s18 + $0xc0] sm:$0xff] }
0x2e30   :  { %5257 = vmatprep.subr.mxu0 %v4219_v31  ;;  %v4726_v31 = vld [vmem:[%s7123_s18 + $0x40] sm:$0xff] }
0x2e31   :  { %5258 = vmatpush3.msra.mxu0 %v4203_v62  ;;  %v4741_v62 = vld [vmem:[%s7123_s18 + $0xb8] sm:$0xff] }
0x2e32   :  { %5259 = vmatprep.subr.mxu0 %v4218_v17  ;;  %v4725_v17 = vld [vmem:[%s7123_s18 + $0x38] sm:$0xff] }
0x2e33   :  { %5260 = vmatpush3.msra.mxu0 %v4202_v56  ;;  %v4740_v56 = vld [vmem:[%s7123_s18 + $0xb0] sm:$0xff] }
0x2e34   :  { %5261 = vmatprep.subr.mxu0 %v4217_v30  ;;  %v4724_v30 = vld [vmem:[%s7123_s18 + $0x30] sm:$0xff] }
0x2e35   :  { %5262 = vmatpush3.msra.mxu0 %v4201_v53  ;;  %v5144_v53 = vld [vmem:[%s5034_s22] ss:$0 sm:$0xff] }
0x2e36   :  { %5263 = vmatprep.subr.mxu0 %v4216_v7 }
0x2e37   :  { %5264 = vmatpush3.msra.mxu0 %v4200_v14  ;;  %v5146_v14 = vld [vmem:[%s5035_s26] ss:$0 sm:$0xff] }
0x2e38   :  { %5265 = vmatprep.subr.mxu0 %v4215_v41 }
0x2e39   :  { %5266 = vmatpush3.msra.mxu0 %v4199_v40  ;;  %v5147_v40 = vld [vmem:[%s5036_s1] ss:$0 sm:$0xff] }
0x2e3a   :  { %5267 = vmatprep.subr.mxu0 %v4214_v42 }
0x2e3b   :  { %5268 = vmatpush3.msra.mxu0 %v4198_v21 }
0x2e3c   :  { %5269 = vmatprep.subr.mxu0 %v4213_v33 }
0x2e3d   :  { %5270 = vmatpush3.msra.mxu0 %v4197_v47 }
0x2e3e   :  { %5271 = vmatprep.subr.mxu0 %v4212_v20  ;;  %v4330_v20 = vld [vmem:[%s7118_s14 + $0x78] sm:$0xff] }
0x2e3f   :  { %5272 = vmatpush3.msra.mxu0 %v4196_v52  ;;  %v4345_v52 = vld [vmem:[%s7118_s14 + $0xf0] sm:$0xff] }
0x2e40   :  { %5273 = vmatprep.subr.mxu0 %v4211_v25  ;;  %v4329_v25 = vld [vmem:[%s7118_s14 + $0x70] sm:$0xff] }
0x2e41   :  { %5274 = vmatpush3.msra.mxu0 %v4195_v49  ;;  %v4344_v49 = vld [vmem:[%s7118_s14 + $0xe8] sm:$0xff] }
0x2e42   :  { %5275 = vmatprep.subr.mxu0 %v4210_v11  ;;  %v4328_v11 = vld [vmem:[%s7118_s14 + $0x68] sm:$0xff] }
0x2e43   :  { %5276 = vmatpush3.msra.mxu0 %v4194_v28  ;;  %v4343_v28 = vld [vmem:[%s7118_s14 + $0xe0] sm:$0xff] }
0x2e44   :  { %5277 = vmatprep.subr.mxu0 %v4209_v39  ;;  %v4327_v39 = vld [vmem:[%s7118_s14 + $0x60] sm:$0xff] }
0x2e45   :  { %5278 = vmatpush3.msra.mxu0 %v4193_v54  ;;  %v4342_v54 = vld [vmem:[%s7118_s14 + $0xd8] sm:$0xff] }
0x2e46   :  { %5279 = vmatprep.subr.mxu0 %v4208_v24  ;;  %v4326_v24 = vld [vmem:[%s7118_s14 + $0x58] sm:$0xff] }
0x2e47   :  { %5280 = vmatpush3.msra.mxu0 %v4192_v13  ;;  %v4325_v13 = vld [vmem:[%s7118_s14 + $0x50] sm:$0xff] }
0x2e48   :  { %5281 = vmatprep.subr.mxu0 %v4207_v34  ;;  %v4340_v34 = vld [vmem:[%s7118_s14 + $0xc8] sm:$0xff] }
0x2e49   :  { %5282 = vmatpush3.msra.mxu0 %v4191_v59  ;;  %v4324_v59 = vld [vmem:[%s7118_s14 + $0x48] sm:$0xff] }
0x2e4a   :  { %4295 = vmatmul.mubr.f32.vlgmr.msra.gmra.mxu0 %v504_v55  ;;  %5330 = vmatprep.subr.mxu0 %v4749_v38  ;;  %v4339_v55 = vld [vmem:[%s7118_s14 + $0xc0] sm:$0xff]  ;;  %v4721_v38 = vld [vmem:[%s7123_s18 + $0x18] sm:$0xff] }
0x2e4b   :  { %4299 = vmatprep.mubr.f32.mxu0 %v512_v57  ;;  %5331 = vmatpush3.msra.mxu0 %v4733_v51  ;;  %v4323_v57 = vld [vmem:[%s7118_s14 + $0x40] sm:$0xff]  ;;  %v4333_v51 = vld [vmem:[%s7118_s14 + $0x90] sm:$0xff] }
0x2e4c   :  { %5332 = vmatprep.subr.mxu0 %v4748_v23  ;;  %v4736_v23 = vld [vmem:[%s7123_s18 + $0x90] sm:$0xff] }
0x2e4d   :  { %5333 = vmatpush3.msra.mxu0 %v4732_v37  ;;  %v4317_v37 = vld [vmem:[%s7118_s14 + $0x10] sm:$0xff] }
0x2e4e   :  { %4300 = vmatmul.mubr.f32.gmra.mxu0 %v510_v36  ;;  %5334 = vmatprep.subr.mxu0 %v4747_v43  ;;  %v4338_v36 = vld [vmem:[%s7118_s14 + $0xb8] sm:$0xff]  ;;  %v4720_v43 = vld [vmem:[%s7123_s18 + $0x10] sm:$0xff] }
0x2e4f   :  { %4304 = vmatprep.mubr.f32.mxu0 %v518_v19  ;;  %5335 = vmatpush3.msra.mxu0 %v4731_v45  ;;  %v4322_v19 = vld [vmem:[%s7118_s14 + $0x38] sm:$0xff]  ;;  %v4332_v45 = vld [vmem:[%s7118_s14 + $0x88] sm:$0xff] }
0x2e50   :  { %5336 = vmatprep.subr.mxu0 %v4746_v44  ;;  %v4735_v44 = vld [vmem:[%s7123_s18 + $0x88] sm:$0xff] }
0x2e51   :  { %5337 = vmatpush3.msra.mxu0 %v4730_v46  ;;  %v4316_v46 = vld [vmem:[%s7118_s14 + $0x8] sm:$0xff] }
0x2e52   :  { %4305 = vmatmul.mubr.f32.gmra.mxu0 %v516_v61  ;;  %5338 = vmatprep.subr.mxu0 %v4745_v48  ;;  %v4337_v61 = vld [vmem:[%s7118_s14 + $0xb0] sm:$0xff]  ;;  %v4719_v48 = vld [vmem:[%s7123_s18 + $0x8] sm:$0xff] }
0x2e53   :  { %4309 = vmatprep.mubr.f32.mxu0 %v524_v0  ;;  %5339 = vmatpush3.msra.mxu0 %v4729_v50  ;;  %v4321_v0 = vld [vmem:[%s7118_s14 + $0x30] sm:$0xff]  ;;  %v4331_v50 = vld [vmem:[%s7118_s14 + $0x80] sm:$0xff] }
0x2e54   :  { %5340 = vmatprep.subr.mxu0 %v4744_v29  ;;  %v4734_v29 = vld [vmem:[%s7123_s18 + $0x80] sm:$0xff] }
0x2e55   :  { %5341 = vmatpush3.msra.mxu0 %v4728_v35  ;;  %v4315_v35 = vld [vmem:[%s7118_s14] sm:$0xff] }
0x2e56   :  { %4310 = vmatmul.mubr.f32.gmra.mxu0 %v522_v58  ;;  %5342 = vmatprep.subr.mxu0 %v4743_v16  ;;  %v4336_v58 = vld [vmem:[%s7118_s14 + $0xa8] sm:$0xff]  ;;  %v4718_v16 = vld [vmem:[%s7123_s18] sm:$0xff] }
0x2e57   :  { %5343 = vmatpush3.msra.mxu0 %v4727_v12  ;;  %v4078_v12 = vld [vmem:[%s5038_s5] sm:$0x3] }
0x2e58   :  { %5344 = vmatprep.subr.mxu0 %v4742_v26  ;;  %v4161_v26 = vld [vmem:[%s5039_s8] sm:$0x3]  ;;  %s5886_s8 = smov 30  }
0x2e59   :  { %5345 = vmatpush3.msra.mxu0 %v4726_v31  ;;  %v4083_v31 = vrot.slane %v4078_v12, %v6125_v18  ;;  %s7271_s11 = sld [smem:[%s7363_s0 + %s5886_s8]]  }
0x2e5a   :  { %5346 = vmatprep.subr.mxu0 %v4741_v62  ;;  %v4166_v62 = vrot.slane %v4161_v26, %v6125_v18 }
0x2e5b   :  { %5347 = vmatpush3.msra.mxu0 %v4725_v17  ;;  %v4175_v17 = vld [vmem:[%s5040_s12] sm:$0x3]  ;;  %s5887_s12 = smov 35  }
0x2e5c   :  { %5348 = vmatprep.subr.mxu0 %v4740_v56  ;;  %v4087_v56 = vrot.slane %v4078_v12, %v6131_v22  ;;  %s7309_s15 = sld [smem:[%s7363_s0 + %s5887_s12]]  }
0x2e5d   :  { %5349 = vmatpush3.msra.mxu0 %v4724_v30 }
0x2e5e   :  { %5350 = vmatprep.subr.mxu0 %v4739_v63 }
0x2e5f   :  { %5351 = vmatpush3.msra.mxu0 %v4723_v4 }
0x2e60   :  { %5352 = vmatprep.subr.mxu0 %v4738_v1 }
0x2e61   :  { %5353 = vmatpush3.msra.mxu0 %v4722_v6 }
0x2e62   :  { %5354 = vmatprep.subr.mxu0 %v4737_v15 }
0x2e63   :  { %5355 = vmatpush3.msra.mxu0 %v4721_v38 }
0x2e64   :  { %5356 = vmatprep.subr.mxu0 %v4736_v23 }
0x2e65   :  { %5357 = vmatpush3.msra.mxu0 %v4720_v43 }
0x2e66   :  { %5358 = vmatprep.subr.mxu0 %v4735_v44 }
0x2e67   :  { %5359 = vmatpush3.msra.mxu0 %v4719_v48 }
0x2e68   :  { %5360 = vmatprep.subr.mxu0 %v4734_v29 }
0x2e69   :  { %5361 = vmatpush3.msra.mxu0 %v4718_v16 }
0x2e6a   :  { %5453 = vmatprep.subr.mxu0 %v5855_v27 }
0x2eea   :  { %v4025_v7 = vpop.f32.mrf.mxu0 }
0x2eeb   :  { %v4026_v41 = vadd.f32 %v5144_v53, %v4025_v7  ;;  %v4170_v7 = vrot.slane %v4161_v26, %v6131_v22 }
0x2eec   :  { %v5417_v42 = vpop.f32.mrf.mxu0 }
0x2eed   :  { %v4036_v21 = vmul.f32 %v5146_v14, %v4026_v41  ;;  %v4180_v14 = vrot.slane %v4175_v17, %v6125_v18 }
0x2eef   :  { %v4044_v33 = vadd.f32 %v5147_v40, %v4036_v21  ;;  %v4184_v21 = vrot.slane %v4175_v17, %v6131_v22 }
0x2ef1   :  { %v4045_v47 = vmax.f32 %v4044_v33, 0.0 }
0x2ef3   :  { %4155 = vmatmul.mubr.f32.vlgmr.msra.gmra.mxu1 %v4045_v47 }
0x2ef4   :  { %5296 = vmatpush3.msra.mxu1 %v4330_v20 }
0x2ef5   :  { %5297 = vmatprep.subr.mxu1 %v4345_v52 }
0x2ef6   :  { %5298 = vmatpush3.msra.mxu1 %v4329_v25 }
0x2ef7   :  { %5299 = vmatprep.subr.mxu1 %v4344_v49 }
0x2ef8   :  { %5300 = vmatpush3.msra.mxu1 %v4328_v11 }
0x2ef9   :  { %5301 = vmatprep.subr.mxu1 %v4343_v28 }
0x2efa   :  { %5302 = vmatpush3.msra.mxu1 %v4327_v39  ;;  %v5879_v39 = vmov 1966171168  }
0x2efb   :  { %5303 = vmatprep.subr.mxu1 %v4342_v54  ;;  %v4430_v54 = vunpack.c.l.s4 %v5879_v39 }
0x2efc   :  { %5304 = vmatpush3.msra.mxu1 %v4326_v24 }
0x2efd   :  { %5305 = vmatprep.subr.mxu1 %v4341_v32  ;;  %v4431_v32 = vunpack.c.0.s8 %v4430_v54 }
0x2efe   :  { %5306 = vmatpush3.msra.mxu1 %v4325_v13 }
0x2eff   :  { %5307 = vmatprep.subr.mxu1 %v4340_v34 }
0x2f00   :  { %5308 = vmatpush3.msra.mxu1 %v4324_v59  ;;  %v5149_v59 = vld [vmem:[%s5044_s16] ss:$0 sm:$0xff]  ;;  %s5888_s16 = smov 32  }
0x2f01   :  { %5309 = vmatprep.subr.mxu1 %v4339_v55  ;;  %s5051_s19 = sld [smem:[%s7363_s0 + %s5888_s16]]  }
0x2f02   :  { %5310 = vmatpush3.msra.mxu1 %v4323_v57 }
0x2f03   :  { %5311 = vmatprep.subr.mxu1 %v4338_v36  ;;  %v4434_v36 = vsub.s32 %v4431_v32, %v6116_v10  ;;  %v4424_v32 = vld [vmem:[%s5045_s28] sm:$0x7]  ;;  %s5891_s28 = smov 36  }
0x2f04   :  { %5312 = vmatpush3.msra.mxu1 %v4322_v19  ;;  %s5055_s2 = sld [smem:[%s7363_s0 + %s5891_s28]]  }
0x2f05   :  { %5313 = vmatprep.subr.mxu1 %v4337_v61 }
0x2f06   :  { %5314 = vmatpush3.msra.mxu1 %v4321_v0 }
0x2f07   :  { %5315 = vmatprep.subr.mxu1 %v4336_v58  ;;  %v5148_v58 = vld [vmem:[%s5042_s20] ss:$0 sm:$0xff]  ;;  %s5889_s20 = smov 33  }
0x2f08   :  { %5316 = vmatpush3.msra.mxu1 %v4320_v3  ;;  %s5052_s23 = sld [smem:[%s7363_s0 + %s5889_s20]]  }
0x2f09   :  { %5317 = vmatprep.subr.mxu1 %v4335_v8 }
0x2f0a   :  { %5318 = vmatpush3.msra.mxu1 %v4319_v60  ;;  %v5283_v49 = vpop.f32.mrf.mxu0 }
0x2f0b   :  { %5319 = vmatprep.subr.mxu1 %v4334_v9 }
0x2f0c   :  { %5320 = vmatpush3.msra.mxu1 %v4318_v5  ;;  %v5284_v11 = vpop.f32.mrf.mxu0 }
0x2f0d   :  { %5321 = vmatprep.subr.mxu1 %v4333_v51  ;;  %v5285_v0 = vadd.f32 %v5284_v11, %v5283_v49 }
0x2f0e   :  { %5322 = vmatpush3.msra.mxu1 %v4317_v37  ;;  %v5286_v28 = vpop.f32.mrf.mxu0 }
0x2f0f   :  { %5323 = vmatprep.subr.mxu1 %v4332_v45  ;;  %v7226_v60 = vadd.f32 %v5285_v0, %v5148_v58 }
0x2f10   :  { %5324 = vmatpush3.msra.mxu1 %v4316_v46  ;;  %v5287_v24 = vpop.f32.mrf.mxu0 }
0x2f11   :  { %5325 = vmatprep.subr.mxu1 %v4331_v50  ;;  %v5288_v63 = vadd.f32 %v5287_v24, %v5286_v28 }
0x2f12   :  { %5326 = vmatpush3.msra.mxu1 %v4315_v35  ;;  %v5289_v13 = vpop.f32.mrf.mxu0 }
0x2f13   :  { %5418 = vmatprep.subr.mxu1 %v5855_v27  ;;  %v7228_v6 = vadd.f32 %v5288_v63, %v5148_v58 }
0x2f14   :  { %v5290_v19 = vpop.f32.mrf.mxu0 }
0x2f15   :  { %v5291_v9 = vadd.f32 %v5290_v19, %v5289_v13  ;;  %v4425_v13 = vld [vmem:[%s5046_s3] sm:$0x7]  ;;  %s5892_s3 = smov 37  }
0x2f16   :  { %v5292_v4 = vpop.f32.mrf.mxu0  ;;  %s5056_s6 = sld [smem:[%s7363_s0 + %s5892_s3]]  }
0x2f17   :  { %v7234_v43 = vadd.f32 %v5291_v9, %v5148_v58 }
0x2f18   :  { %v5293_v38 = vpop.f32.mrf.mxu0 }
0x2f19   :  { %v5294_v45 = vadd.f32 %v5293_v38, %v5292_v4 }
0x2f1b   :  { %v7237_v46 = vadd.f32 %v5294_v45, %v5148_v58 }
0x2fb3   :  { %v4156_v30 = vpop.f32.mrf.mxu1 }
0x2fb4   :  { %v4157_v53 = vadd.f32 %v4156_v30, %v4083_v31 }
0x2fb5   :  { %v4158_v41 = vpop.f32.mrf.mxu1 }
0x2fb6   :  { %v4173_v40 = vmul.f32 %v4166_v62, %v4157_v53  ;;  %v4159_v42 = vadd.f32 %v4158_v41, %v4087_v56 }
0x2fb8   :  { %v4174_v33 = vmul.f32 %v4170_v7, %v4159_v42  ;;  %v4187_v47 = vadd.f32 %v4180_v14, %v4173_v40  ;;  %v4427_v42 = vld [vmem:[%s5048_s24] sm:$0x7]  ;;  %s5890_s24 = smov 34  }
0x2fb9   :  { %5488 = vpush %v4427_v42  ;;  %s5053_s27 = sld [smem:[%s7363_s0 + %s5890_s24]]  }
0x2fba   :  { %v4188_v20 = vadd.f32 %v4184_v21, %v4174_v33  ;;  %v4189_v25 = vmax.f32 %v4187_v47, 0.0 }
0x2fbc   :  { %v4190_v52 = vmax.f32 %v4188_v20, 0.0 }
0x2fbe   :  { %4418 = vmatprep.mubr.f32.mxu1 %v4190_v52  ;;  %4814 = vmatprep.mubr.f32.mxu0 %v4190_v52 }
0x2fbf   :  { %4419 = vmatmul.mubr.f32.vlgmr.msra.gmra.mxu1 %v4189_v25  ;;  %4815 = vmatmul.mubr.f32.vlgmr.msra.gmra.mxu0 %v4189_v25 }
0x2fc0   :  { %5450 = vmatprep.mubr.msk.f32.mxu1 %vm5866_vm6, %v5855_v27  ;;  %5485 = vmatprep.mubr.msk.f32.mxu0 %vm5866_vm6, %v5855_v27 }
0x2fea   :  { %s5489_s30 = spop %5488 }
0x307f   :  { %v5327_v34 = vpop.f32.mrf.mxu1 }
0x3081   :  { %v5328_v55 = vpop.f32.mrf.mxu1 }
0x3082   :  { %v5329_v57 = vadd.f32 %v5328_v55, %v5327_v34  ;;  %v4513_v34 = vrot.slane %v4424_v32, %v6125_v18 }
0x3084   :  { %v4421_v61 = vadd.f32 %v5329_v57, %v5149_v59 }
0x3086   :  { %v4435_v3 = vrot.slane %v4421_v61, %v4434_v36 }
0x3088   :  { %v4436_v8 = vcombine.high %v4435_v3, %v4435_v3  ;;  %v4443_v1 = vrot.slane %v4435_v3, %v4434_v36 }
0x308a   :  { %v4454_v15 = vrot.slane %v4443_v1, %v6125_v18  ;;  %v4450_v5 = vrot.slane %v4436_v8, %v4434_v36  ;;  %v4521_v36 = vrot.slane %v4425_v13, %v6125_v18 }
0x308c   :  { %v4462_v51 = vadd.f32 %v4454_v15, %v7228_v6  ;;  %v4461_v23 = vadd.f32 %v4454_v15, %v7226_v60  ;;  %v4458_v37 = vrot.slane %v4450_v5, %v6125_v18 }
0x308e   :  { %4467 = vadd.xlane.f32.xlu1 %v4462_v51  ;;  %4465 = vadd.xlane.f32.xlu0 %v4461_v23  ;;  %v4463_v44 = vadd.f32 %v4458_v37, %v7234_v43  ;;  %v4464_v48 = vadd.f32 %v4458_v37, %v7237_v46 }
0x3092   :  { %4469 = vadd.xlane.f32.xlu0 %v4463_v44 }
0x3096   :  { %4471 = vadd.xlane.f32.xlu0 %v4464_v48 }
0x3117   :  { %v4468_v50 = vpop.xlane.xlu1 %4467  ;;  %v4466_v29 = vpop.xlane.xlu0 %4465 }
0x3118   :  { %v4475_v35 = vmul.f32 0.0078125, %v4468_v50  ;;  %v4474_v16 = vmul.f32 0.0078125, %v4466_v29 }
0x311a   :  { %v4479_v12 = vsub.f32 %v4462_v51, %v4475_v35  ;;  %v4478_v26 = vsub.f32 %v4461_v23, %v4474_v16  ;;  %v4426_v51 = vld [vmem:[%s5047_s7] sm:$0x7] }
0x311b   :  { %v4470_v31 = vpop.xlane.xlu0 %4469  ;;  %v4533_v23 = vrot.slane %v4426_v51, %v6125_v18 }
0x311c   :  { %v4476_v62 = vmul.f32 0.0078125, %v4470_v31  ;;  %v4483_v17 = vmul.f32 %v4479_v12, %v4479_v12  ;;  %v4482_v56 = vmul.f32 %v4478_v26, %v4478_v26 }
0x311e   :  { %v4480_v30 = vsub.f32 %v4463_v44, %v4476_v62  ;;  %4488 = vadd.xlane.f32.xlu0 %v4483_v17  ;;  %4486 = vadd.xlane.f32.xlu1 %v4482_v56  ;;  %v4547_v62 = vstv %s5489_s30 }
0x311f   :  { %v4472_v53 = vpop.xlane.xlu0 %4471 }
0x3120   :  { %v4477_v7 = vmul.f32 0.0078125, %v4472_v53  ;;  %v4484_v14 = vmul.f32 %v4480_v30, %v4480_v30 }
0x3122   :  { %v4481_v41 = vsub.f32 %v4464_v48, %v4477_v7  ;;  %4490 = vadd.xlane.f32.xlu1 %v4484_v14 }
0x3124   :  { %v4485_v40 = vmul.f32 %v4481_v41, %v4481_v41 }
0x3126   :  { %4492 = vadd.xlane.f32.xlu0 %v4485_v40 }
0x31a7   :  { %v4487_v21 = vpop.xlane.xlu1 %4486  ;;  %v4489_v33 = vpop.xlane.xlu0 %4488 }
0x31a8   :  { %v4494_v47 = vmul.f32 0.0078125, %v4487_v21  ;;  %v4495_v20 = vmul.f32 0.0078125, %v4489_v33 }
0x31aa   :  { %v4498_v52 = vadd.f32 1e-05, %v4494_v47  ;;  %v4499_v25 = vadd.f32 1e-05, %v4495_v20 }
0x31ab   :  { %v4491_v49 = vpop.xlane.xlu1 %4490 }
0x31ac   :  { %5823 = vrsqrt.f32 %v4498_v52  ;;  %v4496_v11 = vmul.f32 0.0078125, %v4491_v49 }
0x31ad   :  { %5825 = vrsqrt.f32 %v4499_v25 }
0x31ae   :  { %v4500_v28 = vadd.f32 1e-05, %v4496_v11 }
0x31af   :  { %v4493_v39 = vpop.xlane.xlu0 %4492 }
0x31b0   :  { %5827 = vrsqrt.f32 %v4500_v28  ;;  %v4497_v54 = vmul.f32 0.0078125, %v4493_v39 }
0x31b2   :  { %v4501_v24 = vadd.f32 1e-05, %v4497_v54 }
0x31b4   :  { %5829 = vrsqrt.f32 %v4501_v24 }
0x31b9   :  { %v5824_v59 = vpop.eup %5823 }
0x31ba   :  { %v5826_v55 = vpop.eup %5825  ;;  %v4506_v57 = vmul.f32 %v5824_v59, %v4478_v26 }
0x31bb   :  { %v4507_v19 = vmul.f32 %v5826_v55, %v4479_v12  ;;  %v4557_v12 = vand.u32 127, %v407_v2 }
0x31bc   :  { %v4514_v61 = vmul.f32 %v4513_v34, %v4506_v57 }
0x31bd   :  { %v5828_v0 = vpop.eup %5827  ;;  %v4515_v58 = vmul.f32 %v4513_v34, %v4507_v19  ;;  %v4562_v31 = vadd.s32 4294967288, %v4557_v12 }
0x31be   :  { %v4508_v63 = vmul.f32 %v5828_v0, %v4480_v30  ;;  %v4522_v3 = vadd.f32 %v4521_v36, %v4514_v61  ;;  %v4560_v30 = vsub.s32 %v4557_v12, %v6116_v10  ;;  %v4714_v12 = vld [vmem:[%s7271_s11 + $0x60] sm:$0xff] }
0x31bf   :  { %v4523_v4 = vadd.f32 %v4521_v36, %v4515_v58  ;;  %v4565_v7 = vsub.s32 %v4562_v31, %v6116_v10  ;;  %v5885_v10 = vmov 0   ;;  %v4712_v31 = vld [vmem:[%s7271_s11 + $0x50] sm:$0xff] }
0x31c0   :  { %v4516_v8 = vmul.f32 %v4513_v34, %v4508_v63  ;;  %5831 = vtanh.f32 %v4522_v3  ;;  %5533 = vset.pattern.permute.xlu1 %v5885_v10  ;;  %5532 = vset.pattern.permute.xlu0 %v5885_v10  ;;  %v4928_v10 = vld [vmem:[%s7309_s15 + $0x48] sm:$0xff] }
0x31c1   :  { %v5830_v1 = vpop.eup %5829  ;;  %5833 = vtanh.f32 %v4523_v4 }
0x31c2   :  { %v4509_v9 = vmul.f32 %v5830_v1, %v4481_v41  ;;  %v4524_v15 = vadd.f32 %v4521_v36, %v4516_v8 }
0x31c4   :  { %v4517_v5 = vmul.f32 %v4513_v34, %v4509_v9  ;;  %5835 = vtanh.f32 %v4524_v15 }
0x31c6   :  { %v4525_v38 = vadd.f32 %v4521_v36, %v4517_v5 }
0x31c8   :  { %5837 = vtanh.f32 %v4525_v38 }
0x31cd   :  { %v5832_v37 = vpop.eup %5831 }
0x31ce   :  { %v5834_v45 = vpop.eup %5833  ;;  %v4534_v44 = vmul.f32 %v5832_v37, %v4533_v23  ;;  %v4717_v37 = vld [vmem:[%s7271_s11 + $0x78] sm:$0xff] }
0x31cf   :  { %v4535_v48 = vmul.f32 %v5834_v45, %v4533_v23  ;;  %5419 = vmatpush3.msra.mxu1 %v4717_v37  ;;  %v4919_v37 = vld [vmem:[%s7309_s15] sm:$0xff] }
0x31d0   :  { %4538 = vadd.xlane.f32.xlu1 %v4534_v44  ;;  %5420 = vmatprep.subr.mxu1 %v5855_v27 }
0x31d1   :  { %v5836_v50 = vpop.eup %5835  ;;  %4540 = vadd.xlane.f32.xlu0 %v4535_v48 }
0x31d2   :  { %v4536_v29 = vmul.f32 %v5836_v50, %v4533_v23  ;;  %v4716_v50 = vld [vmem:[%s7271_s11 + $0x70] sm:$0xff] }
0x31d3   :  { %5421 = vmatpush3.msra.mxu1 %v4716_v50  ;;  %v5150_v50 = vld [vmem:[%s5051_s19] ss:$0 sm:$0xff] }
0x31d4   :  { %4542 = vadd.xlane.f32.xlu1 %v4536_v29  ;;  %v4715_v29 = vld [vmem:[%s7271_s11 + $0x68] sm:$0xff]  ;;  %5422 = vmatprep.subr.mxu1 %v5855_v27 }
0x31d5   :  { %v5838_v35 = vpop.eup %5837  ;;  %5423 = vmatpush3.msra.mxu1 %v4715_v29 }
0x31d6   :  { %v4537_v16 = vmul.f32 %v5838_v35, %v4533_v23  ;;  %5424 = vmatprep.subr.mxu1 %v5855_v27 }
0x31d7   :  { %5425 = vmatpush3.msra.mxu1 %v4714_v12 }
0x31d8   :  { %4544 = vadd.xlane.f32.xlu0 %v4537_v16  ;;  %5426 = vmatprep.subr.mxu1 %v5855_v27 }
0x3259   :  { %v4539_v26 = vpop.xlane.xlu1 %4538 }
0x325a   :  { %v4541_v17 = vpop.xlane.xlu0 %4540  ;;  %v4548_v53 = vadd.f32 %v4547_v62, %v4539_v26  ;;  %v4713_v26 = vld [vmem:[%s7271_s11 + $0x58] sm:$0xff] }
0x325b   :  { %v4549_v14 = vadd.f32 %v4547_v62, %v4541_v17  ;;  %5427 = vmatpush3.msra.mxu1 %v4713_v26  ;;  %v4711_v17 = vld [vmem:[%s7271_s11 + $0x48] sm:$0xff] }
0x325c   :  { %v4561_v42 = vrot.slane %v4548_v53, %v4560_v30  ;;  %5428 = vmatprep.subr.mxu1 %v5855_v27 }
0x325d   :  { %v4543_v56 = vpop.xlane.xlu1 %4542  ;;  %v4566_v21 = vrot.slane %v4549_v14, %v4565_v7  ;;  %5429 = vmatpush3.msra.mxu1 %v4712_v31 }
0x325e   :  { %v4550_v41 = vadd.f32 %v4547_v62, %v4543_v56  ;;  %5430 = vmatprep.subr.mxu1 %v5855_v27  ;;  %v4710_v56 = vld [vmem:[%s7271_s11 + $0x40] sm:$0xff] }
0x325f   :  { %v4568_v20 = vsel %vm4567_vm7, %v4566_v21, %v4561_v42  ;;  %5431 = vmatpush3.msra.mxu1 %v4711_v17  ;;  %v4704_v42 = vld [vmem:[%s7271_s11 + $0x10] sm:$0xff]  ;;  %v4703_v21 = vld [vmem:[%s7271_s11 + $0x8] sm:$0xff] }
0x3260   :  { %v4572_v47 = vrot.slane %v4550_v41, %v4560_v30  ;;  %5432 = vmatprep.subr.mxu1 %v5855_v27 }
0x3261   :  { %v4545_v40 = vpop.xlane.xlu0 %4544  ;;  %5433 = vmatpush3.msra.mxu1 %v4710_v56 }
0x3262   :  { %v4551_v33 = vadd.f32 %v4547_v62, %v4545_v40  ;;  %5434 = vmatprep.subr.mxu1 %v5855_v27  ;;  %v4705_v40 = vld [vmem:[%s7271_s11 + $0x18] sm:$0xff] }
0x3264   :  { %v4576_v2 = vrot.slane %v4551_v33, %v4565_v7 }
0x3266   :  { %v4577_v52 = vsel %vm4567_vm7, %v4576_v2, %v4572_v47  ;;  %v4934_v47 = vld [vmem:[%s7309_s15 + $0x78] sm:$0xff]  ;;  %v4933_v2 = vld [vmem:[%s7309_s15 + $0x70] sm:$0xff] }
0x3267   :  { %v4579_v25 = vsel %vm4578_vm8, %v4577_v52, %v4568_v20  ;;  %5454 = vmatpush3.msra.mxu0 %v4934_v47  ;;  %v4932_v20 = vld [vmem:[%s7309_s15 + $0x68] sm:$0xff]  ;;  %v4931_v52 = vld [vmem:[%s7309_s15 + $0x60] sm:$0xff] }
0x3268   :  { %v4582_v49 = vsel %vm4581_vm9, %v4579_v25, -inf  ;;  %5455 = vmatprep.subr.mxu0 %v5855_v27  ;;  %v4930_v25 = vld [vmem:[%s7309_s15 + $0x58] sm:$0xff] }
0x3269   :  { %4583 = vmax.xlane.f32.xlu1 %v4582_v49  ;;  %5456 = vmatpush3.msra.mxu0 %v4933_v2  ;;  %v4929_v49 = vld [vmem:[%s7309_s15 + $0x50] sm:$0xff] }
0x326a   :  { %5457 = vmatprep.subr.mxu0 %v5855_v27 }
0x326b   :  { %5458 = vmatpush3.msra.mxu0 %v4932_v20 }
0x326c   :  { %5459 = vmatprep.subr.mxu0 %v5855_v27 }
0x326d   :  { %5460 = vmatpush3.msra.mxu0 %v4931_v52 }
0x326e   :  { %5461 = vmatprep.subr.mxu0 %v5855_v27 }
0x326f   :  { %5462 = vmatpush3.msra.mxu0 %v4930_v25 }
0x3270   :  { %5463 = vmatprep.subr.mxu0 %v5855_v27 }
0x3271   :  { %5464 = vmatpush3.msra.mxu0 %v4929_v49 }
0x3272   :  { %5465 = vmatprep.subr.mxu0 %v5855_v27 }
0x3273   :  { %5466 = vmatpush3.msra.mxu0 %v4928_v10 }
0x3274   :  { %5467 = vmatprep.subr.mxu0 %v5855_v27 }
0x32f2   :  { %v4584_v11 = vpop.xlane.xlu1 %4583 }
0x32f3   :  { %v4589_v28 = vrot.slane %v4584_v11, %v6125_v18  ;;  %v4593_v39 = vrot.slane %v4584_v11, %v6131_v22  ;;  %v4927_v11 = vld [vmem:[%s7309_s15 + $0x40] sm:$0xff] }
0x32f4   :  { %5468 = vmatpush3.msra.mxu0 %v4927_v11 }
0x32f5   :  { %v4596_v54 = vsub.f32 %v4548_v53, %v4589_v28  ;;  %v4597_v24 = vsub.f32 %v4549_v14, %v4589_v28  ;;  %v4598_v32 = vsub.f32 %v4550_v41, %v4593_v39  ;;  %v4599_v59 = vsub.f32 %v4551_v33, %v4593_v39  ;;  %v4709_v53 = vld [vmem:[%s7271_s11 + $0x38] sm:$0xff]  ;;  %v4707_v14 = vld [vmem:[%s7271_s11 + $0x28] sm:$0xff]  ;;  %v4706_v41 = vld [vmem:[%s7271_s11 + $0x20] sm:$0xff]  ;;  %5469 = vmatprep.subr.mxu0 %v5855_v27 }
0x32f6   :  { %5435 = vmatpush3.msra.mxu1 %v4709_v53  ;;  %v4702_v33 = vld [vmem:[%s7271_s11] sm:$0xff]  ;;  %v4926_v28 = vld [vmem:[%s7309_s15 + $0x38] sm:$0xff]  ;;  %v4925_v39 = vld [vmem:[%s7309_s15 + $0x30] sm:$0xff] }
0x32f7   :  { %v4600_v13 = vmul.f32 1.442695, %v4596_v54  ;;  %v4602_v34 = vmul.f32 1.442695, %v4597_v24  ;;  %v4604_v55 = vmul.f32 1.442695, %v4598_v32  ;;  %5436 = vmatprep.subr.mxu1 %v5855_v27  ;;  %5470 = vmatpush3.msra.mxu0 %v4926_v28 }
0x32f8   :  { %v4606_v57 = vmul.f32 1.442695, %v4599_v59  ;;  %5471 = vmatprep.subr.mxu0 %v5855_v27 }
0x32f9   :  { %5839 = vpow2.f32 %v4600_v13  ;;  %5472 = vmatpush3.msra.mxu0 %v4925_v39 }
0x32fa   :  { %5841 = vpow2.f32 %v4602_v34  ;;  %5473 = vmatprep.subr.mxu0 %v5855_v27 }
0x32fb   :  { %5843 = vpow2.f32 %v4604_v55 }
0x32fc   :  { %5845 = vpow2.f32 %v4606_v57 }
0x3306   :  { %v5840_v36 = vpop.eup %5839 }
0x3307   :  { %v5842_v19 = vpop.eup %5841  ;;  %4613 = vperm.xlu0 %5532, %v5840_v36  }
0x3308   :  { %4616 = vperm.xlu1 %5533, %v5842_v19   ;;  %v5844_v61 = vpop.eup %5843 }
0x3309   :  { %v5846_v0 = vpop.eup %5845 }
0x330c   :  { %4619 = vperm.xlu1 %5533, %v5844_v61  }
0x3310   :  { %4622 = vperm.xlu1 %5533, %v5846_v0  }
0x3382   :  { %v4614_v63 = vpop.permute.xlu0 %4613 }
0x3383   :  { %v4617_v58 = vpop.permute.xlu1 %4616  ;;  %v4627_v8 = vrot.slane %v4614_v63, %v4560_v30 }
0x3384   :  { %v4631_v4 = vrot.slane %v4617_v58, %v4565_v7 }
0x3386   :  { %v4632_v5 = vsel %vm4567_vm7, %v4631_v4, %v4627_v8 }
0x3387   :  { %v4620_v3 = vpop.permute.xlu1 %4619 }
0x3388   :  { %v4636_v9 = vrot.slane %v4620_v3, %v4560_v30 }
0x338b   :  { %v4623_v1 = vpop.permute.xlu1 %4622 }
0x338c   :  { %v4640_v15 = vrot.slane %v4623_v1, %v4565_v7  ;;  %v4708_v7 = vld [vmem:[%s7271_s11 + $0x30] sm:$0xff] }
0x338d   :  { %5437 = vmatpush3.msra.mxu1 %v4708_v7 }
0x338e   :  { %v4641_v38 = vsel %vm4567_vm7, %v4640_v15, %v4636_v9  ;;  %5438 = vmatprep.subr.mxu1 %v5855_v27 }
0x338f   :  { %v4642_v51 = vsel %vm4578_vm8, %v4641_v38, %v4632_v5  ;;  %5439 = vmatpush3.msra.mxu1 %v4707_v14  ;;  %v4923_v5 = vld [vmem:[%s7309_s15 + $0x20] sm:$0xff]  ;;  %v4922_v38 = vld [vmem:[%s7309_s15 + $0x18] sm:$0xff] }
0x3390   :  { %v4644_v23 = vsel %vm4581_vm9, %v4642_v51, 0.0  ;;  %5440 = vmatprep.subr.mxu1 %v5855_v27  ;;  %v4921_v51 = vld [vmem:[%s7309_s15 + $0x10] sm:$0xff] }
0x3391   :  { %4645 = vadd.xlane.f32.xlu1 %v4644_v23  ;;  %5441 = vmatpush3.msra.mxu1 %v4706_v41  ;;  %v4920_v23 = vld [vmem:[%s7309_s15 + $0x8] sm:$0xff] }
0x3392   :  { %5442 = vmatprep.subr.mxu1 %v5855_v27 }
0x3393   :  { %5443 = vmatpush3.msra.mxu1 %v4705_v40 }
0x3394   :  { %5444 = vmatprep.subr.mxu1 %v5855_v27 }
0x3395   :  { %5445 = vmatpush3.msra.mxu1 %v4704_v42 }
0x3396   :  { %5446 = vmatprep.subr.mxu1 %v5855_v27 }
0x3397   :  { %5447 = vmatpush3.msra.mxu1 %v4703_v21 }
0x3398   :  { %5448 = vmatprep.subr.mxu1 %v5855_v27 }
0x3399   :  { %5449 = vmatpush3.msra.mxu1 %v4702_v33 }
0x341a   :  { %v4646_v45 = vpop.xlane.xlu1 %4645 }
0x341b   :  { %v4651_v44 = vrot.slane %v4646_v45, %v6125_v18  ;;  %v4655_v48 = vrot.slane %v4646_v45, %v6131_v22  ;;  %v5362_v45 = vpop.f32.mrf.mxu0 }
0x341d   :  { %5847 = vrcp.f32 %v4651_v44  ;;  %v5363_v44 = vpop.f32.mrf.mxu0 }
0x341e   :  { %5849 = vrcp.f32 %v4655_v48  ;;  %v5364_v48 = vadd.f32 %v5363_v44, %v5362_v45 }
0x342a   :  { %v5848_v35 = vpop.eup %5847 }
0x342b   :  { %v4659_v16 = vmul.f32 %v5848_v35, %v5840_v36  ;;  %v4660_v18 = vmul.f32 %v5848_v35, %v5842_v19  ;;  %v5850_v22 = vpop.eup %5849  ;;  %v5151_v35 = vld [vmem:[%s5052_s23] ss:$0 sm:$0xff] }
0x342c   :  { %v4662_v62 = vmul.f32 %v5850_v22, %v5844_v61  ;;  %v4663_v30 = vmul.f32 %v5850_v22, %v5846_v0 }
0x342d   :  { %4666 = vperm.xlu0 %5532, %v4659_v16  }
0x3431   :  { %4671 = vperm.xlu0 %5532, %v4660_v18   ;;  %v5152_v18 = vld [vmem:[%s5053_s27] ss:$0 sm:$0xff] }
0x3435   :  { %4676 = vperm.xlu0 %5532, %v4662_v62   ;;  %v5153_v62 = vld [vmem:[%s5055_s2] ss:$0 sm:$0xff] }
0x3439   :  { %4681 = vperm.xlu0 %5532, %v4663_v30  }
0x34a8   :  { %v4667_v54 = vpop.permute.xlu0 %4666 }
0x34a9   :  { %v4684_v32 = vmul.f32 %v4667_v54, %v7226_v60 }
0x34ac   :  { %v4672_v24 = vpop.permute.xlu0 %4671 }
0x34ad   :  { %v4685_v13 = vmul.f32 %v4672_v24, %v7228_v6 }
0x34af   :  { %v4688_v34 = vadd.f32 %v4685_v13, %v4684_v32 }
0x34b0   :  { %v4677_v59 = vpop.permute.xlu0 %4676 }
0x34b1   :  { %v4689_v55 = vrot.slane %v4688_v34, 4  ;;  %v4686_v19 = vmul.f32 %v4677_v59, %v7234_v43 }
0x34b3   :  { %v4690_v57 = vadd.f32 %v4689_v55, %v4688_v34 }
0x34b4   :  { %v4682_v36 = vpop.permute.xlu0 %4681 }
0x34b5   :  { %v4687_v61 = vmul.f32 %v4682_v36, %v7237_v46  ;;  %v4691_v0 = vrot.slane %v4690_v57, 2  ;;  %v4924_v46 = vld [vmem:[%s7309_s15 + $0x28] sm:$0xff] }
0x34b6   :  { %5474 = vmatpush3.msra.mxu0 %v4924_v46 }
0x34b7   :  { %v4695_v58 = vadd.f32 %v4687_v61, %v4686_v19  ;;  %v4692_v3 = vadd.f32 %v4691_v0, %v4690_v57  ;;  %5475 = vmatprep.subr.mxu0 %v5855_v27 }
0x34b8   :  { %5476 = vmatpush3.msra.mxu0 %v4923_v5 }
0x34b9   :  { %v4696_v63 = vrot.slane %v4695_v58, 4  ;;  %v4693_v8 = vrot.slane %v4692_v3, 1  ;;  %5477 = vmatprep.subr.mxu0 %v5855_v27 }
0x34ba   :  { %5478 = vmatpush3.msra.mxu0 %v4922_v38 }
0x34bb   :  { %v4697_v4 = vadd.f32 %v4696_v63, %v4695_v58  ;;  %v4694_v9 = vadd.f32 %v4693_v8, %v4692_v3  ;;  %5479 = vmatprep.subr.mxu0 %v5855_v27 }
0x34bc   :  { %5480 = vmatpush3.msra.mxu0 %v4921_v51 }
0x34bd   :  { %v4698_v60 = vrot.slane %v4697_v4, 2  ;;  %5481 = vmatprep.subr.mxu0 %v5855_v27 }
0x34be   :  { %5482 = vmatpush3.msra.mxu0 %v4920_v23 }
0x34bf   :  { %v4699_v6 = vadd.f32 %v4698_v60, %v4697_v4  ;;  %5483 = vmatprep.subr.mxu0 %v5855_v27 }
0x34c0   :  { %5484 = vmatpush3.msra.mxu0 %v4919_v37 }
0x34c1   :  { %v4700_v1 = vrot.slane %v4699_v6, 1 }
0x34c3   :  { %v4701_v15 = vadd.f32 %v4700_v1, %v4699_v6 }
0x34c5   :  { %v4822_v43 = vsel %vm4578_vm8, %v4701_v15, %v4694_v9 }
0x34c6   :  { %5451 = vmatmul.mubr.f32.vlgmr.msra.gmra.mxu1 %v4822_v43 }
0x3586   :  { %v4890_v27 = vpop.f32.mrf.mxu1 }
0x3587   :  { %v4891_v29 = vadd.f32 %v5364_v48, %v4890_v27 }
0x3588   :  { %v5452_v16 = vpop.f32.mrf.mxu1 }
0x3589   :  { %v4901_v12 = vadd.f32 %v5150_v50, %v4891_v29 }
0x358b   :  { %v4909_v22 = vmul.f32 %v5151_v35, %v4901_v12 }
0x358d   :  { %v4917_v26 = vadd.f32 %v5152_v18, %v4909_v22 }
0x358f   :  { %v4918_v31 = vmax.f32 %v4917_v26, 0.0 }
0x3591   :  { %5486 = vmatmul.mubr.f32.vlgmr.msra.gmra.mxu0 %v4918_v31 }
0x3651   :  { %v5008_v17 = vpop.f32.mrf.mxu0 }
0x3652   :  { %v5009_v56 = vadd.f32 %v5153_v62, %v5008_v17 }
0x3653   :  { %v5487_v30 = vpop.f32.mrf.mxu0 }
0x3654   :  { %v5013_v53 = vsel %vm5012_vm10, %v5009_v56, 0.0625 }
0x3655   :  { %v5014_v7 = vsel %vm561_vm1, %v5013_v53, 0.0 }
0x3656   :  { %5015 = vst [vmem:[%s5056_s6] sm:$0x3] %v5014_v7 }

</bundles_post_ra>
